<compile_context>
chip_gen: v7x
topology: tpu7x:2x2x1
jax: 0.10.0
libtpu: 0.0.40
codegen_flags: <defaults>
</compile_context>

<pallas_src>
import math

import jax
import jax.numpy as jnp
from jax.experimental import pallas as pl
from jax.experimental.pallas import tpu as pltpu


# --------------------------------------------------------------------------------------
# small helpers / generation-aware sizing
# --------------------------------------------------------------------------------------
def _round_up(n, m):
    return ((n + m - 1) // m) * m


def _cdiv(a, b):
    return -(-a // b)


def _detect_vmem_limit():
    try:
        cap = int(pltpu.get_tpu_info().vmem_capacity_bytes)
    except Exception:
        cap = 64 * 1024 * 1024          # conservative fallback == v7x per-TC VMEM
    return min(cap * 3 // 4, 96 * 1024 * 1024)


_VMEM_LIMIT = _detect_vmem_limit()      # ~48 MiB on v7x, ~96 MiB on v5e/v6e
_CONV_TM = 2048                         # conv M-tile cap (working set ~6-8 MiB, fits all gens)
_POOL_RT = 2048                         # pool feature-row tile cap (rows of 128 lanes)
_MM_TM = 1024                           # GEMM tile caps
_MM_TK = 1024


def _alphas(neuron_params):
    alpha_m = math.exp(-1.0 / float(neuron_params['tau_m']))
    alpha_s = math.exp(-1.0 / float(neuron_params['tau_s']))
    theta = float(neuron_params['theta'])
    return alpha_s, alpha_m, theta


def _to_bf16(x):
    if x.dtype == jnp.bfloat16:
        return x
    return x.astype(jnp.float32).astype(jnp.bfloat16)


def _im2col_tb(x, k, stride, pad):
    """x: (T, B, H, W, C) -> patches (T, B*Ho*Wo, k*k*C) in (kh, kw, C) order (same dtype)."""
    T, B, H, W, C = x.shape
    xp = jnp.pad(x, ((0, 0), (0, 0), (pad, pad), (pad, pad), (0, 0)))
    Ho = (H + 2 * pad - k) // stride + 1
    Wo = (W + 2 * pad - k) // stride + 1
    cols = []
    for di in range(k):
        for dj in range(k):
            cols.append(xp[:, :, di:di + stride * Ho:stride, dj:dj + stride * Wo:stride, :])
    patches = jnp.concatenate(cols, axis=-1)            # (T, B, Ho, Wo, k*k*C)
    return patches.reshape(T, B * Ho * Wo, k * k * C), Ho, Wo


# --------------------------------------------------------------------------------------
# Pallas kernel 1: K-tiled matmul with f32 VMEM accumulator (FC input projections)
# --------------------------------------------------------------------------------------
def _matmul_kernel(a_ref, w_ref, o_ref, acc_ref):
    @pl.when(pl.program_id(1) == 0)
    def _():
        acc_ref[...] = jnp.zeros_like(acc_ref)

    a = a_ref[...]
    if a.dtype != jnp.bfloat16:                 # int8 spikes -> bf16 in-kernel (VPU)
        a = a.astype(jnp.float32).astype(jnp.bfloat16)
    acc_ref[...] += jnp.dot(a, w_ref[...], preferred_element_type=jnp.float32)

    @pl.when(pl.program_id(1) == pl.num_programs(1) - 1)
    def _():
        o_ref[...] = acc_ref[...]


def pallas_matmul(a, w, tm_cap=_MM_TM, tk_cap=_MM_TK):
    """a: (M, K) int8/bf16/f32, w: (K, N) -> f32 (M, N).  K tiled; spikes stay int8 in HBM."""
    M, K = a.shape
    N = w.shape[1]
    n_m = _cdiv(M, tm_cap)
    tm = _round_up(_cdiv(M, n_m), 8)
    Mp = n_m * tm
    n_k = _cdiv(K, tk_cap)
    tk = _round_up(_cdiv(K, n_k), 128)
    Kp = n_k * tk
    Np = _round_up(N, 128)
    a_dtype = a.dtype if a.dtype in (jnp.int8, jnp.bfloat16) else jnp.bfloat16
    a_p = jnp.pad(a.astype(a_dtype), ((0, Mp - M), (0, Kp - K)))
    w_p = jnp.pad(w.astype(jnp.bfloat16), ((0, Kp - K), (0, Np - N)))
    out = pl.pallas_call(
        _matmul_kernel,
        out_shape=jax.ShapeDtypeStruct((Mp, Np), jnp.float32),
        grid=(n_m, n_k),
        in_specs=[pl.BlockSpec((tm, tk), lambda i, k: (i, k)),
                  pl.BlockSpec((tk, Np), lambda i, k: (k, 0))],
        out_specs=pl.BlockSpec((tm, Np), lambda i, k: (i, 0)),
        scratch_shapes=[pltpu.VMEM((tm, Np), jnp.float32)],
        compiler_params=pltpu.CompilerParams(
            dimension_semantics=("parallel", "arbitrary"),
            vmem_limit_bytes=_VMEM_LIMIT),
    )(a_p, w_p)
    return out[:M, :N]


# --------------------------------------------------------------------------------------
# Pallas kernel 2: fused conv-matmul + CuLIF (+ in-kernel spike-count accumulation)
# --------------------------------------------------------------------------------------
def _make_conv_lif_kernel(alpha_s, alpha_m, theta):
    def kernel(x_ref, w_ref, spk_ref, cnt_ref, i_ref, v_ref):
        @pl.when(pl.program_id(1) == 0)
        def _():
            i_ref[...] = jnp.zeros_like(i_ref)
            v_ref[...] = jnp.zeros_like(v_ref)
            cnt_ref[...] = jnp.zeros_like(cnt_ref)

        x = _to_bf16(x_ref[0])                       # int8/bf16 patches -> bf16
        cur = jnp.dot(x, w_ref[...], preferred_element_type=jnp.float32)
        i_new = alpha_s * i_ref[...] + cur           # synaptic current
        h = alpha_m * v_ref[...] + i_new             # membrane (pre-reset)
        spike = (h >= theta).astype(jnp.float32)
        v_ref[...] = h - theta * spike               # soft reset
        i_ref[...] = i_new
        spk_ref[0] = spike.astype(jnp.int8)
        cnt_ref[0] = cnt_ref[0] + jnp.sum(spike, axis=0, keepdims=True)

    return kernel


def conv_lif(x, w_mat, k, stride, pad, c_out, neuron_params, tm_cap=_CONV_TM):
    """x: (T, B, H, W, Cin) int8/bf16 -> (spikes (T, B, Ho, Wo, Cout) int8, spike count)."""
    T, B, H, W, Cin = x.shape
    # TODO(synk): im2col is still materialized in HBM (now int8); an in-kernel (kh, kw)
    # window gather would remove the k^2-expanded patch stream entirely.
    patches, Ho, Wo = _im2col_tb(x, k, stride, pad)          # (T, M, K), same dtype as x
    M = B * Ho * Wo
    K = k * k * Cin
    n_m = _cdiv(M, tm_cap)
    tm = _round_up(_cdiv(M, n_m), 8)
    Mp = n_m * tm
    Kp = _round_up(K, 128)
    patches = jnp.pad(patches, ((0, 0), (0, Mp - M), (0, Kp - K)))
    wp = jnp.pad(w_mat.astype(jnp.bfloat16), ((0, Kp - K), (0, 0)))      # (Kp, c_out)
    alpha_s, alpha_m, theta = _alphas(neuron_params)
    spk, cnt = pl.pallas_call(
        _make_conv_lif_kernel(alpha_s, alpha_m, theta),
        out_shape=(jax.ShapeDtypeStruct((T, Mp, c_out), jnp.int8),
                   jax.ShapeDtypeStruct((n_m, 1, c_out), jnp.float32)),
        grid=(n_m, T),
        in_specs=[pl.BlockSpec((1, tm, Kp), lambda m, t: (t, m, 0)),
                  pl.BlockSpec((Kp, c_out), lambda m, t: (0, 0))],
        out_specs=(pl.BlockSpec((1, tm, c_out), lambda m, t: (t, m, 0)),
                   pl.BlockSpec((1, 1, c_out), lambda m, t: (m, 0, 0))),
        scratch_shapes=[pltpu.VMEM((tm, c_out), jnp.float32),
                        pltpu.VMEM((tm, c_out), jnp.float32)],
        compiler_params=pltpu.CompilerParams(
            dimension_semantics=("parallel", "arbitrary"),
            vmem_limit_bytes=_VMEM_LIMIT),
    )(patches, wp)
    spikes = spk[:, :M, :].reshape(T, B, Ho, Wo, c_out)
    return spikes, jnp.sum(cnt)


# --------------------------------------------------------------------------------------
# Pallas kernel 3: CuLIF over time, feature-tiled (used after MaxPool)
# --------------------------------------------------------------------------------------
def _make_lif_kernel(alpha_s, alpha_m, theta):
    def kernel(x_ref, spk_ref, cnt_ref, i_ref, v_ref):
        @pl.when(pl.program_id(1) == 0)
        def _():
            i_ref[...] = jnp.zeros_like(i_ref)
            v_ref[...] = jnp.zeros_like(v_ref)
            cnt_ref[...] = jnp.zeros_like(cnt_ref)

        x = x_ref[0].astype(jnp.float32)
        i_new = alpha_s * i_ref[...] + x
        h = alpha_m * v_ref[...] + i_new
        spike = (h >= theta).astype(jnp.float32)
        v_ref[...] = h - theta * spike
        i_ref[...] = i_new
        spk_ref[0] = spike.astype(jnp.int8)
        cnt_ref[0] = cnt_ref[0] + jnp.sum(spike, axis=0, keepdims=True)

    return kernel


def pool_lif(spikes, neuron_params, rt_cap=_POOL_RT):
    """MaxPool2d(2) over incoming int8 spikes followed by a CuLIF layer tiled over the
    flattened (B*Ho*Wo*C) feature axis."""
    T, B, H, W, C = spikes.shape
    Ho, Wo = H // 2, W // 2
    # TODO(synk): the 2x2 max could be fused into the LIF kernel to avoid the pooled-tensor
    # HBM round-trip; kept in XLA (on int8) for now.
    x = jnp.maximum(jnp.maximum(spikes[:, :, ::2, ::2, :], spikes[:, :, 1::2, ::2, :]),
                    jnp.maximum(spikes[:, :, ::2, 1::2, :], spikes[:, :, 1::2, 1::2, :]))
    M = B * Ho * Wo * C
    R = _cdiv(M, 128)
    n_r = _cdiv(R, rt_cap)
    rt = _round_up(_cdiv(R, n_r), 8)
    Rp = n_r * rt
    xf = jnp.pad(x.reshape(T, -1), ((0, 0), (0, Rp * 128 - M))).reshape(T, Rp, 128)
    alpha_s, alpha_m, theta = _alphas(neuron_params)
    spk, cnt = pl.pallas_call(
        _make_lif_kernel(alpha_s, alpha_m, theta),
        out_shape=(jax.ShapeDtypeStruct((T, Rp, 128), jnp.int8),
                   jax.ShapeDtypeStruct((n_r, 1, 128), jnp.float32)),
        grid=(n_r, T),
        in_specs=[pl.BlockSpec((1, rt, 128), lambda r, t: (t, r, 0))],
        out_specs=(pl.BlockSpec((1, rt, 128), lambda r, t: (t, r, 0)),
                   pl.BlockSpec((1, 1, 128), lambda r, t: (r, 0, 0))),
        scratch_shapes=[pltpu.VMEM((rt, 128), jnp.float32),
                        pltpu.VMEM((rt, 128), jnp.float32)],
        compiler_params=pltpu.CompilerParams(
            dimension_semantics=("parallel", "arbitrary"),
            vmem_limit_bytes=_VMEM_LIMIT),
    )(xf)
    out = spk.reshape(T, Rp * 128)[:, :M].reshape(T, B, Ho, Wo, C)
    return out, jnp.sum(cnt)


# --------------------------------------------------------------------------------------
# FC scans: T loop lives INSIDE the kernel (grid over batch tiles only)
# --------------------------------------------------------------------------------------
def _fc_batch_tile(B, T, Np, out_bytes):
    bt = min(256, _round_up(B, 8))                       # 256-wide MXU on v6e/v7x
    per_row = T * Np * (4 + out_bytes) * 2               # cur + spikes, double-buffered
    budget = max(2 * 1024 * 1024, _VMEM_LIMIT // 2)
    while bt > 8 and bt * per_row > budget:
        bt -= 8
    return bt


def _make_rfc_scan_kernel(alpha_s, alpha_m, theta, T):
    def kernel(cur_ref, wrec_ref, spk_ref, cnt_ref, s_ref, i_ref, v_ref):
        s_ref[...] = jnp.zeros_like(s_ref)
        i_ref[...] = jnp.zeros_like(i_ref)
        v_ref[...] = jnp.zeros_like(v_ref)
        cnt_ref[...] = jnp.zeros_like(cnt_ref)

        # TODO(synk): AddLinearRecurrentContainer source unavailable; assumed additive
        # recurrence on the neuron input: h_in = W_in x_t + W_rec s_{t-1}.
        def step(t, carry):
            cur = cur_ref[t] + jnp.dot(s_ref[...], wrec_ref[...],
                                       preferred_element_type=jnp.float32)
            i_new = alpha_s * i_ref[...] + cur
            h = alpha_m * v_ref[...] + i_new
            spike = (h >= theta).astype(jnp.float32)
            v_ref[...] = h - theta * spike
            i_ref[...] = i_new
            s_ref[...] = spike.astype(jnp.bfloat16)
            spk_ref[t] = spike.astype(jnp.bfloat16)
            cnt_ref[0] = cnt_ref[0] + jnp.sum(spike, axis=0, keepdims=True)
            return carry

        jax.lax.fori_loop(0, T, step, 0)

    return kernel


def spike_fc_recurrent(spikes, w_in, w_rec, neuron_params):
    """spikes: (T, B, K) int8 -> (spikes (T, B, N) bf16, spike count).
    The heavy x_t @ W_in projection is one batched (T*B, K) GEMM outside the T loop."""
    T, B, K = spikes.shape
    N = w_in.shape[1]
    cur_in = pallas_matmul(spikes.reshape(T * B, K), w_in)          # (T*B, N) f32
    Np = _round_up(N, 128)
    bt = _fc_batch_tile(B, T, Np, 2)
    Bp = _round_up(B, bt)
    n_b = Bp // bt
    cur = jnp.pad(cur_in.reshape(T, B, N), ((0, 0), (0, Bp - B), (0, Np - N)))
    wr = jnp.pad(w_rec.astype(jnp.bfloat16), ((0, Np - N), (0, Np - N)))
    alpha_s, alpha_m, theta = _alphas(neuron_params)
    spk, cnt = pl.pallas_call(
        _make_rfc_scan_kernel(alpha_s, alpha_m, theta, T),
        out_shape=(jax.ShapeDtypeStruct((T, Bp, Np), jnp.bfloat16),
                   jax.ShapeDtypeStruct((n_b, 1, Np), jnp.float32)),
        grid=(n_b,),
        in_specs=[pl.BlockSpec((T, bt, Np), lambda b: (0, b, 0)),
                  pl.BlockSpec((Np, Np), lambda b: (0, 0))],
        out_specs=(pl.BlockSpec((T, bt, Np), lambda b: (0, b, 0)),
                   pl.BlockSpec((1, 1, Np), lambda b: (b, 0, 0))),
        scratch_shapes=[pltpu.VMEM((bt, Np), jnp.bfloat16),
                        pltpu.VMEM((bt, Np), jnp.float32),
                        pltpu.VMEM((bt, Np), jnp.float32)],
        compiler_params=pltpu.CompilerParams(
            dimension_semantics=("parallel",),
            vmem_limit_bytes=_VMEM_LIMIT),
    )(cur, wr)
    return spk[:, :B, :N], jnp.sum(cnt)


def _make_fc_scan_kernel(alpha_s, alpha_m, theta, T):
    def kernel(cur_ref, spk_ref, cnt_ref, i_ref, v_ref):
        i_ref[...] = jnp.zeros_like(i_ref)
        v_ref[...] = jnp.zeros_like(v_ref)
        cnt_ref[...] = jnp.zeros_like(cnt_ref)

        # TODO(synk): h_seq (store_v_seq=True pre-reset membrane) is not emitted; re-add an
        # h output block here when wiring the exact Spike2Time decoder that consumes it.
        def step(t, carry):
            i_new = alpha_s * i_ref[...] + cur_ref[t]
            h = alpha_m * v_ref[...] + i_new
            spike = (h >= theta).astype(jnp.float32)
            v_ref[...] = h - theta * spike
            i_ref[...] = i_new
            spk_ref[t] = spike
            cnt_ref[0] = cnt_ref[0] + jnp.sum(spike, axis=0, keepdims=True)
            return carry

        jax.lax.fori_loop(0, T, step, 0)

    return kernel


def spike_fc_out(spikes, w, neuron_params):
    """spikes: (T, B, K) bf16 -> (spikes (T, B, N) f32, spike count)."""
    T, B, K = spikes.shape
    N = w.shape[1]
    cur_in = pallas_matmul(spikes.reshape(T * B, K), w)             # (T*B, N) f32
    Np = _round_up(N, 128)
    bt = _fc_batch_tile(B, T, Np, 4)
    Bp = _round_up(B, bt)
    n_b = Bp // bt
    cur = jnp.pad(cur_in.reshape(T, B, N), ((0, 0), (0, Bp - B), (0, Np - N)))
    alpha_s, alpha_m, theta = _alphas(neuron_params)
    spk, cnt = pl.pallas_call(
        _make_fc_scan_kernel(alpha_s, alpha_m, theta, T),
        out_shape=(jax.ShapeDtypeStruct((T, Bp, Np), jnp.float32),
                   jax.ShapeDtypeStruct((n_b, 1, Np), jnp.float32)),
        grid=(n_b,),
        in_specs=[pl.BlockSpec((T, bt, Np), lambda b: (0, b, 0))],
        out_specs=(pl.BlockSpec((T, bt, Np), lambda b: (0, b, 0)),
                   pl.BlockSpec((1, 1, Np), lambda b: (b, 0, 0))),
        scratch_shapes=[pltpu.VMEM((bt, Np), jnp.float32),
                        pltpu.VMEM((bt, Np), jnp.float32)],
        compiler_params=pltpu.CompilerParams(
            dimension_semantics=("parallel",),
            vmem_limit_bytes=_VMEM_LIMIT),
    )(cur)
    return spk[:, :B, :N], jnp.sum(cnt)


# --------------------------------------------------------------------------------------
# pure forward (jit-friendly; spike counts returned, not stored as a side effect)
# --------------------------------------------------------------------------------------
def dvsplanenet_forward(params, x, np1, np2, is_spike_train):
    # x: (B, C, H, W, T)   (matches the PyTorch x.permute(4, 0, 1, 2, 3))
    x = jnp.transpose(x, (4, 0, 1, 2, 3))                       # (T, B, C, H, W)
    T, B = x.shape[0], x.shape[1]
    x = jnp.transpose(x, (0, 1, 3, 4, 2)).astype(jnp.bfloat16)  # NHWC

    counts = []
    x, c = conv_lif(x, params['w_conv1'], 5, 2, 2, 32, np1);  counts.append(c / B)
    x, c = conv_lif(x, params['w_conv2'], 3, 1, 1, 64, np1);  counts.append(c / B)
    x, c = pool_lif(x, np1);                                  counts.append(c / B)
    x, c = conv_lif(x, params['w_conv3'], 3, 1, 1, 128, np1); counts.append(c / B)
    x, c = pool_lif(x, np1);                                  counts.append(c / B)

    # NHWC flatten feeds w_fc1 directly: w_fc1 rows are stored in (h, w, c) order, so no
    # activation transpose is needed (a PyTorch (c, h, w)-ordered checkpoint would be
    # row-permuted once at load time).
    xf = x.reshape(T, B, -1)                                     # (T, B, (H//8)*(W//8)*128)

    x, c = spike_fc_recurrent(xf, params['w_fc1'], params['w_rec1'], np2); counts.append(c / B)
    spk, c = spike_fc_out(x, params['w_fc2'], np2);                        counts.append(c / B)
    spike_counts = jnp.stack(counts)

    # TODO(synk): exact Spike2Time (loss_params-driven decoding of spikes + h_seq) source
    # unavailable; stand-in = first-spike index, T when the neuron never fires.
    spk_bt = jnp.transpose(spk, (1, 2, 0))                      # (B, out, T)
    has_spike = spk_bt.max(axis=-1) > 0
    first_t = jnp.argmax(spk_bt, axis=-1).astype(jnp.float32)
    output_times = jnp.where(has_spike, first_t, float(T))

    firing_rate = spk.mean(0)                                   # (B, out)
    outputs = [output_times, firing_rate]
    if is_spike_train:
        outputs.append(spk_bt)
    return outputs, spike_counts


# --------------------------------------------------------------------------------------
# DVSPlaneNet
# --------------------------------------------------------------------------------------
class DVSPlaneNetPallas:
    def __init__(self, input_size, out_size, neuron_params1, neuron_params2,
                 loss_params, is_spike_train=False, key=None):
        C, H, W = input_size
        self.input_size = (H, W)
        self.out_size = out_size
        self.np1 = dict(neuron_params1)
        self.np2 = dict(neuron_params2)
        self.loss_params = loss_params
        self.is_spike_train = bool(is_spike_train)

        if key is None:
            key = jax.random.PRNGKey(0)
        keys = jax.random.split(key, 6)

        def conv_w(k_, cin, cout, ksz):
            fan_in, fan_out = cin * ksz * ksz, cout * ksz * ksz
            lim = math.sqrt(6.0 / (fan_in + fan_out))
            # rows in (kh, kw, cin) order matching _im2col_tb
            return jax.random.uniform(k_, (ksz * ksz * cin, cout), jnp.float32, -lim, lim)

        def lin_w(k_, fin, fout):
            lim = math.sqrt(6.0 / (fin + fout))
            return jax.random.uniform(k_, (fin, fout), jnp.float32, -lim, lim)

        flat = 128 * (H // 8) * (W // 8)
        # NOTE: spec uses bias=False for all Conv2d / Linear layers, so no bias terms here.
        # w_fc1 rows are in NHWC flatten order (h, w, c).
        self.params = dict(
            w_conv1=conv_w(keys[0], C, 32, 5),
            w_conv2=conv_w(keys[1], 32, 64, 3),
            w_conv3=conv_w(keys[2], 64, 128, 3),
            w_fc1=lin_w(keys[3], flat, 256),
            w_rec1=lin_w(keys[4], 256, 256),
            w_fc2=lin_w(keys[5], 256, out_size),
        )
        self.spike_counts = jnp.zeros((7,), jnp.float32)

        np1, np2, spike_train = self.np1, self.np2, self.is_spike_train
        self._forward = jax.jit(
            lambda params, xx: dvsplanenet_forward(params, xx, np1, np2, spike_train))

    def __call__(self, x):
        outputs, spike_counts = self._forward(self.params, x)
        self.spike_counts = spike_counts     # concrete array (forward is jitted internally)
        return outputs


# --------------------------------------------------------------------------------------
if __name__ == "__main__":
    B, C, H, W, T = 2, 2, 16, 16, 8
    out_size = 10
    neuron_params1 = dict(tau_m=20.0, tau_s=5.0, theta=1.0)
    neuron_params2 = dict(tau_m=20.0, tau_s=5.0, theta=1.0)
    loss_params = dict(tau=10.0)   # unused by the stand-in Spike2Time

    key = jax.random.PRNGKey(0)
    k_in, k_par = jax.random.split(key)
    # synthetic binary DVS event volume, shape (B, C, H, W, T)
    x = (jax.random.uniform(k_in, (B, C, H, W, T), jnp.float32) > 0.7).astype(jnp.float32)

    net = DVSPlaneNetPallas((C, H, W), out_size, neuron_params1, neuron_params2,
                            loss_params, is_spike_train=True, key=k_par)
    outs = net(x)
    jax.block_until_ready(outs)
    assert outs[0].shape == (B, out_size)
    assert outs[1].shape == (B, out_size)
    assert outs[2].shape == (B, out_size, T)
    assert net.spike_counts.shape == (7,)
    print("KERNEL_OK")
</pallas_src>

<mosaic_0001>
module attributes {stable_mosaic.version = 11 : i64} {
  func.func @kernel(%arg0: i32, %arg1: i32, %arg2: memref<1x128x128xbf16, #tpu.memory_space<vmem>>, %arg3: memref<128x32xbf16, #tpu.memory_space<vmem>>, %arg4: memref<1x128x32xi8, #tpu.memory_space<vmem>>, %arg5: memref<1x1x32xf32, #tpu.memory_space<vmem>>, %arg6: memref<128x32xf32, #tpu.memory_space<vmem>>, %arg7: memref<128x32xf32, #tpu.memory_space<vmem>>) attributes {dimension_semantics = [#tpu.dimension_semantics<parallel>, #tpu.dimension_semantics<arbitrary>], iteration_bounds = array<i64: 1, 8>, scalar_prefetch = 0 : i64, scratch_operands = 2 : i64, tpu.core_type = #tpu.core_type<tc>, window_params = [{transform_indices = @transform_0, window_bounds = array<i64: 1, 128, 128>}, {pipeline_mode = #tpu.pipeline_mode<synchronous>, transform_indices = @transform_1, window_bounds = array<i64: 128, 32>}, {transform_indices = @transform_2, window_bounds = array<i64: 1, 128, 32>}, {transform_indices = @transform_3, window_bounds = array<i64: 1, 1, 32>}]} {
    %c0_i32 = arith.constant 0 : i32
    %0 = arith.cmpi eq, %arg1, %c0_i32 : i32
    %1 = arith.extui %0 : i1 to i32
    %c0_i32_0 = arith.constant 0 : i32
    %2 = arith.cmpi ne, %1, %c0_i32_0 : i32
    scf.if %2 {
      %cst_27 = arith.constant 0.000000e+00 : f32
      %36 = vector.broadcast %cst_27 : f32 to vector<128x32xf32>
      %c0_28 = arith.constant 0 : index
      %c0_29 = arith.constant 0 : index
      %37 = vector.load %arg6[%c0_28, %c0_29] : memref<128x32xf32, #tpu.memory_space<vmem>>, vector<128x32xf32>
      tpu.vector_store %arg6[%c0_28, %c0_29], %36 {strides = array<i32>} : memref<128x32xf32, #tpu.memory_space<vmem>>, vector<128x32xf32>,
      %cst_30 = arith.constant 0.000000e+00 : f32
      %38 = vector.broadcast %cst_30 : f32 to vector<128x32xf32>
      %c0_31 = arith.constant 0 : index
      %c0_32 = arith.constant 0 : index
      %39 = vector.load %arg7[%c0_31, %c0_32] : memref<128x32xf32, #tpu.memory_space<vmem>>, vector<128x32xf32>
      tpu.vector_store %arg7[%c0_31, %c0_32], %38 {strides = array<i32>} : memref<128x32xf32, #tpu.memory_space<vmem>>, vector<128x32xf32>,
      %cst_33 = arith.constant 0.000000e+00 : f32
      %40 = vector.broadcast %cst_33 : f32 to vector<1x1x32xf32>
      %c0_34 = arith.constant 0 : index
      %c0_35 = arith.constant 0 : index
      %c0_36 = arith.constant 0 : index
      %41 = vector.load %arg5[%c0_34, %c0_35, %c0_36] : memref<1x1x32xf32, #tpu.memory_space<vmem>>, vector<1x1x32xf32>
      tpu.vector_store %arg5[%c0_34, %c0_35, %c0_36], %40 {strides = array<i32>} : memref<1x1x32xf32, #tpu.memory_space<vmem>>, vector<1x1x32xf32>,
    } else {
    }
    %c0 = arith.constant 0 : index
    %c0_1 = arith.constant 0 : index
    %c0_2 = arith.constant 0 : index
    %3 = vector.load %arg2[%c0, %c0_1, %c0_2] : memref<1x128x128xbf16, #tpu.memory_space<vmem>>, vector<1x128x128xbf16>
    %4 = vector.shape_cast %3 : vector<1x128x128xbf16> to vector<128x128xbf16>
    %c0_3 = arith.constant 0 : index
    %c0_4 = arith.constant 0 : index
    %5 = vector.load %arg3[%c0_3, %c0_4] : memref<128x32xbf16, #tpu.memory_space<vmem>>, vector<128x32xbf16>
    %cst = arith.constant dense<0.000000e+00> : vector<128x32xf32>
    %6 = tpu.matmul %4, %5, %cst {dimension_numbers = #tpu.dot_dimension_numbers<[1], [0], [0], [1], [0, 0, 1, 1], [], []>} : vector<128x128xbf16>, vector<128x32xbf16>, vector<128x32xf32> -> vector<128x32xf32>
    %c0_5 = arith.constant 0 : index
    %c0_6 = arith.constant 0 : index
    %7 = vector.load %arg6[%c0_5, %c0_6] : memref<128x32xf32, #tpu.memory_space<vmem>>, vector<128x32xf32>
    %cst_7 = arith.constant 0.818730771 : f32
    %8 = vector.broadcast %cst_7 : f32 to vector<128x32xf32>
    %9 = arith.mulf %8, %7 : vector<128x32xf32>
    %10 = arith.addf %9, %6 : vector<128x32xf32>
    %c0_8 = arith.constant 0 : index
    %c0_9 = arith.constant 0 : index
    %11 = vector.load %arg7[%c0_8, %c0_9] : memref<128x32xf32, #tpu.memory_space<vmem>>, vector<128x32xf32>
    %cst_10 = arith.constant 0.951229453 : f32
    %12 = vector.broadcast %cst_10 : f32 to vector<128x32xf32>
    %13 = arith.mulf %12, %11 : vector<128x32xf32>
    %14 = arith.addf %13, %10 : vector<128x32xf32>
    %cst_11 = arith.constant 1.000000e+00 : f32
    %15 = vector.broadcast %cst_11 : f32 to vector<128x32xf32>
    %16 = arith.cmpf oge, %14, %15 : vector<128x32xf32>
    %17 = arith.extui %16 : vector<128x32xi1> to vector<128x32xi32>
    %18 = arith.sitofp %17 : vector<128x32xi32> to vector<128x32xf32>
    %cst_12 = arith.constant 1.000000e+00 : f32
    %19 = vector.broadcast %cst_12 : f32 to vector<128x32xf32>
    %20 = arith.mulf %19, %18 : vector<128x32xf32>
    %21 = arith.subf %14, %20 : vector<128x32xf32>
    %c0_13 = arith.constant 0 : index
    %c0_14 = arith.constant 0 : index
    %22 = vector.load %arg7[%c0_13, %c0_14] : memref<128x32xf32, #tpu.memory_space<vmem>>, vector<128x32xf32>
    tpu.vector_store %arg7[%c0_13, %c0_14], %21 {strides = array<i32>} : memref<128x32xf32, #tpu.memory_space<vmem>>, vector<128x32xf32>,
    %c0_15 = arith.constant 0 : index
    %c0_16 = arith.constant 0 : index
    %23 = vector.load %arg6[%c0_15, %c0_16] : memref<128x32xf32, #tpu.memory_space<vmem>>, vector<128x32xf32>
    tpu.vector_store %arg6[%c0_15, %c0_16], %10 {strides = array<i32>} : memref<128x32xf32, #tpu.memory_space<vmem>>, vector<128x32xf32>,
    %24 = arith.fptosi %18 : vector<128x32xf32> to vector<128x32xi8>
    %c0_17 = arith.constant 0 : index
    %c0_18 = arith.constant 0 : index
    %c0_19 = arith.constant 0 : index
    %25 = vector.load %arg4[%c0_17, %c0_18, %c0_19] : memref<1x128x32xi8, #tpu.memory_space<vmem>>, vector<1x128x32xi8>
    %26 = vector.shape_cast %25 : vector<1x128x32xi8> to vector<128x32xi8>
    %27 = vector.shape_cast %24 : vector<128x32xi8> to vector<1x128x32xi8>
    tpu.vector_store %arg4[%c0_17, %c0_18, %c0_19], %27 {strides = array<i32>} : memref<1x128x32xi8, #tpu.memory_space<vmem>>, vector<1x128x32xi8>,
    %c0_20 = arith.constant 0 : index
    %c0_21 = arith.constant 0 : index
    %c0_22 = arith.constant 0 : index
    %28 = vector.load %arg5[%c0_20, %c0_21, %c0_22] : memref<1x1x32xf32, #tpu.memory_space<vmem>>, vector<1x1x32xf32>
    %29 = vector.shape_cast %28 : vector<1x1x32xf32> to vector<1x32xf32>
    %cst_23 = arith.constant dense<0.000000e+00> : vector<32xf32>
    %30 = vector.multi_reduction <add>, %18, %cst_23 [0] : vector<128x32xf32> to vector<32xf32>
    %31 = vector.shape_cast %30 : vector<32xf32> to vector<1x32xf32>
    %32 = arith.addf %29, %31 : vector<1x32xf32>
    %c0_24 = arith.constant 0 : index
    %c0_25 = arith.constant 0 : index
    %c0_26 = arith.constant 0 : index
    %33 = vector.load %arg5[%c0_24, %c0_25, %c0_26] : memref<1x1x32xf32, #tpu.memory_space<vmem>>, vector<1x1x32xf32>
    %34 = vector.shape_cast %33 : vector<1x1x32xf32> to vector<1x32xf32>
    %35 = vector.shape_cast %32 : vector<1x32xf32> to vector<1x1x32xf32>
    tpu.vector_store %arg5[%c0_24, %c0_25, %c0_26], %35 {strides = array<i32>} : memref<1x1x32xf32, #tpu.memory_space<vmem>>, vector<1x1x32xf32>,
    return
  }
  func.func @transform_0(%arg0: i32, %arg1: i32) -> (i32, i32, i32) {
    %c0_i32 = arith.constant 0 : i32
    %c0_i32_0 = arith.constant 0 : i32
    return %arg1, %arg0, %c0_i32 : i32, i32, i32
  }
  func.func @transform_1(%arg0: i32, %arg1: i32) -> (i32, i32) {
    %c0_i32 = arith.constant 0 : i32
    %c0_i32_0 = arith.constant 0 : i32
    %c0_i32_1 = arith.constant 0 : i32
    return %c0_i32, %c0_i32_0 : i32, i32
  }
  func.func @transform_2(%arg0: i32, %arg1: i32) -> (i32, i32, i32) {
    %c0_i32 = arith.constant 0 : i32
    %c0_i32_0 = arith.constant 0 : i32
    return %arg1, %arg0, %c0_i32 : i32, i32, i32
  }
  func.func @transform_3(%arg0: i32, %arg1: i32) -> (i32, i32, i32) {
    %c0_i32 = arith.constant 0 : i32
    %c0_i32_0 = arith.constant 0 : i32
    %c0_i32_1 = arith.constant 0 : i32
    return %arg0, %c0_i32, %c0_i32_0 : i32, i32, i32
  }
}

module attributes {stable_mosaic.version = 11 : i64} {
  func.func @kernel(%arg0: i32, %arg1: i32, %arg2: memref<1x128x384xi8, #tpu.memory_space<vmem>>, %arg3: memref<384x64xbf16, #tpu.memory_space<vmem>>, %arg4: memref<1x128x64xi8, #tpu.memory_space<vmem>>, %arg5: memref<1x1x64xf32, #tpu.memory_space<vmem>>, %arg6: memref<128x64xf32, #tpu.memory_space<vmem>>, %arg7: memref<128x64xf32, #tpu.memory_space<vmem>>) attributes {dimension_semantics = [#tpu.dimension_semantics<parallel>, #tpu.dimension_semantics<arbitrary>], iteration_bounds = array<i64: 1, 8>, scalar_prefetch = 0 : i64, scratch_operands = 2 : i64, tpu.core_type = #tpu.core_type<tc>, window_params = [{transform_indices = @transform_0, window_bounds = array<i64: 1, 128, 384>}, {pipeline_mode = #tpu.pipeline_mode<synchronous>, transform_indices = @transform_1, window_bounds = array<i64: 384, 64>}, {transform_indices = @transform_2, window_bounds = array<i64: 1, 128, 64>}, {transform_indices = @transform_3, window_bounds = array<i64: 1, 1, 64>}]} {
    %c0_i32 = arith.constant 0 : i32
    %0 = arith.cmpi eq, %arg1, %c0_i32 : i32
    %1 = arith.extui %0 : i1 to i32
    %c0_i32_0 = arith.constant 0 : i32
    %2 = arith.cmpi ne, %1, %c0_i32_0 : i32
    scf.if %2 {
      %cst_27 = arith.constant 0.000000e+00 : f32
      %38 = vector.broadcast %cst_27 : f32 to vector<128x64xf32>
      %c0_28 = arith.constant 0 : index
      %c0_29 = arith.constant 0 : index
      %39 = vector.load %arg6[%c0_28, %c0_29] : memref<128x64xf32, #tpu.memory_space<vmem>>, vector<128x64xf32>
      tpu.vector_store %arg6[%c0_28, %c0_29], %38 {strides = array<i32>} : memref<128x64xf32, #tpu.memory_space<vmem>>, vector<128x64xf32>,
      %cst_30 = arith.constant 0.000000e+00 : f32
      %40 = vector.broadcast %cst_30 : f32 to vector<128x64xf32>
      %c0_31 = arith.constant 0 : index
      %c0_32 = arith.constant 0 : index
      %41 = vector.load %arg7[%c0_31, %c0_32] : memref<128x64xf32, #tpu.memory_space<vmem>>, vector<128x64xf32>
      tpu.vector_store %arg7[%c0_31, %c0_32], %40 {strides = array<i32>} : memref<128x64xf32, #tpu.memory_space<vmem>>, vector<128x64xf32>,
      %cst_33 = arith.constant 0.000000e+00 : f32
      %42 = vector.broadcast %cst_33 : f32 to vector<1x1x64xf32>
      %c0_34 = arith.constant 0 : index
      %c0_35 = arith.constant 0 : index
      %c0_36 = arith.constant 0 : index
      %43 = vector.load %arg5[%c0_34, %c0_35, %c0_36] : memref<1x1x64xf32, #tpu.memory_space<vmem>>, vector<1x1x64xf32>
      tpu.vector_store %arg5[%c0_34, %c0_35, %c0_36], %42 {strides = array<i32>} : memref<1x1x64xf32, #tpu.memory_space<vmem>>, vector<1x1x64xf32>,
    } else {
    }
    %c0 = arith.constant 0 : index
    %c0_1 = arith.constant 0 : index
    %c0_2 = arith.constant 0 : index
    %3 = vector.load %arg2[%c0, %c0_1, %c0_2] : memref<1x128x384xi8, #tpu.memory_space<vmem>>, vector<1x128x384xi8>
    %4 = vector.shape_cast %3 : vector<1x128x384xi8> to vector<128x384xi8>
    %5 = arith.sitofp %4 : vector<128x384xi8> to vector<128x384xf32>
    %6 = arith.truncf %5 : vector<128x384xf32> to vector<128x384xbf16>
    %c0_3 = arith.constant 0 : index
    %c0_4 = arith.constant 0 : index
    %7 = vector.load %arg3[%c0_3, %c0_4] : memref<384x64xbf16, #tpu.memory_space<vmem>>, vector<384x64xbf16>
    %cst = arith.constant dense<0.000000e+00> : vector<128x64xf32>
    %8 = tpu.matmul %6, %7, %cst {dimension_numbers = #tpu.dot_dimension_numbers<[1], [0], [0], [1], [0, 0, 1, 1], [], []>} : vector<128x384xbf16>, vector<384x64xbf16>, vector<128x64xf32> -> vector<128x64xf32>
    %c0_5 = arith.constant 0 : index
    %c0_6 = arith.constant 0 : index
    %9 = vector.load %arg6[%c0_5, %c0_6] : memref<128x64xf32, #tpu.memory_space<vmem>>, vector<128x64xf32>
    %cst_7 = arith.constant 0.818730771 : f32
    %10 = vector.broadcast %cst_7 : f32 to vector<128x64xf32>
    %11 = arith.mulf %10, %9 : vector<128x64xf32>
    %12 = arith.addf %11, %8 : vector<128x64xf32>
    %c0_8 = arith.constant 0 : index
    %c0_9 = arith.constant 0 : index
    %13 = vector.load %arg7[%c0_8, %c0_9] : memref<128x64xf32, #tpu.memory_space<vmem>>, vector<128x64xf32>
    %cst_10 = arith.constant 0.951229453 : f32
    %14 = vector.broadcast %cst_10 : f32 to vector<128x64xf32>
    %15 = arith.mulf %14, %13 : vector<128x64xf32>
    %16 = arith.addf %15, %12 : vector<128x64xf32>
    %cst_11 = arith.constant 1.000000e+00 : f32
    %17 = vector.broadcast %cst_11 : f32 to vector<128x64xf32>
    %18 = arith.cmpf oge, %16, %17 : vector<128x64xf32>
    %19 = arith.extui %18 : vector<128x64xi1> to vector<128x64xi32>
    %20 = arith.sitofp %19 : vector<128x64xi32> to vector<128x64xf32>
    %cst_12 = arith.constant 1.000000e+00 : f32
    %21 = vector.broadcast %cst_12 : f32 to vector<128x64xf32>
    %22 = arith.mulf %21, %20 : vector<128x64xf32>
    %23 = arith.subf %16, %22 : vector<128x64xf32>
    %c0_13 = arith.constant 0 : index
    %c0_14 = arith.constant 0 : index
    %24 = vector.load %arg7[%c0_13, %c0_14] : memref<128x64xf32, #tpu.memory_space<vmem>>, vector<128x64xf32>
    tpu.vector_store %arg7[%c0_13, %c0_14], %23 {strides = array<i32>} : memref<128x64xf32, #tpu.memory_space<vmem>>, vector<128x64xf32>,
    %c0_15 = arith.constant 0 : index
    %c0_16 = arith.constant 0 : index
    %25 = vector.load %arg6[%c0_15, %c0_16] : memref<128x64xf32, #tpu.memory_space<vmem>>, vector<128x64xf32>
    tpu.vector_store %arg6[%c0_15, %c0_16], %12 {strides = array<i32>} : memref<128x64xf32, #tpu.memory_space<vmem>>, vector<128x64xf32>,
    %26 = arith.fptosi %20 : vector<128x64xf32> to vector<128x64xi8>
    %c0_17 = arith.constant 0 : index
    %c0_18 = arith.constant 0 : index
    %c0_19 = arith.constant 0 : index
    %27 = vector.load %arg4[%c0_17, %c0_18, %c0_19] : memref<1x128x64xi8, #tpu.memory_space<vmem>>, vector<1x128x64xi8>
    %28 = vector.shape_cast %27 : vector<1x128x64xi8> to vector<128x64xi8>
    %29 = vector.shape_cast %26 : vector<128x64xi8> to vector<1x128x64xi8>
    tpu.vector_store %arg4[%c0_17, %c0_18, %c0_19], %29 {strides = array<i32>} : memref<1x128x64xi8, #tpu.memory_space<vmem>>, vector<1x128x64xi8>,
    %c0_20 = arith.constant 0 : index
    %c0_21 = arith.constant 0 : index
    %c0_22 = arith.constant 0 : index
    %30 = vector.load %arg5[%c0_20, %c0_21, %c0_22] : memref<1x1x64xf32, #tpu.memory_space<vmem>>, vector<1x1x64xf32>
    %31 = vector.shape_cast %30 : vector<1x1x64xf32> to vector<1x64xf32>
    %cst_23 = arith.constant dense<0.000000e+00> : vector<64xf32>
    %32 = vector.multi_reduction <add>, %20, %cst_23 [0] : vector<128x64xf32> to vector<64xf32>
    %33 = vector.shape_cast %32 : vector<64xf32> to vector<1x64xf32>
    %34 = arith.addf %31, %33 : vector<1x64xf32>
    %c0_24 = arith.constant 0 : index
    %c0_25 = arith.constant 0 : index
    %c0_26 = arith.constant 0 : index
    %35 = vector.load %arg5[%c0_24, %c0_25, %c0_26] : memref<1x1x64xf32, #tpu.memory_space<vmem>>, vector<1x1x64xf32>
    %36 = vector.shape_cast %35 : vector<1x1x64xf32> to vector<1x64xf32>
    %37 = vector.shape_cast %34 : vector<1x64xf32> to vector<1x1x64xf32>
    tpu.vector_store %arg5[%c0_24, %c0_25, %c0_26], %37 {strides = array<i32>} : memref<1x1x64xf32, #tpu.memory_space<vmem>>, vector<1x1x64xf32>,
    return
  }
  func.func @transform_0(%arg0: i32, %arg1: i32) -> (i32, i32, i32) {
    %c0_i32 = arith.constant 0 : i32
    %c0_i32_0 = arith.constant 0 : i32
    return %arg1, %arg0, %c0_i32 : i32, i32, i32
  }
  func.func @transform_1(%arg0: i32, %arg1: i32) -> (i32, i32) {
    %c0_i32 = arith.constant 0 : i32
    %c0_i32_0 = arith.constant 0 : i32
    %c0_i32_1 = arith.constant 0 : i32
    return %c0_i32, %c0_i32_0 : i32, i32
  }
  func.func @transform_2(%arg0: i32, %arg1: i32) -> (i32, i32, i32) {
    %c0_i32 = arith.constant 0 : i32
    %c0_i32_0 = arith.constant 0 : i32
    return %arg1, %arg0, %c0_i32 : i32, i32, i32
  }
  func.func @transform_3(%arg0: i32, %arg1: i32) -> (i32, i32, i32) {
    %c0_i32 = arith.constant 0 : i32
    %c0_i32_0 = arith.constant 0 : i32
    %c0_i32_1 = arith.constant 0 : i32
    return %arg0, %c0_i32, %c0_i32_0 : i32, i32, i32
  }
}

module attributes {stable_mosaic.version = 11 : i64} {
  func.func @kernel(%arg0: i32, %arg1: i32, %arg2: memref<1x16x128xi8, #tpu.memory_space<vmem>>, %arg3: memref<1x16x128xi8, #tpu.memory_space<vmem>>, %arg4: memref<1x1x128xf32, #tpu.memory_space<vmem>>, %arg5: memref<16x128xf32, #tpu.memory_space<vmem>>, %arg6: memref<16x128xf32, #tpu.memory_space<vmem>>) attributes {dimension_semantics = [#tpu.dimension_semantics<parallel>, #tpu.dimension_semantics<arbitrary>], iteration_bounds = array<i64: 1, 8>, scalar_prefetch = 0 : i64, scratch_operands = 2 : i64, tpu.core_type = #tpu.core_type<tc>, window_params = [{transform_indices = @transform_0, window_bounds = array<i64: 1, 16, 128>}, {transform_indices = @transform_1, window_bounds = array<i64: 1, 16, 128>}, {transform_indices = @transform_2, window_bounds = array<i64: 1, 1, 128>}]} {
    %c0_i32 = arith.constant 0 : i32
    %0 = arith.cmpi eq, %arg1, %c0_i32 : i32
    %1 = arith.extui %0 : i1 to i32
    %c0_i32_0 = arith.constant 0 : i32
    %2 = arith.cmpi ne, %1, %c0_i32_0 : i32
    scf.if %2 {
      %cst_24 = arith.constant 0.000000e+00 : f32
      %35 = vector.broadcast %cst_24 : f32 to vector<16x128xf32>
      %c0_25 = arith.constant 0 : index
      %c0_26 = arith.constant 0 : index
      %36 = vector.load %arg5[%c0_25, %c0_26] : memref<16x128xf32, #tpu.memory_space<vmem>>, vector<16x128xf32>
      tpu.vector_store %arg5[%c0_25, %c0_26], %35 {strides = array<i32>} : memref<16x128xf32, #tpu.memory_space<vmem>>, vector<16x128xf32>,
      %cst_27 = arith.constant 0.000000e+00 : f32
      %37 = vector.broadcast %cst_27 : f32 to vector<16x128xf32>
      %c0_28 = arith.constant 0 : index
      %c0_29 = arith.constant 0 : index
      %38 = vector.load %arg6[%c0_28, %c0_29] : memref<16x128xf32, #tpu.memory_space<vmem>>, vector<16x128xf32>
      tpu.vector_store %arg6[%c0_28, %c0_29], %37 {strides = array<i32>} : memref<16x128xf32, #tpu.memory_space<vmem>>, vector<16x128xf32>,
      %cst_30 = arith.constant 0.000000e+00 : f32
      %39 = vector.broadcast %cst_30 : f32 to vector<1x1x128xf32>
      %c0_31 = arith.constant 0 : index
      %c0_32 = arith.constant 0 : index
      %c0_33 = arith.constant 0 : index
      %40 = vector.load %arg4[%c0_31, %c0_32, %c0_33] : memref<1x1x128xf32, #tpu.memory_space<vmem>>, vector<1x1x128xf32>
      tpu.vector_store %arg4[%c0_31, %c0_32, %c0_33], %39 {strides = array<i32>} : memref<1x1x128xf32, #tpu.memory_space<vmem>>, vector<1x1x128xf32>,
    } else {
    }
    %c0 = arith.constant 0 : index
    %c0_1 = arith.constant 0 : index
    %c0_2 = arith.constant 0 : index
    %3 = vector.load %arg2[%c0, %c0_1, %c0_2] : memref<1x16x128xi8, #tpu.memory_space<vmem>>, vector<1x16x128xi8>
    %4 = vector.shape_cast %3 : vector<1x16x128xi8> to vector<16x128xi8>
    %5 = arith.sitofp %4 : vector<16x128xi8> to vector<16x128xf32>
    %c0_3 = arith.constant 0 : index
    %c0_4 = arith.constant 0 : index
    %6 = vector.load %arg5[%c0_3, %c0_4] : memref<16x128xf32, #tpu.memory_space<vmem>>, vector<16x128xf32>
    %cst = arith.constant 0.818730771 : f32
    %7 = vector.broadcast %cst : f32 to vector<16x128xf32>
    %8 = arith.mulf %7, %6 : vector<16x128xf32>
    %9 = arith.addf %8, %5 : vector<16x128xf32>
    %c0_5 = arith.constant 0 : index
    %c0_6 = arith.constant 0 : index
    %10 = vector.load %arg6[%c0_5, %c0_6] : memref<16x128xf32, #tpu.memory_space<vmem>>, vector<16x128xf32>
    %cst_7 = arith.constant 0.951229453 : f32
    %11 = vector.broadcast %cst_7 : f32 to vector<16x128xf32>
    %12 = arith.mulf %11, %10 : vector<16x128xf32>
    %13 = arith.addf %12, %9 : vector<16x128xf32>
    %cst_8 = arith.constant 1.000000e+00 : f32
    %14 = vector.broadcast %cst_8 : f32 to vector<16x128xf32>
    %15 = arith.cmpf oge, %13, %14 : vector<16x128xf32>
    %16 = arith.extui %15 : vector<16x128xi1> to vector<16x128xi32>
    %17 = arith.sitofp %16 : vector<16x128xi32> to vector<16x128xf32>
    %cst_9 = arith.constant 1.000000e+00 : f32
    %18 = vector.broadcast %cst_9 : f32 to vector<16x128xf32>
    %19 = arith.mulf %18, %17 : vector<16x128xf32>
    %20 = arith.subf %13, %19 : vector<16x128xf32>
    %c0_10 = arith.constant 0 : index
    %c0_11 = arith.constant 0 : index
    %21 = vector.load %arg6[%c0_10, %c0_11] : memref<16x128xf32, #tpu.memory_space<vmem>>, vector<16x128xf32>
    tpu.vector_store %arg6[%c0_10, %c0_11], %20 {strides = array<i32>} : memref<16x128xf32, #tpu.memory_space<vmem>>, vector<16x128xf32>,
    %c0_12 = arith.constant 0 : index
    %c0_13 = arith.constant 0 : index
    %22 = vector.load %arg5[%c0_12, %c0_13] : memref<16x128xf32, #tpu.memory_space<vmem>>, vector<16x128xf32>
    tpu.vector_store %arg5[%c0_12, %c0_13], %9 {strides = array<i32>} : memref<16x128xf32, #tpu.memory_space<vmem>>, vector<16x128xf32>,
    %23 = arith.fptosi %17 : vector<16x128xf32> to vector<16x128xi8>
    %c0_14 = arith.constant 0 : index
    %c0_15 = arith.constant 0 : index
    %c0_16 = arith.constant 0 : index
    %24 = vector.load %arg3[%c0_14, %c0_15, %c0_16] : memref<1x16x128xi8, #tpu.memory_space<vmem>>, vector<1x16x128xi8>
    %25 = vector.shape_cast %24 : vector<1x16x128xi8> to vector<16x128xi8>
    %26 = vector.shape_cast %23 : vector<16x128xi8> to vector<1x16x128xi8>
    tpu.vector_store %arg3[%c0_14, %c0_15, %c0_16], %26 {strides = array<i32>} : memref<1x16x128xi8, #tpu.memory_space<vmem>>, vector<1x16x128xi8>,
    %c0_17 = arith.constant 0 : index
    %c0_18 = arith.constant 0 : index
    %c0_19 = arith.constant 0 : index
    %27 = vector.load %arg4[%c0_17, %c0_18, %c0_19] : memref<1x1x128xf32, #tpu.memory_space<vmem>>, vector<1x1x128xf32>
    %28 = vector.shape_cast %27 : vector<1x1x128xf32> to vector<1x128xf32>
    %cst_20 = arith.constant dense<0.000000e+00> : vector<128xf32>
    %29 = vector.multi_reduction <add>, %17, %cst_20 [0] : vector<16x128xf32> to vector<128xf32>
    %30 = vector.shape_cast %29 : vector<128xf32> to vector<1x128xf32>
    %31 = arith.addf %28, %30 : vector<1x128xf32>
    %c0_21 = arith.constant 0 : index
    %c0_22 = arith.constant 0 : index
    %c0_23 = arith.constant 0 : index
    %32 = vector.load %arg4[%c0_21, %c0_22, %c0_23] : memref<1x1x128xf32, #tpu.memory_space<vmem>>, vector<1x1x128xf32>
    %33 = vector.shape_cast %32 : vector<1x1x128xf32> to vector<1x128xf32>
    %34 = vector.shape_cast %31 : vector<1x128xf32> to vector<1x1x128xf32>
    tpu.vector_store %arg4[%c0_21, %c0_22, %c0_23], %34 {strides = array<i32>} : memref<1x1x128xf32, #tpu.memory_space<vmem>>, vector<1x1x128xf32>,
    return
  }
  func.func @transform_0(%arg0: i32, %arg1: i32) -> (i32, i32, i32) {
    %c0_i32 = arith.constant 0 : i32
    %c0_i32_0 = arith.constant 0 : i32
    return %arg1, %arg0, %c0_i32 : i32, i32, i32
  }
  func.func @transform_1(%arg0: i32, %arg1: i32) -> (i32, i32, i32) {
    %c0_i32 = arith.constant 0 : i32
    %c0_i32_0 = arith.constant 0 : i32
    return %arg1, %arg0, %c0_i32 : i32, i32, i32
  }
  func.func @transform_2(%arg0: i32, %arg1: i32) -> (i32, i32, i32) {
    %c0_i32 = arith.constant 0 : i32
    %c0_i32_0 = arith.constant 0 : i32
    %c0_i32_1 = arith.constant 0 : i32
    return %arg0, %c0_i32, %c0_i32_0 : i32, i32, i32
  }
}

module attributes {stable_mosaic.version = 11 : i64} {
  func.func @kernel(%arg0: i32, %arg1: i32, %arg2: memref<1x32x640xi8, #tpu.memory_space<vmem>>, %arg3: memref<640x128xbf16, #tpu.memory_space<vmem>>, %arg4: memref<1x32x128xi8, #tpu.memory_space<vmem>>, %arg5: memref<1x1x128xf32, #tpu.memory_space<vmem>>, %arg6: memref<32x128xf32, #tpu.memory_space<vmem>>, %arg7: memref<32x128xf32, #tpu.memory_space<vmem>>) attributes {dimension_semantics = [#tpu.dimension_semantics<parallel>, #tpu.dimension_semantics<arbitrary>], iteration_bounds = array<i64: 1, 8>, scalar_prefetch = 0 : i64, scratch_operands = 2 : i64, tpu.core_type = #tpu.core_type<tc>, window_params = [{transform_indices = @transform_0, window_bounds = array<i64: 1, 32, 640>}, {pipeline_mode = #tpu.pipeline_mode<synchronous>, transform_indices = @transform_1, window_bounds = array<i64: 640, 128>}, {transform_indices = @transform_2, window_bounds = array<i64: 1, 32, 128>}, {transform_indices = @transform_3, window_bounds = array<i64: 1, 1, 128>}]} {
    %c0_i32 = arith.constant 0 : i32
    %0 = arith.cmpi eq, %arg1, %c0_i32 : i32
    %1 = arith.extui %0 : i1 to i32
    %c0_i32_0 = arith.constant 0 : i32
    %2 = arith.cmpi ne, %1, %c0_i32_0 : i32
    scf.if %2 {
      %cst_27 = arith.constant 0.000000e+00 : f32
      %38 = vector.broadcast %cst_27 : f32 to vector<32x128xf32>
      %c0_28 = arith.constant 0 : index
      %c0_29 = arith.constant 0 : index
      %39 = vector.load %arg6[%c0_28, %c0_29] : memref<32x128xf32, #tpu.memory_space<vmem>>, vector<32x128xf32>
      tpu.vector_store %arg6[%c0_28, %c0_29], %38 {strides = array<i32>} : memref<32x128xf32, #tpu.memory_space<vmem>>, vector<32x128xf32>,
      %cst_30 = arith.constant 0.000000e+00 : f32
      %40 = vector.broadcast %cst_30 : f32 to vector<32x128xf32>
      %c0_31 = arith.constant 0 : index
      %c0_32 = arith.constant 0 : index
      %41 = vector.load %arg7[%c0_31, %c0_32] : memref<32x128xf32, #tpu.memory_space<vmem>>, vector<32x128xf32>
      tpu.vector_store %arg7[%c0_31, %c0_32], %40 {strides = array<i32>} : memref<32x128xf32, #tpu.memory_space<vmem>>, vector<32x128xf32>,
      %cst_33 = arith.constant 0.000000e+00 : f32
      %42 = vector.broadcast %cst_33 : f32 to vector<1x1x128xf32>
      %c0_34 = arith.constant 0 : index
      %c0_35 = arith.constant 0 : index
      %c0_36 = arith.constant 0 : index
      %43 = vector.load %arg5[%c0_34, %c0_35, %c0_36] : memref<1x1x128xf32, #tpu.memory_space<vmem>>, vector<1x1x128xf32>
      tpu.vector_store %arg5[%c0_34, %c0_35, %c0_36], %42 {strides = array<i32>} : memref<1x1x128xf32, #tpu.memory_space<vmem>>, vector<1x1x128xf32>,
    } else {
    }
    %c0 = arith.constant 0 : index
    %c0_1 = arith.constant 0 : index
    %c0_2 = arith.constant 0 : index
    %3 = vector.load %arg2[%c0, %c0_1, %c0_2] : memref<1x32x640xi8, #tpu.memory_space<vmem>>, vector<1x32x640xi8>
    %4 = vector.shape_cast %3 : vector<1x32x640xi8> to vector<32x640xi8>
    %5 = arith.sitofp %4 : vector<32x640xi8> to vector<32x640xf32>
    %6 = arith.truncf %5 : vector<32x640xf32> to vector<32x640xbf16>
    %c0_3 = arith.constant 0 : index
    %c0_4 = arith.constant 0 : index
    %7 = vector.load %arg3[%c0_3, %c0_4] : memref<640x128xbf16, #tpu.memory_space<vmem>>, vector<640x128xbf16>
    %cst = arith.constant dense<0.000000e+00> : vector<32x128xf32>
    %8 = tpu.matmul %6, %7, %cst {dimension_numbers = #tpu.dot_dimension_numbers<[1], [0], [0], [1], [0, 0, 1, 1], [], []>} : vector<32x640xbf16>, vector<640x128xbf16>, vector<32x128xf32> -> vector<32x128xf32>
    %c0_5 = arith.constant 0 : index
    %c0_6 = arith.constant 0 : index
    %9 = vector.load %arg6[%c0_5, %c0_6] : memref<32x128xf32, #tpu.memory_space<vmem>>, vector<32x128xf32>
    %cst_7 = arith.constant 0.818730771 : f32
    %10 = vector.broadcast %cst_7 : f32 to vector<32x128xf32>
    %11 = arith.mulf %10, %9 : vector<32x128xf32>
    %12 = arith.addf %11, %8 : vector<32x128xf32>
    %c0_8 = arith.constant 0 : index
    %c0_9 = arith.constant 0 : index
    %13 = vector.load %arg7[%c0_8, %c0_9] : memref<32x128xf32, #tpu.memory_space<vmem>>, vector<32x128xf32>
    %cst_10 = arith.constant 0.951229453 : f32
    %14 = vector.broadcast %cst_10 : f32 to vector<32x128xf32>
    %15 = arith.mulf %14, %13 : vector<32x128xf32>
    %16 = arith.addf %15, %12 : vector<32x128xf32>
    %cst_11 = arith.constant 1.000000e+00 : f32
    %17 = vector.broadcast %cst_11 : f32 to vector<32x128xf32>
    %18 = arith.cmpf oge, %16, %17 : vector<32x128xf32>
    %19 = arith.extui %18 : vector<32x128xi1> to vector<32x128xi32>
    %20 = arith.sitofp %19 : vector<32x128xi32> to vector<32x128xf32>
    %cst_12 = arith.constant 1.000000e+00 : f32
    %21 = vector.broadcast %cst_12 : f32 to vector<32x128xf32>
    %22 = arith.mulf %21, %20 : vector<32x128xf32>
    %23 = arith.subf %16, %22 : vector<32x128xf32>
    %c0_13 = arith.constant 0 : index
    %c0_14 = arith.constant 0 : index
    %24 = vector.load %arg7[%c0_13, %c0_14] : memref<32x128xf32, #tpu.memory_space<vmem>>, vector<32x128xf32>
    tpu.vector_store %arg7[%c0_13, %c0_14], %23 {strides = array<i32>} : memref<32x128xf32, #tpu.memory_space<vmem>>, vector<32x128xf32>,
    %c0_15 = arith.constant 0 : index
    %c0_16 = arith.constant 0 : index
    %25 = vector.load %arg6[%c0_15, %c0_16] : memref<32x128xf32, #tpu.memory_space<vmem>>, vector<32x128xf32>
    tpu.vector_store %arg6[%c0_15, %c0_16], %12 {strides = array<i32>} : memref<32x128xf32, #tpu.memory_space<vmem>>, vector<32x128xf32>,
    %26 = arith.fptosi %20 : vector<32x128xf32> to vector<32x128xi8>
    %c0_17 = arith.constant 0 : index
    %c0_18 = arith.constant 0 : index
    %c0_19 = arith.constant 0 : index
    %27 = vector.load %arg4[%c0_17, %c0_18, %c0_19] : memref<1x32x128xi8, #tpu.memory_space<vmem>>, vector<1x32x128xi8>
    %28 = vector.shape_cast %27 : vector<1x32x128xi8> to vector<32x128xi8>
    %29 = vector.shape_cast %26 : vector<32x128xi8> to vector<1x32x128xi8>
    tpu.vector_store %arg4[%c0_17, %c0_18, %c0_19], %29 {strides = array<i32>} : memref<1x32x128xi8, #tpu.memory_space<vmem>>, vector<1x32x128xi8>,
    %c0_20 = arith.constant 0 : index
    %c0_21 = arith.constant 0 : index
    %c0_22 = arith.constant 0 : index
    %30 = vector.load %arg5[%c0_20, %c0_21, %c0_22] : memref<1x1x128xf32, #tpu.memory_space<vmem>>, vector<1x1x128xf32>
    %31 = vector.shape_cast %30 : vector<1x1x128xf32> to vector<1x128xf32>
    %cst_23 = arith.constant dense<0.000000e+00> : vector<128xf32>
    %32 = vector.multi_reduction <add>, %20, %cst_23 [0] : vector<32x128xf32> to vector<128xf32>
    %33 = vector.shape_cast %32 : vector<128xf32> to vector<1x128xf32>
    %34 = arith.addf %31, %33 : vector<1x128xf32>
    %c0_24 = arith.constant 0 : index
    %c0_25 = arith.constant 0 : index
    %c0_26 = arith.constant 0 : index
    %35 = vector.load %arg5[%c0_24, %c0_25, %c0_26] : memref<1x1x128xf32, #tpu.memory_space<vmem>>, vector<1x1x128xf32>
    %36 = vector.shape_cast %35 : vector<1x1x128xf32> to vector<1x128xf32>
    %37 = vector.shape_cast %34 : vector<1x128xf32> to vector<1x1x128xf32>
    tpu.vector_store %arg5[%c0_24, %c0_25, %c0_26], %37 {strides = array<i32>} : memref<1x1x128xf32, #tpu.memory_space<vmem>>, vector<1x1x128xf32>,
    return
  }
  func.func @transform_0(%arg0: i32, %arg1: i32) -> (i32, i32, i32) {
    %c0_i32 = arith.constant 0 : i32
    %c0_i32_0 = arith.constant 0 : i32
    return %arg1, %arg0, %c0_i32 : i32, i32, i32
  }
  func.func @transform_1(%arg0: i32, %arg1: i32) -> (i32, i32) {
    %c0_i32 = arith.constant 0 : i32
    %c0_i32_0 = arith.constant 0 : i32
    %c0_i32_1 = arith.constant 0 : i32
    return %c0_i32, %c0_i32_0 : i32, i32
  }
  func.func @transform_2(%arg0: i32, %arg1: i32) -> (i32, i32, i32) {
    %c0_i32 = arith.constant 0 : i32
    %c0_i32_0 = arith.constant 0 : i32
    return %arg1, %arg0, %c0_i32 : i32, i32, i32
  }
  func.func @transform_3(%arg0: i32, %arg1: i32) -> (i32, i32, i32) {
    %c0_i32 = arith.constant 0 : i32
    %c0_i32_0 = arith.constant 0 : i32
    %c0_i32_1 = arith.constant 0 : i32
    return %arg0, %c0_i32, %c0_i32_0 : i32, i32, i32
  }
}

module attributes {stable_mosaic.version = 11 : i64} {
  func.func @kernel(%arg0: i32, %arg1: i32, %arg2: memref<1x8x128xi8, #tpu.memory_space<vmem>>, %arg3: memref<1x8x128xi8, #tpu.memory_space<vmem>>, %arg4: memref<1x1x128xf32, #tpu.memory_space<vmem>>, %arg5: memref<8x128xf32, #tpu.memory_space<vmem>>, %arg6: memref<8x128xf32, #tpu.memory_space<vmem>>) attributes {dimension_semantics = [#tpu.dimension_semantics<parallel>, #tpu.dimension_semantics<arbitrary>], iteration_bounds = array<i64: 1, 8>, scalar_prefetch = 0 : i64, scratch_operands = 2 : i64, tpu.core_type = #tpu.core_type<tc>, window_params = [{transform_indices = @transform_0, window_bounds = array<i64: 1, 8, 128>}, {transform_indices = @transform_1, window_bounds = array<i64: 1, 8, 128>}, {transform_indices = @transform_2, window_bounds = array<i64: 1, 1, 128>}]} {
    %c0_i32 = arith.constant 0 : i32
    %0 = arith.cmpi eq, %arg1, %c0_i32 : i32
    %1 = arith.extui %0 : i1 to i32
    %c0_i32_0 = arith.constant 0 : i32
    %2 = arith.cmpi ne, %1, %c0_i32_0 : i32
    scf.if %2 {
      %cst_24 = arith.constant 0.000000e+00 : f32
      %35 = vector.broadcast %cst_24 : f32 to vector<8x128xf32>
      %c0_25 = arith.constant 0 : index
      %c0_26 = arith.constant 0 : index
      %36 = vector.load %arg5[%c0_25, %c0_26] : memref<8x128xf32, #tpu.memory_space<vmem>>, vector<8x128xf32>
      tpu.vector_store %arg5[%c0_25, %c0_26], %35 {strides = array<i32>} : memref<8x128xf32, #tpu.memory_space<vmem>>, vector<8x128xf32>,
      %cst_27 = arith.constant 0.000000e+00 : f32
      %37 = vector.broadcast %cst_27 : f32 to vector<8x128xf32>
      %c0_28 = arith.constant 0 : index
      %c0_29 = arith.constant 0 : index
      %38 = vector.load %arg6[%c0_28, %c0_29] : memref<8x128xf32, #tpu.memory_space<vmem>>, vector<8x128xf32>
      tpu.vector_store %arg6[%c0_28, %c0_29], %37 {strides = array<i32>} : memref<8x128xf32, #tpu.memory_space<vmem>>, vector<8x128xf32>,
      %cst_30 = arith.constant 0.000000e+00 : f32
      %39 = vector.broadcast %cst_30 : f32 to vector<1x1x128xf32>
      %c0_31 = arith.constant 0 : index
      %c0_32 = arith.constant 0 : index
      %c0_33 = arith.constant 0 : index
      %40 = vector.load %arg4[%c0_31, %c0_32, %c0_33] : memref<1x1x128xf32, #tpu.memory_space<vmem>>, vector<1x1x128xf32>
      tpu.vector_store %arg4[%c0_31, %c0_32, %c0_33], %39 {strides = array<i32>} : memref<1x1x128xf32, #tpu.memory_space<vmem>>, vector<1x1x128xf32>,
    } else {
    }
    %c0 = arith.constant 0 : index
    %c0_1 = arith.constant 0 : index
    %c0_2 = arith.constant 0 : index
    %3 = vector.load %arg2[%c0, %c0_1, %c0_2] : memref<1x8x128xi8, #tpu.memory_space<vmem>>, vector<1x8x128xi8>
    %4 = vector.shape_cast %3 : vector<1x8x128xi8> to vector<8x128xi8>
    %5 = arith.sitofp %4 : vector<8x128xi8> to vector<8x128xf32>
    %c0_3 = arith.constant 0 : index
    %c0_4 = arith.constant 0 : index
    %6 = vector.load %arg5[%c0_3, %c0_4] : memref<8x128xf32, #tpu.memory_space<vmem>>, vector<8x128xf32>
    %cst = arith.constant 0.818730771 : f32
    %7 = vector.broadcast %cst : f32 to vector<8x128xf32>
    %8 = arith.mulf %7, %6 : vector<8x128xf32>
    %9 = arith.addf %8, %5 : vector<8x128xf32>
    %c0_5 = arith.constant 0 : index
    %c0_6 = arith.constant 0 : index
    %10 = vector.load %arg6[%c0_5, %c0_6] : memref<8x128xf32, #tpu.memory_space<vmem>>, vector<8x128xf32>
    %cst_7 = arith.constant 0.951229453 : f32
    %11 = vector.broadcast %cst_7 : f32 to vector<8x128xf32>
    %12 = arith.mulf %11, %10 : vector<8x128xf32>
    %13 = arith.addf %12, %9 : vector<8x128xf32>
    %cst_8 = arith.constant 1.000000e+00 : f32
    %14 = vector.broadcast %cst_8 : f32 to vector<8x128xf32>
    %15 = arith.cmpf oge, %13, %14 : vector<8x128xf32>
    %16 = arith.extui %15 : vector<8x128xi1> to vector<8x128xi32>
    %17 = arith.sitofp %16 : vector<8x128xi32> to vector<8x128xf32>
    %cst_9 = arith.constant 1.000000e+00 : f32
    %18 = vector.broadcast %cst_9 : f32 to vector<8x128xf32>
    %19 = arith.mulf %18, %17 : vector<8x128xf32>
    %20 = arith.subf %13, %19 : vector<8x128xf32>
    %c0_10 = arith.constant 0 : index
    %c0_11 = arith.constant 0 : index
    %21 = vector.load %arg6[%c0_10, %c0_11] : memref<8x128xf32, #tpu.memory_space<vmem>>, vector<8x128xf32>
    tpu.vector_store %arg6[%c0_10, %c0_11], %20 {strides = array<i32>} : memref<8x128xf32, #tpu.memory_space<vmem>>, vector<8x128xf32>,
    %c0_12 = arith.constant 0 : index
    %c0_13 = arith.constant 0 : index
    %22 = vector.load %arg5[%c0_12, %c0_13] : memref<8x128xf32, #tpu.memory_space<vmem>>, vector<8x128xf32>
    tpu.vector_store %arg5[%c0_12, %c0_13], %9 {strides = array<i32>} : memref<8x128xf32, #tpu.memory_space<vmem>>, vector<8x128xf32>,
    %23 = arith.fptosi %17 : vector<8x128xf32> to vector<8x128xi8>
    %c0_14 = arith.constant 0 : index
    %c0_15 = arith.constant 0 : index
    %c0_16 = arith.constant 0 : index
    %24 = vector.load %arg3[%c0_14, %c0_15, %c0_16] : memref<1x8x128xi8, #tpu.memory_space<vmem>>, vector<1x8x128xi8>
    %25 = vector.shape_cast %24 : vector<1x8x128xi8> to vector<8x128xi8>
    %26 = vector.shape_cast %23 : vector<8x128xi8> to vector<1x8x128xi8>
    tpu.vector_store %arg3[%c0_14, %c0_15, %c0_16], %26 {strides = array<i32>} : memref<1x8x128xi8, #tpu.memory_space<vmem>>, vector<1x8x128xi8>,
    %c0_17 = arith.constant 0 : index
    %c0_18 = arith.constant 0 : index
    %c0_19 = arith.constant 0 : index
    %27 = vector.load %arg4[%c0_17, %c0_18, %c0_19] : memref<1x1x128xf32, #tpu.memory_space<vmem>>, vector<1x1x128xf32>
    %28 = vector.shape_cast %27 : vector<1x1x128xf32> to vector<1x128xf32>
    %cst_20 = arith.constant dense<0.000000e+00> : vector<128xf32>
    %29 = vector.multi_reduction <add>, %17, %cst_20 [0] : vector<8x128xf32> to vector<128xf32>
    %30 = vector.shape_cast %29 : vector<128xf32> to vector<1x128xf32>
    %31 = arith.addf %28, %30 : vector<1x128xf32>
    %c0_21 = arith.constant 0 : index
    %c0_22 = arith.constant 0 : index
    %c0_23 = arith.constant 0 : index
    %32 = vector.load %arg4[%c0_21, %c0_22, %c0_23] : memref<1x1x128xf32, #tpu.memory_space<vmem>>, vector<1x1x128xf32>
    %33 = vector.shape_cast %32 : vector<1x1x128xf32> to vector<1x128xf32>
    %34 = vector.shape_cast %31 : vector<1x128xf32> to vector<1x1x128xf32>
    tpu.vector_store %arg4[%c0_21, %c0_22, %c0_23], %34 {strides = array<i32>} : memref<1x1x128xf32, #tpu.memory_space<vmem>>, vector<1x1x128xf32>,
    return
  }
  func.func @transform_0(%arg0: i32, %arg1: i32) -> (i32, i32, i32) {
    %c0_i32 = arith.constant 0 : i32
    %c0_i32_0 = arith.constant 0 : i32
    return %arg1, %arg0, %c0_i32 : i32, i32, i32
  }
  func.func @transform_1(%arg0: i32, %arg1: i32) -> (i32, i32, i32) {
    %c0_i32 = arith.constant 0 : i32
    %c0_i32_0 = arith.constant 0 : i32
    return %arg1, %arg0, %c0_i32 : i32, i32, i32
  }
  func.func @transform_2(%arg0: i32, %arg1: i32) -> (i32, i32, i32) {
    %c0_i32 = arith.constant 0 : i32
    %c0_i32_0 = arith.constant 0 : i32
    %c0_i32_1 = arith.constant 0 : i32
    return %arg0, %c0_i32, %c0_i32_0 : i32, i32, i32
  }
}

module attributes {stable_mosaic.version = 11 : i64} {
  func.func @_matmul_kernel(%arg0: i32, %arg1: i32, %arg2: memref<16x512xi8, #tpu.memory_space<vmem>>, %arg3: memref<512x256xbf16, #tpu.memory_space<vmem>>, %arg4: memref<16x256xf32, #tpu.memory_space<vmem>>, %arg5: memref<16x256xf32, #tpu.memory_space<vmem>>) attributes {dimension_semantics = [#tpu.dimension_semantics<parallel>, #tpu.dimension_semantics<arbitrary>], iteration_bounds = array<i64: 1, 1>, scalar_prefetch = 0 : i64, scratch_operands = 1 : i64, tpu.core_type = #tpu.core_type<tc>, window_params = [{transform_indices = @transform_0, window_bounds = array<i64: 16, 512>}, {transform_indices = @transform_1, window_bounds = array<i64: 512, 256>}, {transform_indices = @transform_2, window_bounds = array<i64: 16, 256>}]} {
    %c0_i32 = arith.constant 0 : i32
    %0 = arith.cmpi eq, %arg1, %c0_i32 : i32
    %1 = arith.extui %0 : i1 to i32
    %c0_i32_0 = arith.constant 0 : i32
    %2 = arith.cmpi ne, %1, %c0_i32_0 : i32
    scf.if %2 {
      %cst_10 = arith.constant 0.000000e+00 : f32
      %14 = vector.broadcast %cst_10 : f32 to vector<16x256xf32>
      %c0_11 = arith.constant 0 : index
      %c0_12 = arith.constant 0 : index
      %15 = vector.load %arg5[%c0_11, %c0_12] : memref<16x256xf32, #tpu.memory_space<vmem>>, vector<16x256xf32>
      tpu.vector_store %arg5[%c0_11, %c0_12], %14 {strides = array<i32>} : memref<16x256xf32, #tpu.memory_space<vmem>>, vector<16x256xf32>,
    } else {
    }
    %c0 = arith.constant 0 : index
    %c0_1 = arith.constant 0 : index
    %3 = vector.load %arg2[%c0, %c0_1] : memref<16x512xi8, #tpu.memory_space<vmem>>, vector<16x512xi8>
    %4 = arith.sitofp %3 : vector<16x512xi8> to vector<16x512xf32>
    %5 = arith.truncf %4 : vector<16x512xf32> to vector<16x512xbf16>
    %c0_2 = arith.constant 0 : index
    %c0_3 = arith.constant 0 : index
    %6 = vector.load %arg5[%c0_2, %c0_3] : memref<16x256xf32, #tpu.memory_space<vmem>>, vector<16x256xf32>
    %c0_4 = arith.constant 0 : index
    %c0_5 = arith.constant 0 : index
    %7 = vector.load %arg3[%c0_4, %c0_5] : memref<512x256xbf16, #tpu.memory_space<vmem>>, vector<512x256xbf16>
    %cst = arith.constant dense<0.000000e+00> : vector<16x256xf32>
    %8 = tpu.matmul %5, %7, %cst {dimension_numbers = #tpu.dot_dimension_numbers<[1], [0], [0], [1], [0, 0, 1, 1], [], []>} : vector<16x512xbf16>, vector<512x256xbf16>, vector<16x256xf32> -> vector<16x256xf32>
    %9 = arith.addf %6, %8 : vector<16x256xf32>
    %c0_6 = arith.constant 0 : index
    %c0_7 = arith.constant 0 : index
    %10 = vector.load %arg5[%c0_6, %c0_7] : memref<16x256xf32, #tpu.memory_space<vmem>>, vector<16x256xf32>
    tpu.vector_store %arg5[%c0_6, %c0_7], %9 {strides = array<i32>} : memref<16x256xf32, #tpu.memory_space<vmem>>, vector<16x256xf32>,
    %c0_i32_8 = arith.constant 0 : i32
    %11 = arith.cmpi eq, %arg1, %c0_i32_8 : i32
    %12 = arith.extui %11 : i1 to i32
    %c0_i32_9 = arith.constant 0 : i32
    %13 = arith.cmpi ne, %12, %c0_i32_9 : i32
    scf.if %13 {
      %c0_10 = arith.constant 0 : index
      %c0_11 = arith.constant 0 : index
      %14 = vector.load %arg5[%c0_10, %c0_11] : memref<16x256xf32, #tpu.memory_space<vmem>>, vector<16x256xf32>
      %c0_12 = arith.constant 0 : index
      %c0_13 = arith.constant 0 : index
      %15 = vector.load %arg4[%c0_12, %c0_13] : memref<16x256xf32, #tpu.memory_space<vmem>>, vector<16x256xf32>
      tpu.vector_store %arg4[%c0_12, %c0_13], %14 {strides = array<i32>} : memref<16x256xf32, #tpu.memory_space<vmem>>, vector<16x256xf32>,
    } else {
    }
    return
  }
  func.func @transform_0(%arg0: i32, %arg1: i32) -> (i32, i32) {
    %c0_i32 = arith.constant 0 : i32
    return %arg0, %arg1 : i32, i32
  }
  func.func @transform_1(%arg0: i32, %arg1: i32) -> (i32, i32) {
    %c0_i32 = arith.constant 0 : i32
    %c0_i32_0 = arith.constant 0 : i32
    return %arg1, %c0_i32 : i32, i32
  }
  func.func @transform_2(%arg0: i32, %arg1: i32) -> (i32, i32) {
    %c0_i32 = arith.constant 0 : i32
    %c0_i32_0 = arith.constant 0 : i32
    return %arg0, %c0_i32 : i32, i32
  }
}

module attributes {stable_mosaic.version = 11 : i64} {
  func.func @kernel(%arg0: i32, %arg1: memref<8x8x256xf32, #tpu.memory_space<vmem>>, %arg2: memref<256x256xbf16, #tpu.memory_space<vmem>>, %arg3: memref<8x8x256xbf16, #tpu.memory_space<vmem>>, %arg4: memref<1x1x256xf32, #tpu.memory_space<vmem>>, %arg5: memref<8x256xbf16, #tpu.memory_space<vmem>>, %arg6: memref<8x256xf32, #tpu.memory_space<vmem>>, %arg7: memref<8x256xf32, #tpu.memory_space<vmem>>) attributes {dimension_semantics = [#tpu.dimension_semantics<parallel>], iteration_bounds = array<i64: 1>, scalar_prefetch = 0 : i64, scratch_operands = 3 : i64, tpu.core_type = #tpu.core_type<tc>, window_params = [{transform_indices = @transform_0, window_bounds = array<i64: 8, 8, 256>}, {pipeline_mode = #tpu.pipeline_mode<synchronous>, transform_indices = @transform_1, window_bounds = array<i64: 256, 256>}, {transform_indices = @transform_2, window_bounds = array<i64: 8, 8, 256>}, {transform_indices = @transform_3, window_bounds = array<i64: 1, 1, 256>}]} {
    %cst = arith.constant 0.000000e+00 : bf16
    %0 = vector.broadcast %cst : bf16 to vector<8x256xbf16>
    %c0 = arith.constant 0 : index
    %c0_0 = arith.constant 0 : index
    %1 = vector.load %arg5[%c0, %c0_0] : memref<8x256xbf16, #tpu.memory_space<vmem>>, vector<8x256xbf16>
    tpu.vector_store %arg5[%c0, %c0_0], %0 {strides = array<i32>} : memref<8x256xbf16, #tpu.memory_space<vmem>>, vector<8x256xbf16>,
    %cst_1 = arith.constant 0.000000e+00 : f32
    %2 = vector.broadcast %cst_1 : f32 to vector<8x256xf32>
    %c0_2 = arith.constant 0 : index
    %c0_3 = arith.constant 0 : index
    %3 = vector.load %arg6[%c0_2, %c0_3] : memref<8x256xf32, #tpu.memory_space<vmem>>, vector<8x256xf32>
    tpu.vector_store %arg6[%c0_2, %c0_3], %2 {strides = array<i32>} : memref<8x256xf32, #tpu.memory_space<vmem>>, vector<8x256xf32>,
    %cst_4 = arith.constant 0.000000e+00 : f32
    %4 = vector.broadcast %cst_4 : f32 to vector<8x256xf32>
    %c0_5 = arith.constant 0 : index
    %c0_6 = arith.constant 0 : index
    %5 = vector.load %arg7[%c0_5, %c0_6] : memref<8x256xf32, #tpu.memory_space<vmem>>, vector<8x256xf32>
    tpu.vector_store %arg7[%c0_5, %c0_6], %4 {strides = array<i32>} : memref<8x256xf32, #tpu.memory_space<vmem>>, vector<8x256xf32>,
    %cst_7 = arith.constant 0.000000e+00 : f32
    %6 = vector.broadcast %cst_7 : f32 to vector<1x1x256xf32>
    %c0_8 = arith.constant 0 : index
    %c0_9 = arith.constant 0 : index
    %c0_10 = arith.constant 0 : index
    %7 = vector.load %arg4[%c0_8, %c0_9, %c0_10] : memref<1x1x256xf32, #tpu.memory_space<vmem>>, vector<1x1x256xf32>
    tpu.vector_store %arg4[%c0_8, %c0_9, %c0_10], %6 {strides = array<i32>} : memref<1x1x256xf32, #tpu.memory_space<vmem>>, vector<1x1x256xf32>,
    %c0_i32 = arith.constant 0 : i32
    %c8_i32 = arith.constant 8 : i32
    %8 = arith.addi %c0_i32, %c8_i32 : i32
    %c1_i32 = arith.constant 1 : i32
    scf.for %arg8 = %c0_i32 to %8 step %c1_i32  : i32 {
      %9 = arith.index_cast %arg8 : i32 to index
      %c0_12 = arith.constant 0 : index
      %c0_13 = arith.constant 0 : index
      %10 = vector.load %arg1[%9, %c0_12, %c0_13] : memref<8x8x256xf32, #tpu.memory_space<vmem>>, vector<1x8x256xf32>
      %11 = vector.shape_cast %10 : vector<1x8x256xf32> to vector<8x256xf32>
      %c0_14 = arith.constant 0 : index
      %c0_15 = arith.constant 0 : index
      %12 = vector.load %arg5[%c0_14, %c0_15] : memref<8x256xbf16, #tpu.memory_space<vmem>>, vector<8x256xbf16>
      %c0_16 = arith.constant 0 : index
      %c0_17 = arith.constant 0 : index
      %13 = vector.load %arg2[%c0_16, %c0_17] : memref<256x256xbf16, #tpu.memory_space<vmem>>, vector<256x256xbf16>
      %cst_18 = arith.constant dense<0.000000e+00> : vector<8x256xf32>
      %14 = tpu.matmul %12, %13, %cst_18 {dimension_numbers = #tpu.dot_dimension_numbers<[1], [0], [0], [1], [0, 0, 1, 1], [], []>} : vector<8x256xbf16>, vector<256x256xbf16>, vector<8x256xf32> -> vector<8x256xf32>
      %15 = arith.addf %11, %14 : vector<8x256xf32>
      %c0_19 = arith.constant 0 : index
      %c0_20 = arith.constant 0 : index
      %16 = vector.load %arg6[%c0_19, %c0_20] : memref<8x256xf32, #tpu.memory_space<vmem>>, vector<8x256xf32>
      %cst_21 = arith.constant 0.818730771 : f32
      %17 = vector.broadcast %cst_21 : f32 to vector<8x256xf32>
      %18 = arith.mulf %17, %16 : vector<8x256xf32>
      %19 = arith.addf %18, %15 : vector<8x256xf32>
      %c0_22 = arith.constant 0 : index
      %c0_23 = arith.constant 0 : index
      %20 = vector.load %arg7[%c0_22, %c0_23] : memref<8x256xf32, #tpu.memory_space<vmem>>, vector<8x256xf32>
      %cst_24 = arith.constant 0.951229453 : f32
      %21 = vector.broadcast %cst_24 : f32 to vector<8x256xf32>
      %22 = arith.mulf %21, %20 : vector<8x256xf32>
      %23 = arith.addf %22, %19 : vector<8x256xf32>
      %cst_25 = arith.constant 1.000000e+00 : f32
      %24 = vector.broadcast %cst_25 : f32 to vector<8x256xf32>
      %25 = arith.cmpf oge, %23, %24 : vector<8x256xf32>
      %26 = arith.extui %25 : vector<8x256xi1> to vector<8x256xi32>
      %27 = arith.sitofp %26 : vector<8x256xi32> to vector<8x256xf32>
      %cst_26 = arith.constant 1.000000e+00 : f32
      %28 = vector.broadcast %cst_26 : f32 to vector<8x256xf32>
      %29 = arith.mulf %28, %27 : vector<8x256xf32>
      %30 = arith.subf %23, %29 : vector<8x256xf32>
      %c0_27 = arith.constant 0 : index
      %c0_28 = arith.constant 0 : index
      %31 = vector.load %arg7[%c0_27, %c0_28] : memref<8x256xf32, #tpu.memory_space<vmem>>, vector<8x256xf32>
      tpu.vector_store %arg7[%c0_27, %c0_28], %30 {strides = array<i32>} : memref<8x256xf32, #tpu.memory_space<vmem>>, vector<8x256xf32>,
      %c0_29 = arith.constant 0 : index
      %c0_30 = arith.constant 0 : index
      %32 = vector.load %arg6[%c0_29, %c0_30] : memref<8x256xf32, #tpu.memory_space<vmem>>, vector<8x256xf32>
      tpu.vector_store %arg6[%c0_29, %c0_30], %19 {strides = array<i32>} : memref<8x256xf32, #tpu.memory_space<vmem>>, vector<8x256xf32>,
      %33 = arith.truncf %27 : vector<8x256xf32> to vector<8x256xbf16>
      %c0_31 = arith.constant 0 : index
      %c0_32 = arith.constant 0 : index
      %34 = vector.load %arg5[%c0_31, %c0_32] : memref<8x256xbf16, #tpu.memory_space<vmem>>, vector<8x256xbf16>
      tpu.vector_store %arg5[%c0_31, %c0_32], %33 {strides = array<i32>} : memref<8x256xbf16, #tpu.memory_space<vmem>>, vector<8x256xbf16>,
      %35 = arith.truncf %27 : vector<8x256xf32> to vector<8x256xbf16>
      %36 = arith.index_cast %arg8 : i32 to index
      %c0_33 = arith.constant 0 : index
      %c0_34 = arith.constant 0 : index
      %37 = vector.load %arg3[%36, %c0_33, %c0_34] : memref<8x8x256xbf16, #tpu.memory_space<vmem>>, vector<1x8x256xbf16>
      %38 = vector.shape_cast %37 : vector<1x8x256xbf16> to vector<8x256xbf16>
      %39 = vector.shape_cast %35 : vector<8x256xbf16> to vector<1x8x256xbf16>
      tpu.vector_store %arg3[%36, %c0_33, %c0_34], %39 {strides = array<i32>} : memref<8x8x256xbf16, #tpu.memory_space<vmem>>, vector<1x8x256xbf16>,
      %c0_35 = arith.constant 0 : index
      %c0_36 = arith.constant 0 : index
      %c0_37 = arith.constant 0 : index
      %40 = vector.load %arg4[%c0_35, %c0_36, %c0_37] : memref<1x1x256xf32, #tpu.memory_space<vmem>>, vector<1x1x256xf32>
      %41 = vector.shape_cast %40 : vector<1x1x256xf32> to vector<1x256xf32>
      %cst_38 = arith.constant dense<0.000000e+00> : vector<256xf32>
      %42 = vector.multi_reduction <add>, %27, %cst_38 [0] : vector<8x256xf32> to vector<256xf32>
      %43 = vector.shape_cast %42 : vector<256xf32> to vector<1x256xf32>
      %44 = arith.addf %41, %43 : vector<1x256xf32>
      %c0_39 = arith.constant 0 : index
      %c0_40 = arith.constant 0 : index
      %c0_41 = arith.constant 0 : index
      %45 = vector.load %arg4[%c0_39, %c0_40, %c0_41] : memref<1x1x256xf32, #tpu.memory_space<vmem>>, vector<1x1x256xf32>
      %46 = vector.shape_cast %45 : vector<1x1x256xf32> to vector<1x256xf32>
      %47 = vector.shape_cast %44 : vector<1x256xf32> to vector<1x1x256xf32>
      tpu.vector_store %arg4[%c0_39, %c0_40, %c0_41], %47 {strides = array<i32>} : memref<1x1x256xf32, #tpu.memory_space<vmem>>, vector<1x1x256xf32>,
    }
    %c8_i32_11 = arith.constant 8 : i32
    return
  }
  func.func @transform_0(%arg0: i32) -> (i32, i32, i32) {
    %c0_i32 = arith.constant 0 : i32
    %c0_i32_0 = arith.constant 0 : i32
    %c0_i32_1 = arith.constant 0 : i32
    return %c0_i32, %arg0, %c0_i32_0 : i32, i32, i32
  }
  func.func @transform_1(%arg0: i32) -> (i32, i32) {
    %c0_i32 = arith.constant 0 : i32
    %c0_i32_0 = arith.constant 0 : i32
    %c0_i32_1 = arith.constant 0 : i32
    return %c0_i32, %c0_i32_0 : i32, i32
  }
  func.func @transform_2(%arg0: i32) -> (i32, i32, i32) {
    %c0_i32 = arith.constant 0 : i32
    %c0_i32_0 = arith.constant 0 : i32
    %c0_i32_1 = arith.constant 0 : i32
    return %c0_i32, %arg0, %c0_i32_0 : i32, i32, i32
  }
  func.func @transform_3(%arg0: i32) -> (i32, i32, i32) {
    %c0_i32 = arith.constant 0 : i32
    %c0_i32_0 = arith.constant 0 : i32
    %c0_i32_1 = arith.constant 0 : i32
    return %arg0, %c0_i32, %c0_i32_0 : i32, i32, i32
  }
}

module attributes {stable_mosaic.version = 11 : i64} {
  func.func @_matmul_kernel(%arg0: i32, %arg1: i32, %arg2: memref<16x256xbf16, #tpu.memory_space<vmem>>, %arg3: memref<256x128xbf16, #tpu.memory_space<vmem>>, %arg4: memref<16x128xf32, #tpu.memory_space<vmem>>, %arg5: memref<16x128xf32, #tpu.memory_space<vmem>>) attributes {dimension_semantics = [#tpu.dimension_semantics<parallel>, #tpu.dimension_semantics<arbitrary>], iteration_bounds = array<i64: 1, 1>, scalar_prefetch = 0 : i64, scratch_operands = 1 : i64, tpu.core_type = #tpu.core_type<tc>, window_params = [{transform_indices = @transform_0, window_bounds = array<i64: 16, 256>}, {transform_indices = @transform_1, window_bounds = array<i64: 256, 128>}, {transform_indices = @transform_2, window_bounds = array<i64: 16, 128>}]} {
    %c0_i32 = arith.constant 0 : i32
    %0 = arith.cmpi eq, %arg1, %c0_i32 : i32
    %1 = arith.extui %0 : i1 to i32
    %c0_i32_0 = arith.constant 0 : i32
    %2 = arith.cmpi ne, %1, %c0_i32_0 : i32
    scf.if %2 {
      %cst_10 = arith.constant 0.000000e+00 : f32
      %12 = vector.broadcast %cst_10 : f32 to vector<16x128xf32>
      %c0_11 = arith.constant 0 : index
      %c0_12 = arith.constant 0 : index
      %13 = vector.load %arg5[%c0_11, %c0_12] : memref<16x128xf32, #tpu.memory_space<vmem>>, vector<16x128xf32>
      tpu.vector_store %arg5[%c0_11, %c0_12], %12 {strides = array<i32>} : memref<16x128xf32, #tpu.memory_space<vmem>>, vector<16x128xf32>,
    } else {
    }
    %c0 = arith.constant 0 : index
    %c0_1 = arith.constant 0 : index
    %3 = vector.load %arg2[%c0, %c0_1] : memref<16x256xbf16, #tpu.memory_space<vmem>>, vector<16x256xbf16>
    %c0_2 = arith.constant 0 : index
    %c0_3 = arith.constant 0 : index
    %4 = vector.load %arg5[%c0_2, %c0_3] : memref<16x128xf32, #tpu.memory_space<vmem>>, vector<16x128xf32>
    %c0_4 = arith.constant 0 : index
    %c0_5 = arith.constant 0 : index
    %5 = vector.load %arg3[%c0_4, %c0_5] : memref<256x128xbf16, #tpu.memory_space<vmem>>, vector<256x128xbf16>
    %cst = arith.constant dense<0.000000e+00> : vector<16x128xf32>
    %6 = tpu.matmul %3, %5, %cst {dimension_numbers = #tpu.dot_dimension_numbers<[1], [0], [0], [1], [0, 0, 1, 1], [], []>} : vector<16x256xbf16>, vector<256x128xbf16>, vector<16x128xf32> -> vector<16x128xf32>
    %7 = arith.addf %4, %6 : vector<16x128xf32>
    %c0_6 = arith.constant 0 : index
    %c0_7 = arith.constant 0 : index
    %8 = vector.load %arg5[%c0_6, %c0_7] : memref<16x128xf32, #tpu.memory_space<vmem>>, vector<16x128xf32>
    tpu.vector_store %arg5[%c0_6, %c0_7], %7 {strides = array<i32>} : memref<16x128xf32, #tpu.memory_space<vmem>>, vector<16x128xf32>,
    %c0_i32_8 = arith.constant 0 : i32
    %9 = arith.cmpi eq, %arg1, %c0_i32_8 : i32
    %10 = arith.extui %9 : i1 to i32
    %c0_i32_9 = arith.constant 0 : i32
    %11 = arith.cmpi ne, %10, %c0_i32_9 : i32
    scf.if %11 {
      %c0_10 = arith.constant 0 : index
      %c0_11 = arith.constant 0 : index
      %12 = vector.load %arg5[%c0_10, %c0_11] : memref<16x128xf32, #tpu.memory_space<vmem>>, vector<16x128xf32>
      %c0_12 = arith.constant 0 : index
      %c0_13 = arith.constant 0 : index
      %13 = vector.load %arg4[%c0_12, %c0_13] : memref<16x128xf32, #tpu.memory_space<vmem>>, vector<16x128xf32>
      tpu.vector_store %arg4[%c0_12, %c0_13], %12 {strides = array<i32>} : memref<16x128xf32, #tpu.memory_space<vmem>>, vector<16x128xf32>,
    } else {
    }
    return
  }
  func.func @transform_0(%arg0: i32, %arg1: i32) -> (i32, i32) {
    %c0_i32 = arith.constant 0 : i32
    return %arg0, %arg1 : i32, i32
  }
  func.func @transform_1(%arg0: i32, %arg1: i32) -> (i32, i32) {
    %c0_i32 = arith.constant 0 : i32
    %c0_i32_0 = arith.constant 0 : i32
    return %arg1, %c0_i32 : i32, i32
  }
  func.func @transform_2(%arg0: i32, %arg1: i32) -> (i32, i32) {
    %c0_i32 = arith.constant 0 : i32
    %c0_i32_0 = arith.constant 0 : i32
    return %arg0, %c0_i32 : i32, i32
  }
}

module attributes {stable_mosaic.version = 11 : i64} {
  func.func @kernel(%arg0: i32, %arg1: memref<8x8x128xf32, #tpu.memory_space<vmem>>, %arg2: memref<8x8x128xf32, #tpu.memory_space<vmem>>, %arg3: memref<1x1x128xf32, #tpu.memory_space<vmem>>, %arg4: memref<8x128xf32, #tpu.memory_space<vmem>>, %arg5: memref<8x128xf32, #tpu.memory_space<vmem>>) attributes {dimension_semantics = [#tpu.dimension_semantics<parallel>], iteration_bounds = array<i64: 1>, scalar_prefetch = 0 : i64, scratch_operands = 2 : i64, tpu.core_type = #tpu.core_type<tc>, window_params = [{transform_indices = @transform_0, window_bounds = array<i64: 8, 8, 128>}, {transform_indices = @transform_1, window_bounds = array<i64: 8, 8, 128>}, {transform_indices = @transform_2, window_bounds = array<i64: 1, 1, 128>}]} {
    %cst = arith.constant 0.000000e+00 : f32
    %0 = vector.broadcast %cst : f32 to vector<8x128xf32>
    %c0 = arith.constant 0 : index
    %c0_0 = arith.constant 0 : index
    %1 = vector.load %arg4[%c0, %c0_0] : memref<8x128xf32, #tpu.memory_space<vmem>>, vector<8x128xf32>
    tpu.vector_store %arg4[%c0, %c0_0], %0 {strides = array<i32>} : memref<8x128xf32, #tpu.memory_space<vmem>>, vector<8x128xf32>,
    %cst_1 = arith.constant 0.000000e+00 : f32
    %2 = vector.broadcast %cst_1 : f32 to vector<8x128xf32>
    %c0_2 = arith.constant 0 : index
    %c0_3 = arith.constant 0 : index
    %3 = vector.load %arg5[%c0_2, %c0_3] : memref<8x128xf32, #tpu.memory_space<vmem>>, vector<8x128xf32>
    tpu.vector_store %arg5[%c0_2, %c0_3], %2 {strides = array<i32>} : memref<8x128xf32, #tpu.memory_space<vmem>>, vector<8x128xf32>,
    %cst_4 = arith.constant 0.000000e+00 : f32
    %4 = vector.broadcast %cst_4 : f32 to vector<1x1x128xf32>
    %c0_5 = arith.constant 0 : index
    %c0_6 = arith.constant 0 : index
    %c0_7 = arith.constant 0 : index
    %5 = vector.load %arg3[%c0_5, %c0_6, %c0_7] : memref<1x1x128xf32, #tpu.memory_space<vmem>>, vector<1x1x128xf32>
    tpu.vector_store %arg3[%c0_5, %c0_6, %c0_7], %4 {strides = array<i32>} : memref<1x1x128xf32, #tpu.memory_space<vmem>>, vector<1x1x128xf32>,
    %c0_i32 = arith.constant 0 : i32
    %c8_i32 = arith.constant 8 : i32
    %6 = arith.addi %c0_i32, %c8_i32 : i32
    %c1_i32 = arith.constant 1 : i32
    scf.for %arg6 = %c0_i32 to %6 step %c1_i32  : i32 {
      %c0_9 = arith.constant 0 : index
      %c0_10 = arith.constant 0 : index
      %7 = vector.load %arg4[%c0_9, %c0_10] : memref<8x128xf32, #tpu.memory_space<vmem>>, vector<8x128xf32>
      %cst_11 = arith.constant 0.818730771 : f32
      %8 = vector.broadcast %cst_11 : f32 to vector<8x128xf32>
      %9 = arith.mulf %8, %7 : vector<8x128xf32>
      %10 = arith.index_cast %arg6 : i32 to index
      %c0_12 = arith.constant 0 : index
      %c0_13 = arith.constant 0 : index
      %11 = vector.load %arg1[%10, %c0_12, %c0_13] : memref<8x8x128xf32, #tpu.memory_space<vmem>>, vector<1x8x128xf32>
      %12 = vector.shape_cast %11 : vector<1x8x128xf32> to vector<8x128xf32>
      %13 = arith.addf %9, %12 : vector<8x128xf32>
      %c0_14 = arith.constant 0 : index
      %c0_15 = arith.constant 0 : index
      %14 = vector.load %arg5[%c0_14, %c0_15] : memref<8x128xf32, #tpu.memory_space<vmem>>, vector<8x128xf32>
      %cst_16 = arith.constant 0.951229453 : f32
      %15 = vector.broadcast %cst_16 : f32 to vector<8x128xf32>
      %16 = arith.mulf %15, %14 : vector<8x128xf32>
      %17 = arith.addf %16, %13 : vector<8x128xf32>
      %cst_17 = arith.constant 1.000000e+00 : f32
      %18 = vector.broadcast %cst_17 : f32 to vector<8x128xf32>
      %19 = arith.cmpf oge, %17, %18 : vector<8x128xf32>
      %20 = arith.extui %19 : vector<8x128xi1> to vector<8x128xi32>
      %21 = arith.sitofp %20 : vector<8x128xi32> to vector<8x128xf32>
      %cst_18 = arith.constant 1.000000e+00 : f32
      %22 = vector.broadcast %cst_18 : f32 to vector<8x128xf32>
      %23 = arith.mulf %22, %21 : vector<8x128xf32>
      %24 = arith.subf %17, %23 : vector<8x128xf32>
      %c0_19 = arith.constant 0 : index
      %c0_20 = arith.constant 0 : index
      %25 = vector.load %arg5[%c0_19, %c0_20] : memref<8x128xf32, #tpu.memory_space<vmem>>, vector<8x128xf32>
      tpu.vector_store %arg5[%c0_19, %c0_20], %24 {strides = array<i32>} : memref<8x128xf32, #tpu.memory_space<vmem>>, vector<8x128xf32>,
      %c0_21 = arith.constant 0 : index
      %c0_22 = arith.constant 0 : index
      %26 = vector.load %arg4[%c0_21, %c0_22] : memref<8x128xf32, #tpu.memory_space<vmem>>, vector<8x128xf32>
      tpu.vector_store %arg4[%c0_21, %c0_22], %13 {strides = array<i32>} : memref<8x128xf32, #tpu.memory_space<vmem>>, vector<8x128xf32>,
      %27 = arith.index_cast %arg6 : i32 to index
      %c0_23 = arith.constant 0 : index
      %c0_24 = arith.constant 0 : index
      %28 = vector.load %arg2[%27, %c0_23, %c0_24] : memref<8x8x128xf32, #tpu.memory_space<vmem>>, vector<1x8x128xf32>
      %29 = vector.shape_cast %28 : vector<1x8x128xf32> to vector<8x128xf32>
      %30 = vector.shape_cast %21 : vector<8x128xf32> to vector<1x8x128xf32>
      tpu.vector_store %arg2[%27, %c0_23, %c0_24], %30 {strides = array<i32>} : memref<8x8x128xf32, #tpu.memory_space<vmem>>, vector<1x8x128xf32>,
      %c0_25 = arith.constant 0 : index
      %c0_26 = arith.constant 0 : index
      %c0_27 = arith.constant 0 : index
      %31 = vector.load %arg3[%c0_25, %c0_26, %c0_27] : memref<1x1x128xf32, #tpu.memory_space<vmem>>, vector<1x1x128xf32>
      %32 = vector.shape_cast %31 : vector<1x1x128xf32> to vector<1x128xf32>
      %cst_28 = arith.constant dense<0.000000e+00> : vector<128xf32>
      %33 = vector.multi_reduction <add>, %21, %cst_28 [0] : vector<8x128xf32> to vector<128xf32>
      %34 = vector.shape_cast %33 : vector<128xf32> to vector<1x128xf32>
      %35 = arith.addf %32, %34 : vector<1x128xf32>
      %c0_29 = arith.constant 0 : index
      %c0_30 = arith.constant 0 : index
      %c0_31 = arith.constant 0 : index
      %36 = vector.load %arg3[%c0_29, %c0_30, %c0_31] : memref<1x1x128xf32, #tpu.memory_space<vmem>>, vector<1x1x128xf32>
      %37 = vector.shape_cast %36 : vector<1x1x128xf32> to vector<1x128xf32>
      %38 = vector.shape_cast %35 : vector<1x128xf32> to vector<1x1x128xf32>
      tpu.vector_store %arg3[%c0_29, %c0_30, %c0_31], %38 {strides = array<i32>} : memref<1x1x128xf32, #tpu.memory_space<vmem>>, vector<1x1x128xf32>,
    }
    %c8_i32_8 = arith.constant 8 : i32
    return
  }
  func.func @transform_0(%arg0: i32) -> (i32, i32, i32) {
    %c0_i32 = arith.constant 0 : i32
    %c0_i32_0 = arith.constant 0 : i32
    %c0_i32_1 = arith.constant 0 : i32
    return %c0_i32, %arg0, %c0_i32_0 : i32, i32, i32
  }
  func.func @transform_1(%arg0: i32) -> (i32, i32, i32) {
    %c0_i32 = arith.constant 0 : i32
    %c0_i32_0 = arith.constant 0 : i32
    %c0_i32_1 = arith.constant 0 : i32
    return %c0_i32, %arg0, %c0_i32_0 : i32, i32, i32
  }
  func.func @transform_2(%arg0: i32) -> (i32, i32, i32) {
    %c0_i32 = arith.constant 0 : i32
    %c0_i32_0 = arith.constant 0 : i32
    %c0_i32_1 = arith.constant 0 : i32
    return %arg0, %c0_i32, %c0_i32_0 : i32, i32, i32
  }
}

</mosaic_0001>

<bundles_post_ra>
// kernel: _lambda_.9
= control target key start
LH: loop header
LB: loop body
LE: loop exit
PB: predicated region body
PF: predicated region fallthrough
CT: control target
= control target key end

     0   :  { %s1147_s12 = smov 0   ;;  %s1149_s13 = smov 0   ;;  %s1455_s0 = inlined_call_operand.vmem [shape: bf16[8,128,128], index: 0, kind: input, shape index: {}]   ;;  %s1456_s1 = inlined_call_operand.vmem [shape: bf16[128,32], index: 1, kind: input, shape index: {}]   ;;  %s1457_s2 = inlined_call_operand.vmem [shape: s8[8,128,32], index: 2, kind: output, shape index: {0}]   ;;  %s1458_s3 = inlined_call_operand.vmem [shape: f32[1,1,32], index: 3, kind: output, shape index: {1}]  }
   0x1   :  { %s1151_s14 = smov 0  }
   0x2 LB: > { %s23_s15 = sadd.s32 1, %s1119_s13  ;;  %p952_p0 = scmp.ge.s32.totalorder %s1123_s14, 1  ;;  %s1123_s14 = sphi %s1151_s14, %s14_s14   ;;  %s1119_s13 = sphi %s1149_s13, %s1460_s13   ;;  %s1115_s12 = sphi %s1147_s12, %s1459_s12  }
   0x3   : > { %p24_p1 = scmp.ge.s32.totalorder %s23_s15, 8  ;;  %p161_p2 = scmp.lt.s32.totalorder %s1123_s14, 9 }
   0x5   : > { %s1462_s15 = smov (%p24_p1, %s23_s15), 0  ;;  %p162_p3 = pnand %p952_p0, %p161_p2 }
   0x6   : > { %p197_p4 = scmp.lt.s32.totalorder (!%p162_p3), %s1115_s12, 7  ;;  %p957_p5 = scmp.ne.s32.totalorder (!%p162_p3), %s1115_s12, 0 }
   0x7   : > { %165 = sbr.rel (%p162_p3) target bundleno = 343 (0x157), region = 28 }
   0xe   : > { %s198_s16 = scalar_select %p197_p4, %s1115_s12, 7 }
   0xf   : > { %223 = sbr.rel (%p957_p5) target bundleno = 33 (0x21), region = 32  ;;  %vm224_vm0 = vcmask (!%p957_p5), 261120   ;;  %vm257_vm1 = vcmask (!%p957_p5), 253952   ;;  %v1125_v0 = vmov (!%p957_p5), 0.0  }
  0x10   : > { %s993_s17 = sshll.u32 %s198_s16, 6  ;;  %s994_s18 = sshll.u32 %s198_s16, 5  ;;  %225 = vst.msk [vmem:[#allocation2] sm:$0xff] (!%p957_p5), %vm224_vm0, %v1125_v0  ;;  %226 = vst.msk [vmem:[#allocation2 + $0x8] sm:$0xff] (!%p957_p5), %vm224_vm0, %v1125_v0 }
  0x11   : > { %s1168_s21 = scalar_lea.vmem %s1455_s0, %s993_s17  ;;  %s1173_s24 = scalar_lea.vmem %s1457_s2, %s994_s18  ;;  %227 = vst.msk [vmem:[#allocation2 + $0x10] sm:$0xff] (!%p957_p5), %vm224_vm0, %v1125_v0  ;;  %228 = vst.msk [vmem:[#allocation2 + $0x18] sm:$0xff] (!%p957_p5), %vm224_vm0, %v1125_v0 }
  0x12   : > { %229 = vst.msk [vmem:[#allocation2 + $0x20] sm:$0xff] (!%p957_p5), %vm224_vm0, %v1125_v0  ;;  %230 = vst.msk [vmem:[#allocation2 + $0x28] sm:$0xff] (!%p957_p5), %vm224_vm0, %v1125_v0 }
  0x13   : > { %231 = vst.msk [vmem:[#allocation2 + $0x30] sm:$0xff] (!%p957_p5), %vm224_vm0, %v1125_v0  ;;  %232 = vst.msk [vmem:[#allocation2 + $0x38] sm:$0xff] (!%p957_p5), %vm224_vm0, %v1125_v0 }
  0x14   : > { %233 = vst.msk [vmem:[#allocation2 + $0x40] sm:$0xff] (!%p957_p5), %vm224_vm0, %v1125_v0  ;;  %234 = vst.msk [vmem:[#allocation2 + $0x48] sm:$0xff] (!%p957_p5), %vm224_vm0, %v1125_v0 }
  0x15   : > { %235 = vst.msk [vmem:[#allocation2 + $0x50] sm:$0xff] (!%p957_p5), %vm224_vm0, %v1125_v0  ;;  %236 = vst.msk [vmem:[#allocation2 + $0x58] sm:$0xff] (!%p957_p5), %vm224_vm0, %v1125_v0 }
  0x16   : > { %237 = vst.msk [vmem:[#allocation2 + $0x60] sm:$0xff] %vm224_vm0, %v1125_v0  ;;  %238 = vst.msk [vmem:[#allocation2 + $0x68] sm:$0xff] %vm224_vm0, %v1125_v0 }
  0x17   : > { %239 = vst.msk [vmem:[#allocation2 + $0x70] sm:$0xff] %vm224_vm0, %v1125_v0  ;;  %240 = vst.msk [vmem:[#allocation2 + $0x78] sm:$0xff] %vm224_vm0, %v1125_v0 }
  0x18   : > { %241 = vst.msk [vmem:[#allocation3] sm:$0xff] %vm224_vm0, %v1125_v0  ;;  %242 = vst.msk [vmem:[#allocation3 + $0x8] sm:$0xff] %vm224_vm0, %v1125_v0 }
  0x19   : > { %243 = vst.msk [vmem:[#allocation3 + $0x10] sm:$0xff] %vm224_vm0, %v1125_v0  ;;  %244 = vst.msk [vmem:[#allocation3 + $0x18] sm:$0xff] %vm224_vm0, %v1125_v0 }
  0x1a   : > { %245 = vst.msk [vmem:[#allocation3 + $0x20] sm:$0xff] %vm224_vm0, %v1125_v0  ;;  %246 = vst.msk [vmem:[#allocation3 + $0x28] sm:$0xff] %vm224_vm0, %v1125_v0 }
  0x1b   : > { %247 = vst.msk [vmem:[#allocation3 + $0x30] sm:$0xff] %vm224_vm0, %v1125_v0  ;;  %248 = vst.msk [vmem:[#allocation3 + $0x38] sm:$0xff] %vm224_vm0, %v1125_v0 }
  0x1c   : > { %249 = vst.msk [vmem:[#allocation3 + $0x40] sm:$0xff] %vm224_vm0, %v1125_v0  ;;  %250 = vst.msk [vmem:[#allocation3 + $0x48] sm:$0xff] %vm224_vm0, %v1125_v0 }
  0x1d   : > { %251 = vst.msk [vmem:[#allocation3 + $0x50] sm:$0xff] %vm224_vm0, %v1125_v0  ;;  %252 = vst.msk [vmem:[#allocation3 + $0x58] sm:$0xff] %vm224_vm0, %v1125_v0 }
  0x1e   : > { %253 = vst.msk [vmem:[#allocation3 + $0x60] sm:$0xff] %vm224_vm0, %v1125_v0  ;;  %254 = vst.msk [vmem:[#allocation3 + $0x68] sm:$0xff] %vm224_vm0, %v1125_v0 }
  0x1f   : > { %255 = vst.msk [vmem:[#allocation3 + $0x70] sm:$0xff] %vm224_vm0, %v1125_v0  ;;  %256 = vst.msk [vmem:[#allocation3 + $0x78] sm:$0xff] %vm224_vm0, %v1125_v0 }
  0x20   : > { %258 = vst.msk [vmem:[%s1458_s3] sm:$0x1] %vm257_vm1, %v1125_v0 }
  0x21 PF: > { %v1085_v1 = vld [vmem:[%s1456_s1] sm:$0xff]   ;;  %v1086_v2 = vld [vmem:[%s1456_s1 + $0x8] sm:$0xff]   ;;  %v1087_v3 = vld [vmem:[%s1456_s1 + $0x10] sm:$0xff]   ;;  %vm644_vm2 = vcmask 261120   ;;  %vm781_vm8 = vcmask 254976  }
  0x22   : > { %1011 = vmatprep.subr.bf16.mxu0 %v1085_v1  ;;  %1043 = vmatprep.subr.bf16.mxu1 %v1085_v1  ;;  %v1088_v4 = vld [vmem:[%s1456_s1 + $0x18] sm:$0xff]   ;;  %v1093_v5 = vld [vmem:[%s1168_s21] sm:$0xff]   ;;  %v1090_v8 = vld [vmem:[%s1456_s1 + $0x28] sm:$0xff]  }
  0x23   : > { %1012 = vmatpush3.bf16.msra.mxu0 %v1085_v1  ;;  %1051 = vmatpush3.bf16.msra.mxu1 %v1085_v1  ;;  %v1089_v6 = vld [vmem:[%s1456_s1 + $0x20] sm:$0xff]   ;;  %v1091_v9 = vld [vmem:[%s1456_s1 + $0x30] sm:$0xff]   ;;  %v1092_v10 = vld [vmem:[%s1456_s1 + $0x38] sm:$0xff]  }
  0x24   : > { %1013 = vmatprep.subr.bf16.mxu0 %v1086_v2  ;;  %1044 = vmatprep.subr.bf16.mxu1 %v1086_v2  ;;  %v1097_v7 = vld [vmem:[%s1168_s21 + $0x20] sm:$0xff]   ;;  %v1094_v11 = vld [vmem:[%s1168_s21 + $0x8] sm:$0xff]   ;;  %v1095_v13 = vld [vmem:[%s1168_s21 + $0x10] sm:$0xff]  }
  0x25   : > { %1027 = vmatprep.mubr.bf16.mxu0 %v1093_v5  ;;  %1035 = vmatprep.mubr.bf16.mxu1 %v1097_v7  ;;  %v1098_v12 = vld [vmem:[%s1168_s21 + $0x28] sm:$0xff]   ;;  %v1099_v14 = vld [vmem:[%s1168_s21 + $0x30] sm:$0xff]   ;;  %v1096_v15 = vld [vmem:[%s1168_s21 + $0x18] sm:$0xff]  }
  0x26   : > { %v1100_v16 = vld [vmem:[%s1168_s21 + $0x38] sm:$0xff]   ;;  %v486_v17 = vld [vmem:[#allocation2 + $0x10] sm:$0xff]  ;;  %v484_v18 = vld [vmem:[#allocation2] sm:$0xff] }
  0x27   : > { %1014 = vmatpush3.bf16.msra.mxu0 %v1086_v2  ;;  %1052 = vmatpush3.bf16.msra.mxu1 %v1086_v2  ;;  %v534_v19 = vld [vmem:[#allocation3 + $0x10] sm:$0xff]  ;;  %v487_v20 = vld [vmem:[#allocation2 + $0x18] sm:$0xff]  ;;  %v532_v21 = vld [vmem:[#allocation3] sm:$0xff]  ;;  %v502_v23 = vmul.f32 0.8187308, %v486_v17 }
  0x28   : > { %1015 = vmatprep.subr.bf16.mxu0 %v1087_v3  ;;  %1045 = vmatprep.subr.bf16.mxu1 %v1087_v3  ;;  %v535_v22 = vld [vmem:[#allocation3 + $0x18] sm:$0xff]  ;;  %v500_v24 = vmul.f32 0.8187308, %v484_v18  ;;  %v485_v25 = vld [vmem:[#allocation2 + $0x8] sm:$0xff]  ;;  %v1243_v27 = vmul.f32 0.95122945, %v534_v19 }
  0x29   : > { %v533_v26 = vld [vmem:[#allocation3 + $0x8] sm:$0xff]  ;;  %v1245_v28 = vmul.f32 0.8187308, %v487_v20  ;;  %v490_v29 = vld [vmem:[#allocation2 + $0x30] sm:$0xff]  ;;  %v488_v30 = vld [vmem:[#allocation2 + $0x20] sm:$0xff] }
  0x2a   : > { %v1247_v31 = vmul.f32 0.95122945, %v532_v21  ;;  %v1249_v32 = vmul.f32 0.95122945, %v535_v22  ;;  %v538_v33 = vld [vmem:[#allocation3 + $0x30] sm:$0xff]  ;;  %v536_v34 = vld [vmem:[#allocation3 + $0x20] sm:$0xff] }
  0x2b   : > { %1016 = vmatpush3.bf16.msra.mxu0 %v1087_v3  ;;  %1053 = vmatpush3.bf16.msra.mxu1 %v1087_v3  ;;  %v1251_v35 = vmul.f32 0.8187308, %v485_v25  ;;  %v1253_v36 = vmul.f32 0.95122945, %v533_v26  ;;  %v491_v37 = vld [vmem:[#allocation2 + $0x38] sm:$0xff]  ;;  %v489_v38 = vld [vmem:[#allocation2 + $0x28] sm:$0xff] }
  0x2c   : > { %1017 = vmatprep.subr.bf16.mxu0 %v1088_v4  ;;  %1046 = vmatprep.subr.bf16.mxu1 %v1088_v4  ;;  %v1255_v39 = vmul.f32 0.8187308, %v490_v29  ;;  %v1257_v40 = vmul.f32 0.8187308, %v488_v30  ;;  %v539_v41 = vld [vmem:[#allocation3 + $0x38] sm:$0xff]  ;;  %v537_v42 = vld [vmem:[#allocation3 + $0x28] sm:$0xff] }
  0x2d   : > { %v1259_v43 = vmul.f32 0.95122945, %v538_v33  ;;  %v1261_v44 = vmul.f32 0.95122945, %v536_v34  ;;  %v494_v45 = vld [vmem:[#allocation2 + $0x50] sm:$0xff]  ;;  %v492_v46 = vld [vmem:[#allocation2 + $0x40] sm:$0xff] }
  0x2e   : > { %v1263_v47 = vmul.f32 0.8187308, %v491_v37  ;;  %v1265_v48 = vmul.f32 0.8187308, %v489_v38  ;;  %v542_v49 = vld [vmem:[#allocation3 + $0x50] sm:$0xff]  ;;  %v495_v50 = vld [vmem:[#allocation2 + $0x58] sm:$0xff] }
  0x2f   : > { %1018 = vmatpush3.bf16.msra.mxu0 %v1088_v4  ;;  %1054 = vmatpush3.bf16.msra.mxu1 %v1088_v4  ;;  %v1267_v51 = vmul.f32 0.95122945, %v539_v41  ;;  %v1269_v52 = vmul.f32 0.95122945, %v537_v42  ;;  %v540_v53 = vld [vmem:[#allocation3 + $0x40] sm:$0xff]  ;;  %v543_v54 = vld [vmem:[#allocation3 + $0x58] sm:$0xff] }
  0x30   : > { %1019 = vmatprep.subr.bf16.mxu0 %v1089_v6  ;;  %1047 = vmatprep.subr.bf16.mxu1 %v1089_v6  ;;  %v510_v55 = vmul.f32 0.8187308, %v494_v45  ;;  %v508_v56 = vmul.f32 0.8187308, %v492_v46  ;;  %v493_v57 = vld [vmem:[#allocation2 + $0x48] sm:$0xff]  ;;  %v498_v61 = vld [vmem:[#allocation2 + $0x70] sm:$0xff] }
  0x31   : > { %v541_v58 = vld [vmem:[#allocation3 + $0x48] sm:$0xff]  ;;  %v558_v59 = vmul.f32 0.95122945, %v542_v49  ;;  %v511_v60 = vmul.f32 0.8187308, %v495_v50  ;;  %v496_v62 = vld [vmem:[#allocation2 + $0x60] sm:$0xff] }
  0x32   : > { %v556_v63 = vmul.f32 0.95122945, %v540_v53  ;;  %v559_v0 = vmul.f32 0.95122945, %v543_v54  ;;  %v546_v1 = vld [vmem:[#allocation3 + $0x70] sm:$0xff]  ;;  %v499_v2 = vld [vmem:[#allocation2 + $0x78] sm:$0xff] }
  0x33   : > { %1020 = vmatpush3.bf16.msra.mxu0 %v1089_v6  ;;  %1055 = vmatpush3.bf16.msra.mxu1 %v1089_v6  ;;  %v509_v3 = vmul.f32 0.8187308, %v493_v57  ;;  %v1271_v4 = vmul.f32 0.95122945, %v541_v58  ;;  %v544_v5 = vld [vmem:[#allocation3 + $0x60] sm:$0xff]  ;;  %v497_v18 = vld [vmem:[#allocation2 + $0x68] sm:$0xff] }
  0x34   : > { %1021 = vmatprep.subr.bf16.mxu0 %v1090_v8  ;;  %1048 = vmatprep.subr.bf16.mxu1 %v1090_v8  ;;  %v1273_v6 = vmul.f32 0.8187308, %v498_v61  ;;  %v1275_v7 = vmul.f32 0.8187308, %v496_v62  ;;  %v1281_v17 = vmul.f32 0.95122945, %v544_v5 }
  0x35   : > { %v545_v26 = vld [vmem:[#allocation3 + $0x68] sm:$0xff] }
  0x36   : > { %v1300_v42 = vmul.f32 0.95122945, %v545_v26 }
  0x37   : > { %1022 = vmatpush3.bf16.msra.mxu0 %v1090_v8  ;;  %1056 = vmatpush3.bf16.msra.mxu1 %v1090_v8  ;;  %v547_v8 = vld [vmem:[#allocation3 + $0x78] sm:$0xff] }
  0x38   : > { %1023 = vmatprep.subr.bf16.mxu0 %v1091_v9  ;;  %1049 = vmatprep.subr.bf16.mxu1 %v1091_v9  ;;  %v1283_v25 = vmul.f32 0.95122945, %v547_v8 }
  0x3b   : > { %1024 = vmatpush3.bf16.msra.mxu0 %v1091_v9  ;;  %1057 = vmatpush3.bf16.msra.mxu1 %v1091_v9 }
  0x3c   : > { %1025 = vmatprep.subr.bf16.mxu0 %v1092_v10  ;;  %1050 = vmatprep.subr.bf16.mxu1 %v1092_v10 }
  0x3f   : > { %1026 = vmatpush3.bf16.msra.mxu0 %v1092_v10  ;;  %1058 = vmatpush3.bf16.msra.mxu1 %v1092_v10 }
  0x42   : > { %1028 = vmatmul.mubr.bf16.vlgmr.msra.gmra.mrb[0].mxu0 %v1094_v11  ;;  %1036 = vmatmul.mubr.bf16.vlgmr.msra.gmra.mrb[0].mxu1 %v1098_v12  ;;  %v1277_v11 = vmul.f32 0.95122945, %v546_v1  ;;  %v1279_v12 = vmul.f32 0.8187308, %v499_v2 }
  0x43   : > { %1031 = vmatprep.mubr.bf16.mxu0 %v1095_v13  ;;  %1039 = vmatprep.mubr.bf16.mxu1 %v1099_v14 }
  0x4a   : > { %1032 = vmatmul.mubr.bf16.gmra.mrb[4].mxu0 %v1096_v15  ;;  %1040 = vmatmul.mubr.bf16.gmra.mrb[4].mxu1 %v1100_v16 }
 0x115   : > { %v1029_v9 = vpop.f32.mrb[0].mxu0  ;;  %v1037_v10 = vpop.f32.mrb[0].mxu1 }
 0x116   : > { %v518_v13 = vadd.f32 %v1029_v9, %v502_v23  ;;  %v421_v14 = vpop.f32.mrb[1].mxu0  ;;  %v526_v15 = vadd.f32 %v1037_v10, %v510_v55  ;;  %v453_v16 = vpop.f32.mrb[1].mxu1 }
 0x117   : > { %v516_v19 = vadd.f32 %v500_v24, %v421_v14  ;;  %v1030_v20 = vpop.f32.mrb[2].mxu0  ;;  %v524_v21 = vadd.f32 %v508_v56, %v453_v16  ;;  %v1038_v22 = vpop.f32.mrb[2].mxu1 }
 0x118   : > { %v566_v29 = vadd.f32 %v1243_v27, %v518_v13  ;;  %663 = vst.msk [vmem:[#allocation2 + $0x10] sm:$0xff] %vm644_vm2, %v518_v13  ;;  %v519_v30 = vadd.f32 %v1030_v20, %v1245_v28  ;;  %v424_v23 = vpop.f32.mrb[3].mxu0  ;;  %v574_v33 = vadd.f32 %v558_v59, %v526_v15  ;;  %671 = vst.msk [vmem:[#allocation2 + $0x50] sm:$0xff] %vm644_vm2, %v526_v15  ;;  %v456_v37 = vpop.f32.mrb[3].mxu1  ;;  %v1295_v27 = vmul.f32 0.8187308, %v497_v18 }
 0x119   : > { %v527_v34 = vadd.f32 %v1038_v22, %v511_v60  ;;  %v564_v24 = vadd.f32 %v1247_v31, %v516_v19  ;;  %661 = vst.msk [vmem:[#allocation2] sm:$0xff] %vm644_vm2, %v516_v19  ;;  %v517_v38 = vadd.f32 %v1251_v35, %v424_v23  ;;  %669 = vst.msk [vmem:[#allocation2 + $0x40] sm:$0xff] %vm644_vm2, %v524_v21  ;;  %v1126_v31 = vmov 0.0  }
 0x11a   : > { %v1293_v41 = vadd.f32 %v509_v3, %v456_v37  ;;  %vm582_vm3 = vcmp.ge.f32.partialorder %v566_v29, 1.0  ;;  %v567_v28 = vadd.f32 %v1249_v32, %v519_v30  ;;  %664 = vst.msk [vmem:[#allocation2 + $0x18] sm:$0xff] %vm644_vm2, %v519_v30  ;;  %vm590_vm4 = vcmp.ge.f32.partialorder %v574_v33, 1.0 }
 0x11b   : > { %672 = vst.msk [vmem:[#allocation2 + $0x58] sm:$0xff] %vm644_vm2, %v527_v34  ;;  %v976_v45 = vsel %vm582_vm3, 1.0, %v1126_v31  ;;  %vm580_vm5 = vcmp.ge.f32.partialorder %v564_v24, 1.0  ;;  %v565_v35 = vadd.f32 %v1253_v36, %v517_v38  ;;  %662 = vst.msk [vmem:[#allocation2 + $0x8] sm:$0xff] %vm644_vm2, %v517_v38  ;;  %v1306_v46 = vsel %vm590_vm4, 1.0, %v1126_v31 }
 0x11c   : > { %670 = vst.msk [vmem:[#allocation2 + $0x48] sm:$0xff] %vm644_vm2, %v1293_v41  ;;  %v630_v32 = vsub.f32 %v566_v29, %v976_v45  ;;  %v974_v49 = vsel %vm580_vm5, 1.0, %v1126_v31  ;;  %v1311_v50 = vadd.f32 %v556_v63, %v524_v21  ;;  %v1313_v53 = vadd.f32 %v559_v0, %v527_v34 }
 0x11d   : > { %v679_v54 = vtrunc.f32 %v976_v45  ;;  %v628_v55 = vsub.f32 %v564_v24, %v974_v49  ;;  %v677_v56 = vtrunc.f32 %v974_v49  ;;  %vm583_vm6 = vcmp.ge.f32.partialorder %v567_v28, 1.0  ;;  %v1033_v36 = vpop.f32.mrb[4].mxu0  ;;  %v1315_v57 = vpop.f32.mrb[4].mxu1 }
 0x11e   : > { %647 = vst.msk [vmem:[#allocation3 + $0x10] sm:$0xff] %vm644_vm2, %v630_v32  ;;  %v977_v58 = vsel %vm583_vm6, 1.0, %v1126_v31  ;;  %vm581_vm7 = vcmp.ge.f32.partialorder %v565_v35, 1.0  ;;  %v522_v59 = vadd.f32 %v1033_v36, %v1255_v39  ;;  %v437_v60 = vpop.f32.mrb[5].mxu0  ;;  %v638_v61 = vsub.f32 %v574_v33, %v1306_v46  ;;  %v1321_v62 = vpop.f32.mrb[5].mxu1 }
 0x11f   : > { %645 = vst.msk [vmem:[#allocation3] sm:$0xff] %vm644_vm2, %v628_v55  ;;  %v799_v63 = vsel %vm644_vm2, %v974_v49, 0.0  ;;  %v631_v0 = vsub.f32 %v567_v28, %v977_v58  ;;  %v680_v1 = vtrunc.f32 %v977_v58  ;;  %v975_v2 = vsel %vm581_vm7, 1.0, %v1126_v31  ;;  %v1034_v3 = vpop.f32.mrb[6].mxu0  ;;  %v1326_v5 = vpop.f32.mrb[6].mxu1 }
 0x120   : > { %v629_v8 = vsub.f32 %v565_v35, %v975_v2  ;;  %v678_v9 = vtrunc.f32 %v975_v2  ;;  %v800_v39 = vsel %vm644_vm2, %v975_v2, 0.0  ;;  %v570_v10 = vadd.f32 %v1259_v43, %v522_v59  ;;  %667 = vst.msk [vmem:[#allocation2 + $0x30] sm:$0xff] %vm644_vm2, %v522_v59  ;;  %v440_v13 = vpop.f32.mrb[7].mxu0  ;;  %655 = vst.msk [vmem:[#allocation3 + $0x50] sm:$0xff] %vm644_vm2, %v638_v61  ;;  %v1332_v14 = vpop.f32.mrb[7].mxu1 }
 0x121   : > { %648 = vst.msk [vmem:[#allocation3 + $0x18] sm:$0xff] %vm644_vm2, %v631_v0  ;;  %v697_v15 = vpack.c.f32.eXmY %v679_v54, %v680_v1, 312  ;;  %v801_v16 = vadd.f32 %v800_v39, %v799_v63  ;;  %v520_v18 = vadd.f32 %v1257_v40, %v437_v60  ;;  %v523_v19 = vadd.f32 %v1034_v3, %v1263_v47 }
 0x122   : > { %v802_v20 = vsel %vm644_vm2, %v976_v45, 0.0  ;;  %646 = vst.msk [vmem:[#allocation3 + $0x8] sm:$0xff] %vm644_vm2, %v629_v8  ;;  %v693_v43 = vpack.c.f32.eXmY %v677_v56, %v678_v9, 312  ;;  %vm586_vm9 = vcmp.ge.f32.partialorder %v570_v10, 1.0  ;;  %v521_v21 = vadd.f32 %v1265_v48, %v440_v13 }
 0x123   : > { %v803_v22 = vadd.f32 %v802_v20, %v801_v16  ;;  %v980_v26 = vsel %vm586_vm9, 1.0, %v1126_v31  ;;  %v568_v29 = vadd.f32 %v1261_v44, %v520_v18  ;;  %665 = vst.msk [vmem:[#allocation2 + $0x20] sm:$0xff] %vm644_vm2, %v520_v18  ;;  %v571_v30 = vadd.f32 %v1267_v51, %v523_v19  ;;  %668 = vst.msk [vmem:[#allocation2 + $0x38] sm:$0xff] %vm644_vm2, %v523_v19 }
 0x124   : > { %v804_v40 = vsel %vm644_vm2, %v977_v58, 0.0  ;;  %v701_v47 = vpack.c.b8 %v697_v15, %v693_v43  ;;  %v634_v23 = vsub.f32 %v570_v10, %v980_v26  ;;  %666 = vst.msk [vmem:[#allocation2 + $0x28] sm:$0xff] %vm644_vm2, %v521_v21  ;;  %v687_v33 = vtrunc.f32 %v1306_v46 }
 0x125   : > { %vm584_vm10 = vcmp.ge.f32.partialorder %v568_v29, 1.0  ;;  %v805_v48 = vadd.f32 %v804_v40, %v803_v22  ;;  %vm587_vm11 = vcmp.ge.f32.partialorder %v571_v30, 1.0  ;;  %v569_v34 = vadd.f32 %v1269_v52, %v521_v21 }
 0x126   : > { %v733_v44 = vunpack.c.0.s8 %v701_v47  ;;  %v734_v37 = vunpack.c.1.s8 %v701_v47  ;;  %v735_v24 = vunpack.c.2.s8 %v701_v47  ;;  %v736_v38 = vunpack.c.3.s8 %v701_v47  ;;  %651 = vst.msk [vmem:[#allocation3 + $0x30] sm:$0xff] %vm644_vm2, %v634_v23 }
 0x127   : > { %v683_v51 = vtrunc.f32 %v980_v26  ;;  %v978_v28 = vsel %vm584_vm10, 1.0, %v1126_v31  ;;  %v981_v45 = vsel %vm587_vm11, 1.0, %v1126_v31  ;;  %vm585_vm12 = vcmp.ge.f32.partialorder %v569_v34, 1.0 }
 0x128   : > { %v749_v35 = vpack.c.b16 %v733_v44, %v733_v44  ;;  %v751_v32 = vpack.c.b16 %v734_v37, %v734_v37  ;;  %v753_v49 = vpack.c.b16 %v735_v24, %v735_v24  ;;  %v755_v54 = vpack.c.b16 %v736_v38, %v736_v38 }
 0x129   : > { %v810_v52 = vsel %vm644_vm2, %v980_v26, 0.0  ;;  %v632_v55 = vsub.f32 %v568_v29, %v978_v28  ;;  %v806_v56 = vsel %vm644_vm2, %v978_v28, 0.0  ;;  %v635_v36 = vsub.f32 %v571_v30, %v981_v45 }
 0x12a   : > { %v750_v58 = vpack.c.b8 %v749_v35, %v749_v35  ;;  %v752_v59 = vpack.c.b8 %v751_v32, %v751_v32  ;;  %v754_v60 = vpack.c.b8 %v753_v49, %v753_v49  ;;  %v756_v61 = vpack.c.b8 %v755_v54, %v755_v54 }
 0x12b   : > { %649 = vst.msk [vmem:[#allocation3 + $0x20] sm:$0xff] %vm644_vm2, %v632_v55  ;;  %v681_v63 = vtrunc.f32 %v978_v28  ;;  %v807_v0 = vadd.f32 %v806_v56, %v805_v48  ;;  %652 = vst.msk [vmem:[#allocation3 + $0x38] sm:$0xff] %vm644_vm2, %v635_v36  ;;  %v684_v1 = vtrunc.f32 %v981_v45  ;;  %v979_v2 = vsel %vm585_vm12, 1.0, %v1126_v31 }
 0x12c   : > { %782 = vst.msk [vmem:[%s1173_s24] sm:$0x3] %vm781_vm8, %v750_v58  ;;  %783 = vst.msk [vmem:[%s1173_s24 + $0x2] sm:$0x3] %vm781_vm8, %v752_v59  ;;  %v633_v3 = vsub.f32 %v569_v34, %v979_v2  ;;  %v682_v8 = vtrunc.f32 %v979_v2  ;;  %v808_v9 = vsel %vm644_vm2, %v979_v2, 0.0  ;;  %vm588_vm13 = vcmp.ge.f32.partialorder %v1311_v50, 1.0 }
 0x12d   : > { %784 = vst.msk [vmem:[%s1173_s24 + $0x4] sm:$0x3] %vm781_vm8, %v754_v60  ;;  %785 = vst.msk [vmem:[%s1173_s24 + $0x6] sm:$0x3] %vm781_vm8, %v756_v61  ;;  %v707_v39 = vpack.c.f32.eXmY %v683_v51, %v684_v1, 312  ;;  %v809_v10 = vadd.f32 %v808_v9, %v807_v0  ;;  %v982_v13 = vsel %vm588_vm13, 1.0, %v1126_v31  ;;  %v573_v21 = vadd.f32 %v1271_v4, %v1293_v41 }
 0x12e   : > { %vm591_vm14 = vcmp.ge.f32.partialorder %v1313_v53, 1.0  ;;  %v812_v15 = vsel %vm644_vm2, %v981_v45, 0.0  ;;  %650 = vst.msk [vmem:[#allocation3 + $0x28] sm:$0xff] %vm644_vm2, %v633_v3  ;;  %v703_v16 = vpack.c.f32.eXmY %v681_v63, %v682_v8, 312  ;;  %v636_v18 = vsub.f32 %v1311_v50, %v982_v13 }
 0x12f   : > { %v685_v19 = vtrunc.f32 %v982_v13  ;;  %v811_v20 = vadd.f32 %v810_v52, %v809_v10  ;;  %v985_v43 = vsel %vm591_vm14, 1.0, %v1126_v31  ;;  %v530_v22 = vadd.f32 %v1315_v57, %v1273_v6 }
 0x130   : > { %v711_v26 = vpack.c.b8 %v707_v39, %v703_v16  ;;  %653 = vst.msk [vmem:[#allocation3 + $0x40] sm:$0xff] %vm644_vm2, %v636_v18  ;;  %v814_v29 = vsel %vm644_vm2, %v982_v13, 0.0  ;;  %v639_v30 = vsub.f32 %v1313_v53, %v985_v43  ;;  %v688_v40 = vtrunc.f32 %v985_v43 }
 0x131   : > { %v813_v47 = vadd.f32 %v812_v15, %v811_v20  ;;  %vm589_vm15 = vcmp.ge.f32.partialorder %v573_v21, 1.0  ;;  %v578_v50 = vadd.f32 %v1277_v11, %v530_v22  ;;  %675 = vst.msk [vmem:[#allocation2 + $0x70] sm:$0xff] %vm644_vm2, %v530_v22  ;;  %v528_v4 = vadd.f32 %v1275_v7, %v1321_v62 }
 0x132   : > { %v737_v41 = vunpack.c.0.s8 %v711_v26  ;;  %v738_v23 = vunpack.c.1.s8 %v711_v26  ;;  %v739_v6 = vunpack.c.2.s8 %v711_v26  ;;  %v740_v57 = vunpack.c.3.s8 %v711_v26  ;;  %656 = vst.msk [vmem:[#allocation3 + $0x58] sm:$0xff] %vm644_vm2, %v639_v30 }
 0x133   : > { %v815_v48 = vadd.f32 %v814_v29, %v813_v47  ;;  %v717_v53 = vpack.c.f32.eXmY %v687_v33, %v688_v40, 312  ;;  %v983_v34 = vsel %vm589_vm15, 1.0, %v1126_v31  ;;  %vm594_vm0 = vcmp.ge.f32.partialorder %v578_v50, 1.0  ;;  %673 = vst.msk [vmem:[#allocation2 + $0x60] sm:$0xff] %vm644_vm2, %v528_v4 }
 0x134   : > { %v757_v11 = vpack.c.b16 %v737_v41, %v737_v41  ;;  %v759_v44 = vpack.c.b16 %v738_v23, %v738_v23  ;;  %v761_v7 = vpack.c.b16 %v739_v6, %v739_v6  ;;  %v763_v62 = vpack.c.b16 %v740_v57, %v740_v57 }
 0x135   : > { %v637_v37 = vsub.f32 %v573_v21, %v983_v34  ;;  %v686_v24 = vtrunc.f32 %v983_v34  ;;  %v816_v38 = vsel %vm644_vm2, %v983_v34, 0.0  ;;  %v988_v51 = vsel %vm594_vm0, 1.0, %v1126_v31 }
 0x136   : > { %v758_v33 = vpack.c.b8 %v757_v11, %v757_v11  ;;  %v760_v28 = vpack.c.b8 %v759_v44, %v759_v44  ;;  %v762_v45 = vpack.c.b8 %v761_v7, %v761_v7  ;;  %v764_v35 = vpack.c.b8 %v763_v62, %v763_v62 }
 0x137   : > { %654 = vst.msk [vmem:[#allocation3 + $0x48] sm:$0xff] %vm644_vm2, %v637_v37  ;;  %v713_v32 = vpack.c.f32.eXmY %v685_v19, %v686_v24, 312  ;;  %v817_v49 = vadd.f32 %v816_v38, %v815_v48  ;;  %v642_v54 = vsub.f32 %v578_v50, %v988_v51  ;;  %v818_v52 = vsel %vm644_vm2, %v1306_v46, 0.0 }
 0x138   : > { %786 = vst.msk [vmem:[%s1173_s24 + $0x8] sm:$0x3] %vm781_vm8, %v758_v33  ;;  %787 = vst.msk [vmem:[%s1173_s24 + $0xa] sm:$0x3] %vm781_vm8, %v760_v28  ;;  %v576_v55 = vadd.f32 %v1281_v17, %v528_v4  ;;  %v531_v56 = vadd.f32 %v1326_v5, %v1279_v12  ;;  %v529_v36 = vadd.f32 %v1295_v27, %v1332_v14  ;;  %v820_v60 = vsel %vm644_vm2, %v985_v43, 0.0 }
 0x139   : > { %788 = vst.msk [vmem:[%s1173_s24 + $0xc] sm:$0x3] %vm781_vm8, %v762_v45  ;;  %789 = vst.msk [vmem:[%s1173_s24 + $0xe] sm:$0x3] %vm781_vm8, %v764_v35  ;;  %v721_v58 = vpack.c.b8 %v717_v53, %v713_v32  ;;  %v819_v59 = vadd.f32 %v818_v52, %v817_v49  ;;  %v691_v27 = vtrunc.f32 %v988_v51  ;;  %v826_v40 = vsel %vm644_vm2, %v988_v51, 0.0 }
 0x13a   : > { %659 = vst.msk [vmem:[#allocation3 + $0x70] sm:$0xff] %vm644_vm2, %v642_v54  ;;  %vm592_vm1 = vcmp.ge.f32.partialorder %v576_v55, 1.0  ;;  %v579_v61 = vadd.f32 %v1283_v25, %v531_v56  ;;  %676 = vst.msk [vmem:[#allocation2 + $0x78] sm:$0xff] %vm644_vm2, %v531_v56  ;;  %v577_v46 = vadd.f32 %v1300_v42, %v529_v36  ;;  %v798_v35 = vld [vmem:[%s1458_s3] sm:$0x1] }
 0x13b   : > { %674 = vst.msk [vmem:[#allocation2 + $0x68] sm:$0xff] %vm644_vm2, %v529_v36  ;;  %v741_v17 = vunpack.c.0.s8 %v721_v58  ;;  %v742_v12 = vunpack.c.1.s8 %v721_v58  ;;  %v743_v5 = vunpack.c.2.s8 %v721_v58  ;;  %v744_v63 = vunpack.c.3.s8 %v721_v58 }
 0x13c   : > { %v986_v14 = vsel %vm592_vm1, 1.0, %v1126_v31  ;;  %v821_v0 = vadd.f32 %v820_v60, %v819_v59  ;;  %vm595_vm3 = vcmp.ge.f32.partialorder %v579_v61, 1.0  ;;  %vm593_vm4 = vcmp.ge.f32.partialorder %v577_v46, 1.0 }
 0x13d   : > { %v765_v1 = vpack.c.b16 %v741_v17, %v741_v17  ;;  %v767_v2 = vpack.c.b16 %v742_v12, %v742_v12  ;;  %v769_v3 = vpack.c.b16 %v743_v5, %v743_v5  ;;  %v771_v25 = vpack.c.b16 %v744_v63, %v744_v63 }
 0x13e   : > { %v640_v8 = vsub.f32 %v576_v55, %v986_v14  ;;  %v822_v42 = vsel %vm644_vm2, %v986_v14, 0.0  ;;  %v989_v9 = vsel %vm595_vm3, 1.0, %v1126_v31  ;;  %v689_v16 = vtrunc.f32 %v986_v14 }
 0x13f   : > { %v766_v39 = vpack.c.b8 %v765_v1, %v765_v1  ;;  %v768_v10 = vpack.c.b8 %v767_v2, %v767_v2  ;;  %v770_v13 = vpack.c.b8 %v769_v3, %v769_v3  ;;  %v772_v15 = vpack.c.b8 %v771_v25, %v771_v25 }
 0x140   : > { %657 = vst.msk [vmem:[#allocation3 + $0x60] sm:$0xff] %vm644_vm2, %v640_v8  ;;  %v823_v18 = vadd.f32 %v822_v42, %v821_v0  ;;  %v643_v19 = vsub.f32 %v579_v61, %v989_v9  ;;  %v692_v20 = vtrunc.f32 %v989_v9  ;;  %v987_v43 = vsel %vm593_vm4, 1.0, %v1126_v31 }
 0x141   : > { %790 = vst.msk [vmem:[%s1173_s24 + $0x10] sm:$0x3] %vm781_vm8, %v766_v39  ;;  %791 = vst.msk [vmem:[%s1173_s24 + $0x12] sm:$0x3] %vm781_vm8, %v768_v10  ;;  %v641_v22 = vsub.f32 %v577_v46, %v987_v43  ;;  %v690_v26 = vtrunc.f32 %v987_v43  ;;  %v824_v29 = vsel %vm644_vm2, %v987_v43, 0.0  ;;  %v828_v4 = vsel %vm644_vm2, %v989_v9, 0.0 }
 0x142   : > { %792 = vst.msk [vmem:[%s1173_s24 + $0x14] sm:$0x3] %vm781_vm8, %v770_v13  ;;  %793 = vst.msk [vmem:[%s1173_s24 + $0x16] sm:$0x3] %vm781_vm8, %v772_v15  ;;  %v727_v21 = vpack.c.f32.eXmY %v691_v27, %v692_v20, 312  ;;  %v825_v30 = vadd.f32 %v824_v29, %v823_v18 }
 0x143   : > { %660 = vst.msk [vmem:[#allocation3 + $0x78] sm:$0xff] %vm644_vm2, %v643_v19  ;;  %658 = vst.msk [vmem:[#allocation3 + $0x68] sm:$0xff] %vm644_vm2, %v641_v22  ;;  %v723_v47 = vpack.c.f32.eXmY %v689_v16, %v690_v26, 312  ;;  %vm837_vm2 = vcmask 253952  }
 0x144   : > { %v827_v50 = vadd.f32 %v826_v40, %v825_v30 }
 0x145   : > { %v731_v41 = vpack.c.b8 %v727_v21, %v723_v47 }
 0x146   : > { %v829_v23 = vadd.f32 %v828_v4, %v827_v50 }
 0x147   : > { %v745_v31 = vunpack.c.0.s8 %v731_v41  ;;  %v746_v6 = vunpack.c.1.s8 %v731_v41  ;;  %v747_v57 = vunpack.c.2.s8 %v731_v41  ;;  %v748_v48 = vunpack.c.3.s8 %v731_v41 }
 0x148   : > { %v830_v53 = vrot.slane %v829_v23, 4 }
 0x149   : > { %v773_v34 = vpack.c.b16 %v745_v31, %v745_v31  ;;  %v775_v11 = vpack.c.b16 %v746_v6, %v746_v6  ;;  %v777_v44 = vpack.c.b16 %v747_v57, %v747_v57  ;;  %v779_v7 = vpack.c.b16 %v748_v48, %v748_v48 }
 0x14a   : > { %v831_v62 = vadd.f32 %v830_v53, %v829_v23 }
 0x14b   : > { %v774_v37 = vpack.c.b8 %v773_v34, %v773_v34  ;;  %v776_v24 = vpack.c.b8 %v775_v11, %v775_v11  ;;  %v778_v38 = vpack.c.b8 %v777_v44, %v777_v44  ;;  %v780_v51 = vpack.c.b8 %v779_v7, %v779_v7 }
 0x14c   : > { %v832_v33 = vrot.slane %v831_v62, 2 }
 0x14d   : > { %794 = vst.msk [vmem:[%s1173_s24 + $0x18] sm:$0x3] %vm781_vm8, %v774_v37  ;;  %795 = vst.msk [vmem:[%s1173_s24 + $0x1a] sm:$0x3] %vm781_vm8, %v776_v24 }
 0x14e   : > { %796 = vst.msk [vmem:[%s1173_s24 + $0x1c] sm:$0x3] %vm781_vm8, %v778_v38  ;;  %797 = vst.msk [vmem:[%s1173_s24 + $0x1e] sm:$0x3] %vm781_vm8, %v780_v51  ;;  %v833_v28 = vadd.f32 %v832_v33, %v831_v62 }
 0x150   : > { %v834_v45 = vrot.slane %v833_v28, 1 }
 0x152   : > { %v835_v32 = vadd.f32 %v834_v45, %v833_v28 }
 0x154   : > { %v836_v49 = vadd.f32 %v835_v32, %v798_v35 }
 0x156   : > { %838 = vst.msk [vmem:[%s1458_s3] sm:$0x1] %vm837_vm2, %v836_v49 }
 0x157 PF: > { %s14_s14 = sadd.s32 1, %s1123_s14   ;;  %s1459_s12 = smov %s1119_s13 }
 0x158   : > { %p11_p6 = scmp.ge.s32.totalorder %s14_s14, 10   ;;  %s1460_s13 = smov %s1462_s15 }
 0x15a   :  { %13 = sbr.rel (!%p11_p6) target bundleno = 2 (0x2), region = 74 }

// kernel: _lambda_.10
= control target key start
LH: loop header
LB: loop body
LE: loop exit
PB: predicated region body
PF: predicated region fallthrough
CT: control target
= control target key end

     0   :  { %s1413_s12 = smov 0   ;;  %s1415_s13 = smov 0   ;;  %s1720_s0 = inlined_call_operand.vmem [shape: s8[8,128,384], index: 0, kind: input, shape index: {}]   ;;  %s1721_s1 = inlined_call_operand.vmem [shape: bf16[384,64], index: 1, kind: input, shape index: {}]   ;;  %s1722_s2 = inlined_call_operand.vmem [shape: s8[8,128,64], index: 2, kind: output, shape index: {0}]   ;;  %s1723_s3 = inlined_call_operand.vmem [shape: f32[1,1,64], index: 3, kind: output, shape index: {1}]  }
   0x1   :  { %s1417_s14 = smov 0  }
   0x2 LB: > { %s23_s15 = sadd.s32 1, %s1385_s13  ;;  %p1155_p0 = scmp.ge.s32.totalorder %s1389_s14, 1  ;;  %s1389_s14 = sphi %s1417_s14, %s14_s14   ;;  %s1385_s13 = sphi %s1415_s13, %s1725_s13   ;;  %s1381_s12 = sphi %s1413_s12, %s1724_s12  }
   0x3   : > { %p24_p1 = scmp.ge.s32.totalorder %s23_s15, 8  ;;  %p162_p2 = scmp.lt.s32.totalorder %s1389_s14, 9 }
   0x5   : > { %s1727_s15 = smov (%p24_p1, %s23_s15), 0  ;;  %p163_p3 = pnand %p1155_p0, %p162_p2 }
   0x6   : > { %p199_p4 = scmp.lt.s32.totalorder (!%p163_p3), %s1381_s12, 7  ;;  %p1159_p5 = scmp.ne.s32.totalorder (!%p163_p3), %s1381_s12, 0 }
   0x7   : > { %166 = sbr.rel (%p163_p3) target bundleno = 369 (0x171), region = 28 }
   0xe   : > { %s200_s16 = scalar_select %p199_p4, %s1381_s12, 7 }
   0xf   : > { %226 = sbr.rel (%p1159_p5) target bundleno = 33 (0x21), region = 32  ;;  %vm227_vm0 = vcmask (!%p1159_p5), 523264   ;;  %vm260_vm1 = vcmask (!%p1159_p5), 516096   ;;  %v1391_v0 = vmov (!%p1159_p5), 0.0  }
  0x10   : > { %s1316_s17 = smul.u32 96, %s200_s16  ;;  %s1203_s18 = sshll.u32 %s200_s16, 5  ;;  %228 = vst.msk [vmem:[#allocation2] sm:$0xff] (!%p1159_p5), %vm227_vm0, %v1391_v0  ;;  %229 = vst.msk [vmem:[#allocation2 + $0x8] sm:$0xff] (!%p1159_p5), %vm227_vm0, %v1391_v0 }
  0x11   : > { %s1434_s21 = scalar_lea.vmem %s1722_s2, %s1203_s18  ;;  %230 = vst.msk [vmem:[#allocation2 + $0x10] sm:$0xff] (!%p1159_p5), %vm227_vm0, %v1391_v0  ;;  %231 = vst.msk [vmem:[#allocation2 + $0x18] sm:$0xff] (!%p1159_p5), %vm227_vm0, %v1391_v0 }
  0x12   : > { %s1439_s24 = scalar_lea.vmem %s1720_s0, %s1316_s17  ;;  %232 = vst.msk [vmem:[#allocation2 + $0x20] sm:$0xff] (!%p1159_p5), %vm227_vm0, %v1391_v0  ;;  %233 = vst.msk [vmem:[#allocation2 + $0x28] sm:$0xff] (!%p1159_p5), %vm227_vm0, %v1391_v0 }
  0x13   : > { %234 = vst.msk [vmem:[#allocation2 + $0x30] sm:$0xff] (!%p1159_p5), %vm227_vm0, %v1391_v0  ;;  %235 = vst.msk [vmem:[#allocation2 + $0x38] sm:$0xff] (!%p1159_p5), %vm227_vm0, %v1391_v0 }
  0x14   : > { %236 = vst.msk [vmem:[#allocation2 + $0x40] sm:$0xff] (!%p1159_p5), %vm227_vm0, %v1391_v0  ;;  %237 = vst.msk [vmem:[#allocation2 + $0x48] sm:$0xff] (!%p1159_p5), %vm227_vm0, %v1391_v0 }
  0x15   : > { %238 = vst.msk [vmem:[#allocation2 + $0x50] sm:$0xff] (!%p1159_p5), %vm227_vm0, %v1391_v0  ;;  %239 = vst.msk [vmem:[#allocation2 + $0x58] sm:$0xff] (!%p1159_p5), %vm227_vm0, %v1391_v0 }
  0x16   : > { %240 = vst.msk [vmem:[#allocation2 + $0x60] sm:$0xff] %vm227_vm0, %v1391_v0  ;;  %241 = vst.msk [vmem:[#allocation2 + $0x68] sm:$0xff] %vm227_vm0, %v1391_v0 }
  0x17   : > { %242 = vst.msk [vmem:[#allocation2 + $0x70] sm:$0xff] %vm227_vm0, %v1391_v0  ;;  %243 = vst.msk [vmem:[#allocation2 + $0x78] sm:$0xff] %vm227_vm0, %v1391_v0 }
  0x18   : > { %244 = vst.msk [vmem:[#allocation3] sm:$0xff] %vm227_vm0, %v1391_v0  ;;  %245 = vst.msk [vmem:[#allocation3 + $0x8] sm:$0xff] %vm227_vm0, %v1391_v0 }
  0x19   : > { %246 = vst.msk [vmem:[#allocation3 + $0x10] sm:$0xff] %vm227_vm0, %v1391_v0  ;;  %247 = vst.msk [vmem:[#allocation3 + $0x18] sm:$0xff] %vm227_vm0, %v1391_v0 }
  0x1a   : > { %248 = vst.msk [vmem:[#allocation3 + $0x20] sm:$0xff] %vm227_vm0, %v1391_v0  ;;  %249 = vst.msk [vmem:[#allocation3 + $0x28] sm:$0xff] %vm227_vm0, %v1391_v0 }
  0x1b   : > { %250 = vst.msk [vmem:[#allocation3 + $0x30] sm:$0xff] %vm227_vm0, %v1391_v0  ;;  %251 = vst.msk [vmem:[#allocation3 + $0x38] sm:$0xff] %vm227_vm0, %v1391_v0 }
  0x1c   : > { %252 = vst.msk [vmem:[#allocation3 + $0x40] sm:$0xff] %vm227_vm0, %v1391_v0  ;;  %253 = vst.msk [vmem:[#allocation3 + $0x48] sm:$0xff] %vm227_vm0, %v1391_v0 }
  0x1d   : > { %254 = vst.msk [vmem:[#allocation3 + $0x50] sm:$0xff] %vm227_vm0, %v1391_v0  ;;  %255 = vst.msk [vmem:[#allocation3 + $0x58] sm:$0xff] %vm227_vm0, %v1391_v0 }
  0x1e   : > { %256 = vst.msk [vmem:[#allocation3 + $0x60] sm:$0xff] %vm227_vm0, %v1391_v0  ;;  %257 = vst.msk [vmem:[#allocation3 + $0x68] sm:$0xff] %vm227_vm0, %v1391_v0 }
  0x1f   : > { %258 = vst.msk [vmem:[#allocation3 + $0x70] sm:$0xff] %vm227_vm0, %v1391_v0  ;;  %259 = vst.msk [vmem:[#allocation3 + $0x78] sm:$0xff] %vm227_vm0, %v1391_v0 }
  0x20   : > { %261 = vst.msk [vmem:[%s1723_s3] sm:$0x1] %vm260_vm1, %v1391_v0 }
  0x21 PF: > { %v1343_v1 = vld [vmem:[%s1721_s1 + $0x40] sm:$0xff]   ;;  %v1346_v4 = vld [vmem:[%s1721_s1 + $0x48] sm:$0xff]   ;;  %v1349_v7 = vld [vmem:[%s1721_s1 + $0x50] sm:$0xff]   ;;  %vm844_vm2 = vcmask 523264   ;;  %vm981_vm8 = vcmask 517120  }
  0x22   : > { %v1344_v2 = vld [vmem:[%s1721_s1] sm:$0xff]   ;;  %1204 = vmatprep.subr.bf16.mxu0 %v1343_v1  ;;  %v1347_v5 = vld [vmem:[%s1721_s1 + $0x8] sm:$0xff]   ;;  %v1350_v8 = vld [vmem:[%s1721_s1 + $0x10] sm:$0xff]  }
  0x23   : > { %v1345_v3 = vld [vmem:[%s1721_s1 + $0x80] sm:$0xff]   ;;  %1205 = vmatpush3.bf16.msra.mxu0 %v1344_v2  ;;  %v1348_v6 = vld [vmem:[%s1721_s1 + $0x88] sm:$0xff]   ;;  %v1351_v9 = vld [vmem:[%s1721_s1 + $0x90] sm:$0xff]  }
  0x24   : > { %1284 = vmatprep.subr.bf16.mxu1 %v1345_v3  ;;  %1206 = vmatprep.subr.bf16.mxu0 %v1346_v4  ;;  %v1352_v10 = vld [vmem:[%s1721_s1 + $0x58] sm:$0xff]   ;;  %v1355_v13 = vld [vmem:[%s1721_s1 + $0x60] sm:$0xff]   ;;  %v1358_v16 = vld [vmem:[%s1721_s1 + $0x68] sm:$0xff]  }
  0x25   : > { %1285 = vmatpush3.bf16.msra.mxu1 %v1345_v3  ;;  %v1353_v11 = vld [vmem:[%s1721_s1 + $0x18] sm:$0xff]   ;;  %v1357_v14 = vld [vmem:[%s1721_s1 + $0xa0] sm:$0xff]   ;;  %v1360_v17 = vld [vmem:[%s1721_s1 + $0xa8] sm:$0xff]  }
  0x26   : > { %1286 = vmatprep.subr.bf16.mxu1 %v1348_v6  ;;  %v1354_v12 = vld [vmem:[%s1721_s1 + $0x98] sm:$0xff]   ;;  %v1356_v15 = vld [vmem:[%s1721_s1 + $0x20] sm:$0xff]   ;;  %v1359_v18 = vld [vmem:[%s1721_s1 + $0x28] sm:$0xff]  }
  0x27   : > { %1207 = vmatpush3.bf16.msra.mxu0 %v1347_v5  ;;  %v1361_v19 = vld [vmem:[%s1721_s1 + $0x70] sm:$0xff]   ;;  %v1364_v22 = vld [vmem:[%s1721_s1 + $0x78] sm:$0xff]   ;;  %v263_v23 = vld [vmem:[%s1439_s24 + $0x8] sm:$0xff] }
  0x28   : > { %1208 = vmatprep.subr.bf16.mxu0 %v1349_v7  ;;  %v1363_v20 = vld [vmem:[%s1721_s1 + $0xb0] sm:$0xff]   ;;  %v275_v25 = vunpack.c.l.s8.bf16 %v263_v23  ;;  %v1366_v27 = vld [vmem:[%s1721_s1 + $0xb8] sm:$0xff]   ;;  %v262_v29 = vld [vmem:[%s1439_s24] sm:$0xff]  ;;  %v278_v32 = vunpack.c.h.s8.bf16 %v263_v23 }
  0x29   : > { %1287 = vmatpush3.bf16.msra.mxu1 %v1348_v6  ;;  %v1362_v21 = vld [vmem:[%s1721_s1 + $0x30] sm:$0xff]   ;;  %v1365_v28 = vld [vmem:[%s1721_s1 + $0x38] sm:$0xff]   ;;  %v274_v30 = vunpack.c.l.s8.bf16 %v262_v29  ;;  %v267_v31 = vld [vmem:[%s1439_s24 + $0x28] sm:$0xff]  ;;  %v277_v36 = vunpack.c.h.s8.bf16 %v262_v29 }
  0x2a   : > { %1288 = vmatprep.subr.bf16.mxu1 %v1351_v9  ;;  %v264_v24 = vld [vmem:[%s1439_s24 + $0x10] sm:$0xff]  ;;  %522 = vmatprep.mubr.bf16.mxu0 %v275_v25  ;;  %v282_v34 = vunpack.c.l.s8.bf16 %v267_v31  ;;  %v266_v35 = vld [vmem:[%s1439_s24 + $0x20] sm:$0xff]  ;;  %v285_v39 = vunpack.c.h.s8.bf16 %v267_v31  ;;  %v265_v41 = vld [vmem:[%s1439_s24 + $0x18] sm:$0xff] }
  0x2b   : > { %1209 = vmatpush3.bf16.msra.mxu0 %v1350_v8  ;;  %v276_v26 = vunpack.c.l.s8.bf16 %v264_v24  ;;  %v279_v33 = vunpack.c.h.s8.bf16 %v264_v24  ;;  %v270_v37 = vld [vmem:[%s1439_s24 + $0x40] sm:$0xff]  ;;  %v281_v38 = vunpack.c.l.s8.bf16 %v266_v35  ;;  %v280_v42 = vunpack.c.l.s8.bf16 %v265_v41  ;;  %v273_v43 = vld [vmem:[%s1439_s24 + $0x58] sm:$0xff]  ;;  %v268_v51 = vld [vmem:[%s1439_s24 + $0x30] sm:$0xff] }
  0x2c   : > { %1210 = vmatprep.subr.bf16.mxu0 %v1352_v10  ;;  %v288_v40 = vunpack.c.l.s8.bf16 %v270_v37  ;;  %v284_v44 = vunpack.c.h.s8.bf16 %v266_v35  ;;  %v291_v45 = vunpack.c.h.s8.bf16 %v270_v37  ;;  %v294_v46 = vunpack.c.l.s8.bf16 %v273_v43  ;;  %v269_v47 = vld [vmem:[%s1439_s24 + $0x38] sm:$0xff]  ;;  %v272_v54 = vld [vmem:[%s1439_s24 + $0x50] sm:$0xff]  ;;  %v271_v57 = vld [vmem:[%s1439_s24 + $0x48] sm:$0xff] }
  0x2d   : > { %1289 = vmatpush3.bf16.msra.mxu1 %v1351_v9  ;;  %1300 = vmatprep.mubr.bf16.mxu1 %v276_v26  ;;  %v283_v48 = vunpack.c.h.s8.bf16 %v265_v41  ;;  %v287_v49 = vunpack.c.l.s8.bf16 %v269_v47  ;;  %v297_v50 = vunpack.c.h.s8.bf16 %v273_v43  ;;  %v286_v52 = vunpack.c.l.s8.bf16 %v268_v51  ;;  %v684_v61 = vld [vmem:[#allocation2] sm:$0xff]  ;;  %v685_v1 = vld [vmem:[#allocation2 + $0x8] sm:$0xff]  ;;  %v687_v24 = vld [vmem:[#allocation2 + $0x18] sm:$0xff] }
  0x2e   : > { %1290 = vmatprep.subr.bf16.mxu1 %v1354_v12  ;;  %v290_v53 = vunpack.c.h.s8.bf16 %v269_v47  ;;  %v289_v55 = vunpack.c.h.s8.bf16 %v268_v51  ;;  %v293_v56 = vunpack.c.l.s8.bf16 %v272_v54  ;;  %v292_v58 = vunpack.c.l.s8.bf16 %v271_v57  ;;  %v732_v0 = vld [vmem:[#allocation3] sm:$0xff]  ;;  %v733_v8 = vld [vmem:[#allocation3 + $0x8] sm:$0xff]  ;;  %v735_v37 = vld [vmem:[#allocation3 + $0x18] sm:$0xff] }
  0x2f   : > { %1211 = vmatpush3.bf16.msra.mxu0 %v1353_v11  ;;  %v296_v59 = vunpack.c.h.s8.bf16 %v272_v54  ;;  %v295_v60 = vunpack.c.h.s8.bf16 %v271_v57  ;;  %v700_v5 = vmul.f32 0.8187308, %v684_v61  ;;  %v748_v11 = vmul.f32 0.95122945, %v732_v0 }
  0x30   : > { %1212 = vmatprep.subr.bf16.mxu0 %v1355_v13  ;;  %v701_v13 = vmul.f32 0.8187308, %v685_v1  ;;  %v751_v51 = vmul.f32 0.95122945, %v735_v37 }
  0x31   : > { %1291 = vmatpush3.bf16.msra.mxu1 %v1354_v12 }
  0x32   : > { %1292 = vmatprep.subr.bf16.mxu1 %v1357_v14 }
  0x33   : > { %1213 = vmatpush3.bf16.msra.mxu0 %v1356_v15 }
  0x34   : > { %1214 = vmatprep.subr.bf16.mxu0 %v1358_v16 }
  0x35   : > { %1293 = vmatpush3.bf16.msra.mxu1 %v1357_v14 }
  0x36   : > { %1294 = vmatprep.subr.bf16.mxu1 %v1360_v17 }
  0x37   : > { %1215 = vmatpush3.bf16.msra.mxu0 %v1359_v18  ;;  %v686_v18 = vld [vmem:[#allocation2 + $0x10] sm:$0xff] }
  0x38   : > { %1216 = vmatprep.subr.bf16.mxu0 %v1361_v19 }
  0x39   : > { %1295 = vmatpush3.bf16.msra.mxu1 %v1360_v17  ;;  %v749_v17 = vmul.f32 0.95122945, %v733_v8 }
  0x3a   : > { %1296 = vmatprep.subr.bf16.mxu1 %v1363_v20 }
  0x3b   : > { %1217 = vmatpush3.bf16.msra.mxu0 %v1362_v21 }
  0x3c   : > { %1218 = vmatprep.subr.bf16.mxu0 %v1364_v22  ;;  %v734_v22 = vld [vmem:[#allocation3 + $0x10] sm:$0xff] }
  0x3d   : > { %1297 = vmatpush3.bf16.msra.mxu1 %v1363_v20 }
  0x3e   : > { %1298 = vmatprep.subr.bf16.mxu1 %v1366_v27 }
  0x3f   : > { %1219 = vmatpush3.bf16.msra.mxu0 %v1365_v28 }
  0x41   : > { %1299 = vmatpush3.bf16.msra.mxu1 %v1366_v27  ;;  %v702_v27 = vmul.f32 0.8187308, %v686_v18 }
  0x42   : > { %523 = vmatmul.mubr.bf16.vlgmr.msra.gmra.mrb[0].mxu0 %v274_v30  ;;  %v1392_v30 = vmov 0.0  }
  0x43   : > { %530 = vmatprep.mubr.bf16.mxu0 %v278_v32  ;;  %v750_v32 = vmul.f32 0.95122945, %v734_v22 }
  0x44   : > { %1301 = vmatmul.mubr.bf16.vlgmr.msra.gmra.mrb[0].mxu1 %v279_v33 }
  0x45   : > { %1304 = vmatprep.mubr.bf16.mxu1 %v282_v34 }
  0x4a   : > { %531 = vmatmul.mubr.bf16.gmra.mrb[4].mxu0 %v277_v36  ;;  %v703_v36 = vmul.f32 0.8187308, %v687_v24 }
  0x4b   : > { %538 = vmatprep.mubr.bf16.mxu0 %v281_v38 }
  0x4c   : > { %1305 = vmatmul.mubr.bf16.gmra.mrb[4].mxu1 %v285_v39 }
  0x4d   : > { %1308 = vmatprep.mubr.bf16.mxu1 %v288_v40 }
  0x52   : > { %539 = vmatmul.mubr.bf16.gmra.mrb[8].mxu0 %v280_v42 }
  0x53   : > { %546 = vmatprep.mubr.bf16.mxu0 %v284_v44 }
  0x54   : > { %1309 = vmatmul.mubr.bf16.gmra.mrb[8].mxu1 %v291_v45 }
  0x55   : > { %1312 = vmatprep.mubr.bf16.mxu1 %v294_v46 }
  0x5a   : > { %547 = vmatmul.mubr.bf16.gmra.mrb[12].mxu0 %v283_v48 }
  0x5b   : > { %554 = vmatprep.mubr.bf16.mxu0 %v287_v49 }
  0x5c   : > { %1313 = vmatmul.mubr.bf16.gmra.mrb[12].mxu1 %v297_v50 }
  0x62   : > { %555 = vmatmul.mubr.bf16.gmra.mrb[16].mxu0 %v286_v52  ;;  %v688_v52 = vld [vmem:[#allocation2 + $0x20] sm:$0xff] }
  0x63   : > { %562 = vmatprep.mubr.bf16.mxu0 %v290_v53 }
  0x6a   : > { %563 = vmatmul.mubr.bf16.gmra.mrb[20].mxu0 %v289_v55  ;;  %v736_v55 = vld [vmem:[#allocation3 + $0x20] sm:$0xff] }
  0x6b   : > { %570 = vmatprep.mubr.bf16.mxu0 %v293_v56 }
  0x72   : > { %571 = vmatmul.mubr.bf16.gmra.mrb[24].mxu0 %v292_v58 }
  0x73   : > { %578 = vmatprep.mubr.bf16.mxu0 %v296_v59  ;;  %v689_v59 = vld [vmem:[#allocation2 + $0x28] sm:$0xff] }
  0x74   : > { %v705_v8 = vmul.f32 0.8187308, %v689_v59 }
  0x7a   : > { %579 = vmatmul.mubr.bf16.gmra.mrb[28].mxu0 %v295_v60 }
 0x115   : > { %v1220_v62 = vpop.f32.mrb[0].mxu0 }
 0x116   : > { %v1221_v63 = vpop.f32.mrb[1].mxu0 }
 0x117   : > { %v1222_v2 = vadd.f32 %v1221_v63, %v1220_v62  ;;  %v1223_v3 = vpop.f32.mrb[2].mxu0  ;;  %v1302_v4 = vpop.f32.mrb[0].mxu1  ;;  %v704_v62 = vmul.f32 0.8187308, %v688_v52  ;;  %v737_v63 = vld [vmem:[#allocation3 + $0x28] sm:$0xff] }
 0x118   : > { %v1224_v6 = vpop.f32.mrb[3].mxu0  ;;  %v621_v7 = vpop.f32.mrb[1].mxu1 }
 0x119   : > { %v1225_v9 = vadd.f32 %v1224_v6, %v1223_v3  ;;  %v622_v10 = vadd.f32 %v1222_v2, %v621_v7  ;;  %v1303_v12 = vpop.f32.mrb[2].mxu1  ;;  %v752_v3 = vmul.f32 0.95122945, %v736_v55 }
 0x11a   : > { %v624_v14 = vpop.f32.mrb[3].mxu1 }
 0x11b   : > { %v716_v15 = vadd.f32 %v700_v5, %v622_v10  ;;  %v625_v16 = vadd.f32 %v1225_v9, %v624_v14 }
 0x11d   : > { %v764_v19 = vadd.f32 %v748_v11, %v716_v15  ;;  %861 = vst.msk [vmem:[#allocation2] sm:$0xff] %vm844_vm2, %v716_v15  ;;  %v717_v20 = vadd.f32 %v701_v13, %v625_v16  ;;  %v1226_v21 = vpop.f32.mrb[4].mxu0  ;;  %v690_v13 = vld [vmem:[#allocation2 + $0x30] sm:$0xff] }
 0x11e   : > { %v1227_v23 = vpop.f32.mrb[5].mxu0 }
 0x11f   : > { %vm780_vm3 = vcmp.ge.f32.partialorder %v764_v19, 1.0  ;;  %v765_v25 = vadd.f32 %v749_v17, %v717_v20  ;;  %862 = vst.msk [vmem:[#allocation2 + $0x8] sm:$0xff] %vm844_vm2, %v717_v20  ;;  %v1228_v26 = vadd.f32 %v1227_v23, %v1226_v21  ;;  %v1229_v28 = vpop.f32.mrb[6].mxu0  ;;  %v1563_v29 = vpop.f32.mrb[4].mxu1  ;;  %v691_v20 = vld [vmem:[#allocation2 + $0x38] sm:$0xff] }
 0x120   : > { %v1184_v31 = vsel %vm780_vm3, 1.0, %v1392_v30  ;;  %v1230_v33 = vpop.f32.mrb[7].mxu0  ;;  %v637_v34 = vpop.f32.mrb[5].mxu1  ;;  %v1590_v37 = vmul.f32 0.8187308, %v691_v20 }
 0x121   : > { %v828_v35 = vsub.f32 %v764_v19, %v1184_v31  ;;  %vm781_vm4 = vcmp.ge.f32.partialorder %v765_v25, 1.0  ;;  %v1566_v38 = vpop.f32.mrb[6].mxu1  ;;  %v877_v39 = vtrunc.f32 %v1184_v31  ;;  %v630_v41 = vadd.f32 %v1302_v4, %v1228_v26  ;;  %v738_v19 = vld [vmem:[#allocation3 + $0x30] sm:$0xff] }
 0x122   : > { %v1185_v40 = vsel %vm781_vm4, 1.0, %v1392_v30  ;;  %v1231_v42 = vadd.f32 %v1230_v33, %v1229_v28  ;;  %v640_v43 = vpop.f32.mrb[7].mxu1  ;;  %v999_v44 = vsel %vm844_vm2, %v1184_v31, 0.0  ;;  %v692_v33 = vld [vmem:[#allocation2 + $0x40] sm:$0xff] }
 0x123   : > { %845 = vst.msk [vmem:[#allocation3] sm:$0xff] %vm844_vm2, %v828_v35  ;;  %v829_v45 = vsub.f32 %v765_v25, %v1185_v40  ;;  %v878_v46 = vtrunc.f32 %v1185_v40  ;;  %v1000_v47 = vsel %vm844_vm2, %v1185_v40, 0.0  ;;  %v718_v49 = vadd.f32 %v702_v27, %v630_v41  ;;  %v739_v25 = vld [vmem:[#allocation3 + $0x38] sm:$0xff] }
 0x124   : > { %v1001_v48 = vadd.f32 %v1000_v47, %v999_v44  ;;  %v633_v50 = vadd.f32 %v1303_v12, %v1231_v42  ;;  %v753_v12 = vmul.f32 0.95122945, %v737_v63  ;;  %v1593_v42 = vmul.f32 0.95122945, %v739_v25 }
 0x125   : > { %846 = vst.msk [vmem:[#allocation3 + $0x8] sm:$0xff] %vm844_vm2, %v829_v45  ;;  %v893_v53 = vpack.c.f32.eXmY %v877_v39, %v878_v46, 312  ;;  %v1232_v54 = vpop.f32.mrb[8].mxu0  ;;  %v766_v56 = vadd.f32 %v750_v32, %v718_v49  ;;  %863 = vst.msk [vmem:[#allocation2 + $0x10] sm:$0xff] %vm844_vm2, %v718_v49 }
 0x126   : > { %v719_v57 = vadd.f32 %v703_v36, %v633_v50  ;;  %v1233_v58 = vpop.f32.mrb[9].mxu0  ;;  %v706_v32 = vmul.f32 0.8187308, %v690_v13  ;;  %v754_v36 = vmul.f32 0.95122945, %v738_v19 }
 0x127   : > { %v1234_v60 = vadd.f32 %v1233_v58, %v1232_v54  ;;  %v1235_v61 = vpop.f32.mrb[10].mxu0  ;;  %v1574_v0 = vpop.f32.mrb[8].mxu1  ;;  %vm782_vm5 = vcmp.ge.f32.partialorder %v766_v56, 1.0  ;;  %v1598_v47 = vmul.f32 0.8187308, %v692_v33 }
 0x128   : > { %v767_v1 = vadd.f32 %v751_v51, %v719_v57  ;;  %864 = vst.msk [vmem:[#allocation2 + $0x18] sm:$0xff] %vm844_vm2, %v719_v57  ;;  %v1236_v2 = vpop.f32.mrb[11].mxu0  ;;  %v1577_v4 = vpop.f32.mrb[9].mxu1  ;;  %v1186_v5 = vsel %vm782_vm5, 1.0, %v1392_v30 }
 0x129   : > { %v1237_v6 = vadd.f32 %v1236_v2, %v1235_v61  ;;  %v638_v7 = vadd.f32 %v1234_v60, %v637_v34  ;;  %v1580_v9 = vpop.f32.mrb[10].mxu1  ;;  %v830_v10 = vsub.f32 %v766_v56, %v1186_v5  ;;  %v1002_v11 = vsel %vm844_vm2, %v1186_v5, 0.0 }
 0x12a   : > { %vm783_vm6 = vcmp.ge.f32.partialorder %v767_v1, 1.0  ;;  %v1583_v14 = vpop.f32.mrb[11].mxu1  ;;  %v1003_v15 = vadd.f32 %v1002_v11, %v1001_v48  ;;  %v879_v21 = vtrunc.f32 %v1186_v5  ;;  %v693_v11 = vld [vmem:[#allocation2 + $0x48] sm:$0xff] }
 0x12b   : > { %v1187_v16 = vsel %vm783_vm6, 1.0, %v1392_v30  ;;  %v720_v17 = vadd.f32 %v704_v62, %v638_v7  ;;  %v641_v18 = vadd.f32 %v1237_v6, %v640_v43  ;;  %847 = vst.msk [vmem:[#allocation3 + $0x10] sm:$0xff] %vm844_vm2, %v830_v10  ;;  %v740_v10 = vld [vmem:[#allocation3 + $0x40] sm:$0xff] }
 0x12c   : > { %v831_v22 = vsub.f32 %v767_v1, %v1187_v16  ;;  %v880_v23 = vtrunc.f32 %v1187_v16  ;;  %v1004_v24 = vsel %vm844_vm2, %v1187_v16, 0.0 }
 0x12d   : > { %v768_v26 = vadd.f32 %v752_v3, %v720_v17  ;;  %865 = vst.msk [vmem:[#allocation2 + $0x20] sm:$0xff] %vm844_vm2, %v720_v17  ;;  %v1005_v27 = vadd.f32 %v1004_v24, %v1003_v15  ;;  %v721_v28 = vadd.f32 %v705_v8, %v641_v18  ;;  %v1238_v31 = vpop.f32.mrb[12].mxu0  ;;  %v741_v17 = vld [vmem:[#allocation3 + $0x48] sm:$0xff]  ;;  %v742_v24 = vld [vmem:[#allocation3 + $0x50] sm:$0xff] }
 0x12e   : > { %848 = vst.msk [vmem:[#allocation3 + $0x18] sm:$0xff] %vm844_vm2, %v831_v22  ;;  %v897_v34 = vpack.c.f32.eXmY %v879_v21, %v880_v23, 312  ;;  %v1239_v35 = vpop.f32.mrb[13].mxu0  ;;  %v694_v23 = vld [vmem:[#allocation2 + $0x50] sm:$0xff]  ;;  %v757_v33 = vmul.f32 0.95122945, %v741_v17 }
 0x12f   : > { %vm784_vm7 = vcmp.ge.f32.partialorder %v768_v26, 1.0  ;;  %v769_v39 = vadd.f32 %v753_v12, %v721_v28  ;;  %866 = vst.msk [vmem:[#allocation2 + $0x28] sm:$0xff] %vm844_vm2, %v721_v28  ;;  %v1240_v40 = vadd.f32 %v1239_v35, %v1238_v31  ;;  %v1241_v41 = vpop.f32.mrb[14].mxu0  ;;  %v1595_v43 = vpop.f32.mrb[12].mxu1  ;;  %v709_v28 = vmul.f32 0.8187308, %v693_v11 }
 0x130   : > { %v901_v44 = vpack.c.b8 %v897_v34, %v893_v53  ;;  %v1188_v45 = vsel %vm784_vm7, 1.0, %v1392_v30  ;;  %v1242_v46 = vpop.f32.mrb[15].mxu0  ;;  %v1600_v48 = vpop.f32.mrb[13].mxu1  ;;  %v695_v31 = vld [vmem:[#allocation2 + $0x58] sm:$0xff] }
 0x131   : > { %v832_v49 = vsub.f32 %v768_v26, %v1188_v45  ;;  %v881_v50 = vtrunc.f32 %v1188_v45  ;;  %v1006_v51 = vsel %vm844_vm2, %v1188_v45, 0.0  ;;  %vm785_vm9 = vcmp.ge.f32.partialorder %v769_v39, 1.0  ;;  %v1603_v52 = vpop.f32.mrb[14].mxu1  ;;  %v743_v34 = vld [vmem:[#allocation3 + $0x58] sm:$0xff] }
 0x132   : > { %v933_v54 = vunpack.c.0.s8 %v901_v44  ;;  %v934_v55 = vunpack.c.1.s8 %v901_v44  ;;  %v935_v56 = vunpack.c.2.s8 %v901_v44  ;;  %v936_v57 = vunpack.c.3.s8 %v901_v44  ;;  %v1605_v53 = vpop.f32.mrb[15].mxu1 }
 0x133   : > { %849 = vst.msk [vmem:[#allocation3 + $0x20] sm:$0xff] %vm844_vm2, %v832_v49  ;;  %v1007_v58 = vadd.f32 %v1006_v51, %v1005_v27  ;;  %v1189_v59 = vsel %vm785_vm9, 1.0, %v1392_v30  ;;  %v646_v60 = vadd.f32 %v1563_v29, %v1240_v40  ;;  %v1243_v61 = vadd.f32 %v1242_v46, %v1241_v41  ;;  %v696_v41 = vld [vmem:[#allocation2 + $0x60] sm:$0xff] }
 0x134   : > { %v949_v62 = vpack.c.b16 %v933_v54, %v933_v54  ;;  %v951_v63 = vpack.c.b16 %v934_v55, %v934_v55  ;;  %v953_v1 = vpack.c.b16 %v935_v56, %v935_v56  ;;  %v955_v2 = vpack.c.b16 %v936_v57, %v936_v57  ;;  %v744_v56 = vld [vmem:[#allocation3 + $0x60] sm:$0xff] }
 0x135   : > { %v833_v3 = vsub.f32 %v769_v39, %v1189_v59  ;;  %v882_v5 = vtrunc.f32 %v1189_v59  ;;  %v1008_v6 = vsel %vm844_vm2, %v1189_v59, 0.0  ;;  %v722_v7 = vadd.f32 %v706_v32, %v646_v60  ;;  %v1244_v8 = vpop.f32.mrb[16].mxu0 }
 0x136   : > { %v950_v12 = vpack.c.b8 %v949_v62, %v949_v62  ;;  %v952_v13 = vpack.c.b8 %v951_v63, %v951_v63  ;;  %v954_v15 = vpack.c.b8 %v953_v1, %v953_v1  ;;  %v956_v29 = vpack.c.b8 %v955_v2, %v955_v2  ;;  %v1245_v16 = vpop.f32.mrb[17].mxu0 }
 0x137   : > { %850 = vst.msk [vmem:[#allocation3 + $0x28] sm:$0xff] %vm844_vm2, %v833_v3  ;;  %v1612_v18 = vpack.c.f32.eXmY %v881_v50, %v882_v5, 312  ;;  %v1009_v19 = vadd.f32 %v1008_v6, %v1007_v58  ;;  %v770_v20 = vadd.f32 %v754_v36, %v722_v7  ;;  %867 = vst.msk [vmem:[#allocation2 + $0x30] sm:$0xff] %vm844_vm2, %v722_v7  ;;  %v1247_v22 = vpop.f32.mrb[18].mxu0 }
 0x138   : > { %v649_v21 = vadd.f32 %v1566_v38, %v1243_v61  ;;  %982 = vst.msk [vmem:[%s1434_s21] sm:$0x3] %vm981_vm8, %v950_v12  ;;  %983 = vst.msk [vmem:[%s1434_s21 + $0x2] sm:$0x3] %vm981_vm8, %v952_v13  ;;  %v1246_v25 = vadd.f32 %v1245_v16, %v1244_v8  ;;  %v1248_v26 = vpop.f32.mrb[19].mxu0 }
 0x139   : > { %984 = vst.msk [vmem:[%s1434_s21 + $0x4] sm:$0x3] %vm981_vm8, %v954_v15  ;;  %985 = vst.msk [vmem:[%s1434_s21 + $0x6] sm:$0x3] %vm981_vm8, %v956_v29  ;;  %v756_v27 = vmul.f32 0.95122945, %v740_v10  ;;  %v1249_v38 = vadd.f32 %v1248_v26, %v1247_v22 }
 0x13a   : > { %vm786_vm10 = vcmp.ge.f32.partialorder %v770_v20, 1.0  ;;  %v723_v32 = vadd.f32 %v1590_v37, %v649_v21  ;;  %v654_v36 = vadd.f32 %v1246_v25, %v1577_v4  ;;  %v710_v39 = vmul.f32 0.8187308, %v694_v23 }
 0x13b   : > { %v1190_v35 = vsel %vm786_vm10, 1.0, %v1392_v30  ;;  %v758_v40 = vmul.f32 0.95122945, %v742_v24  ;;  %v711_v49 = vmul.f32 0.8187308, %v695_v31  ;;  %v657_v51 = vadd.f32 %v1249_v38, %v1583_v14 }
 0x13c   : > { %v834_v44 = vsub.f32 %v770_v20, %v1190_v35  ;;  %v1010_v45 = vsel %vm844_vm2, %v1190_v35, 0.0  ;;  %v771_v46 = vadd.f32 %v1593_v42, %v723_v32  ;;  %868 = vst.msk [vmem:[#allocation2 + $0x38] sm:$0xff] %vm844_vm2, %v723_v32  ;;  %v724_v37 = vadd.f32 %v1598_v47, %v654_v36 }
 0x13d   : > { %v1011_v50 = vadd.f32 %v1010_v45, %v1009_v19  ;;  %v759_v54 = vmul.f32 0.95122945, %v743_v34  ;;  %v1250_v4 = vpop.f32.mrb[20].mxu0  ;;  %v1633_v55 = vmul.f32 0.8187308, %v696_v41  ;;  %v883_v57 = vtrunc.f32 %v1190_v35 }
 0x13e   : > { %851 = vst.msk [vmem:[#allocation3 + $0x30] sm:$0xff] %vm844_vm2, %v834_v44  ;;  %vm787_vm11 = vcmp.ge.f32.partialorder %v771_v46, 1.0  ;;  %v772_v42 = vadd.f32 %v756_v27, %v724_v37  ;;  %869 = vst.msk [vmem:[#allocation2 + $0x40] sm:$0xff] %vm844_vm2, %v724_v37  ;;  %v725_v59 = vadd.f32 %v709_v28, %v657_v51  ;;  %v1251_v60 = vpop.f32.mrb[21].mxu0  ;;  %v1639_v5 = vmul.f32 0.95122945, %v744_v56 }
 0x13f   : > { %v1191_v58 = vsel %vm787_vm11, 1.0, %v1392_v30  ;;  %v1252_v62 = vadd.f32 %v1251_v60, %v1250_v4  ;;  %v1253_v63 = vpop.f32.mrb[22].mxu0  ;;  %v745_v56 = vld [vmem:[#allocation3 + $0x68] sm:$0xff] }
 0x140   : > { %v835_v61 = vsub.f32 %v771_v46, %v1191_v58  ;;  %v884_v47 = vtrunc.f32 %v1191_v58  ;;  %v1012_v14 = vsel %vm844_vm2, %v1191_v58, 0.0  ;;  %vm788_vm12 = vcmp.ge.f32.partialorder %v772_v42, 1.0  ;;  %870 = vst.msk [vmem:[#allocation2 + $0x48] sm:$0xff] %vm844_vm2, %v725_v59  ;;  %v1254_v3 = vpop.f32.mrb[23].mxu0 }
 0x141   : > { %v1013_v1 = vadd.f32 %v1012_v14, %v1011_v50  ;;  %v773_v2 = vadd.f32 %v757_v33, %v725_v59  ;;  %v1192_v7 = vsel %vm788_vm12, 1.0, %v1392_v30  ;;  %v662_v8 = vadd.f32 %v1574_v0, %v1252_v62  ;;  %v698_v59 = vld [vmem:[#allocation2 + $0x70] sm:$0xff] }
 0x142   : > { %852 = vst.msk [vmem:[#allocation3 + $0x38] sm:$0xff] %vm844_vm2, %v835_v61  ;;  %v907_v6 = vpack.c.f32.eXmY %v883_v57, %v884_v47, 312  ;;  %v1255_v10 = vadd.f32 %v1254_v3, %v1253_v63  ;;  %v836_v11 = vsub.f32 %v772_v42, %v1192_v7  ;;  %v885_v12 = vtrunc.f32 %v1192_v7  ;;  %v746_v14 = vld [vmem:[#allocation3 + $0x70] sm:$0xff]  ;;  %v699_v3 = vld [vmem:[#allocation2 + $0x78] sm:$0xff] }
 0x143   : > { %v1014_v13 = vsel %vm844_vm2, %v1192_v7, 0.0  ;;  %vm789_vm13 = vcmp.ge.f32.partialorder %v773_v2, 1.0  ;;  %v726_v17 = vadd.f32 %v710_v39, %v662_v8 }
 0x144   : > { %v911_v15 = vpack.c.b8 %v907_v6, %v1612_v18  ;;  %v1015_v29 = vadd.f32 %v1014_v13, %v1013_v1  ;;  %v1193_v16 = vsel %vm789_vm13, 1.0, %v1392_v30  ;;  %853 = vst.msk [vmem:[#allocation3 + $0x40] sm:$0xff] %vm844_vm2, %v836_v11  ;;  %v665_v0 = vadd.f32 %v1580_v9, %v1255_v10  ;;  %v697_v18 = vld [vmem:[#allocation2 + $0x68] sm:$0xff]  ;;  %v747_v6 = vld [vmem:[#allocation3 + $0x78] sm:$0xff] }
 0x145   : > { %v837_v19 = vsub.f32 %v773_v2, %v1193_v16  ;;  %v886_v20 = vtrunc.f32 %v1193_v16  ;;  %v1016_v21 = vsel %vm844_vm2, %v1193_v16, 0.0  ;;  %871 = vst.msk [vmem:[#allocation2 + $0x50] sm:$0xff] %vm844_vm2, %v726_v17  ;;  %v1256_v26 = vpop.f32.mrb[24].mxu0  ;;  %v774_v31 = vadd.f32 %v758_v40, %v726_v17 }
 0x146   : > { %v937_v22 = vunpack.c.0.s8 %v911_v15  ;;  %v938_v23 = vunpack.c.1.s8 %v911_v15  ;;  %v939_v24 = vunpack.c.2.s8 %v911_v15  ;;  %v940_v25 = vunpack.c.3.s8 %v911_v15  ;;  %v1257_v38 = vpop.f32.mrb[25].mxu0 }
 0x147   : > { %854 = vst.msk [vmem:[#allocation3 + $0x48] sm:$0xff] %vm844_vm2, %v837_v19  ;;  %v913_v27 = vpack.c.f32.eXmY %v885_v12, %v886_v20, 312  ;;  %v1017_v28 = vadd.f32 %v1016_v21, %v1015_v29  ;;  %v727_v32 = vadd.f32 %v711_v49, %v665_v0  ;;  %v1259_v9 = vpop.f32.mrb[26].mxu0  ;;  %vm790_vm14 = vcmp.ge.f32.partialorder %v774_v31, 1.0 }
 0x148   : > { %v957_v33 = vpack.c.b16 %v937_v22, %v937_v22  ;;  %v959_v34 = vpack.c.b16 %v938_v23, %v938_v23  ;;  %v961_v35 = vpack.c.b16 %v939_v24, %v939_v24  ;;  %v963_v36 = vpack.c.b16 %v940_v25, %v940_v25  ;;  %v1260_v44 = vpop.f32.mrb[27].mxu0 }
 0x149   : > { %v775_v39 = vadd.f32 %v759_v54, %v727_v32  ;;  %872 = vst.msk [vmem:[#allocation2 + $0x58] sm:$0xff] %vm844_vm2, %v727_v32  ;;  %v1258_v41 = vadd.f32 %v1257_v38, %v1256_v26  ;;  %v713_v45 = vmul.f32 0.8187308, %v697_v18  ;;  %v1194_v37 = vsel %vm790_vm14, 1.0, %v1392_v30 }
 0x14a   : > { %v958_v46 = vpack.c.b8 %v957_v33, %v957_v33  ;;  %v960_v40 = vpack.c.b8 %v959_v34, %v959_v34  ;;  %v962_v49 = vpack.c.b8 %v961_v35, %v961_v35  ;;  %v964_v50 = vpack.c.b8 %v963_v36, %v963_v36 }
 0x14b   : > { %vm791_vm15 = vcmp.ge.f32.partialorder %v775_v39, 1.0  ;;  %v1261_v51 = vadd.f32 %v1260_v44, %v1259_v9  ;;  %v670_v4 = vadd.f32 %v1258_v41, %v1600_v48  ;;  %v838_v54 = vsub.f32 %v774_v31, %v1194_v37 }
 0x14c   : > { %986 = vst.msk [vmem:[%s1434_s21 + $0x8] sm:$0x3] %vm981_vm8, %v958_v46  ;;  %987 = vst.msk [vmem:[%s1434_s21 + $0xa] sm:$0x3] %vm981_vm8, %v960_v40  ;;  %v887_v57 = vtrunc.f32 %v1194_v37  ;;  %v1018_v58 = vsel %vm844_vm2, %v1194_v37, 0.0  ;;  %v1195_v42 = vsel %vm791_vm15, 1.0, %v1392_v30 }
 0x14d   : > { %988 = vst.msk [vmem:[%s1434_s21 + $0xc] sm:$0x3] %vm981_vm8, %v962_v49  ;;  %989 = vst.msk [vmem:[%s1434_s21 + $0xe] sm:$0x3] %vm981_vm8, %v964_v50  ;;  %v1019_v60 = vadd.f32 %v1018_v58, %v1017_v28  ;;  %v839_v61 = vsub.f32 %v775_v39, %v1195_v42  ;;  %v888_v47 = vtrunc.f32 %v1195_v42  ;;  %v1020_v48 = vsel %vm844_vm2, %v1195_v42, 0.0  ;;  %v1262_v2 = vpop.f32.mrb[28].mxu0 }
 0x14e   : > { %855 = vst.msk [vmem:[#allocation3 + $0x50] sm:$0xff] %vm844_vm2, %v838_v54  ;;  %v728_v62 = vadd.f32 %v1633_v55, %v670_v4  ;;  %v673_v63 = vadd.f32 %v1261_v51, %v1605_v53  ;;  %v761_v1 = vmul.f32 0.95122945, %v745_v56  ;;  %v1263_v10 = vpop.f32.mrb[29].mxu0  ;;  %v762_v29 = vmul.f32 0.95122945, %v746_v14 }
 0x14f   : > { %856 = vst.msk [vmem:[#allocation3 + $0x58] sm:$0xff] %vm844_vm2, %v839_v61  ;;  %v917_v7 = vpack.c.f32.eXmY %v887_v57, %v888_v47, 312  ;;  %v1021_v8 = vadd.f32 %v1020_v48, %v1019_v60  ;;  %v714_v11 = vmul.f32 0.8187308, %v698_v59  ;;  %v1264_v15 = vadd.f32 %v1263_v10, %v1262_v2  ;;  %v1265_v55 = vpop.f32.mrb[30].mxu0 }
 0x150   : > { %v776_v12 = vadd.f32 %v1639_v5, %v728_v62  ;;  %873 = vst.msk [vmem:[#allocation2 + $0x60] sm:$0xff] %vm844_vm2, %v728_v62  ;;  %v729_v13 = vadd.f32 %v713_v45, %v673_v63  ;;  %v1266_v53 = vpop.f32.mrb[31].mxu0  ;;  %v715_v17 = vmul.f32 0.8187308, %v699_v3 }
 0x151   : > { %v921_v16 = vpack.c.b8 %v917_v7, %v913_v27  ;;  %v763_v19 = vmul.f32 0.95122945, %v747_v6  ;;  %v678_v21 = vadd.f32 %v1595_v43, %v1264_v15  ;;  %v1267_v0 = vadd.f32 %v1266_v53, %v1265_v55 }
 0x152   : > { %vm792_vm0 = vcmp.ge.f32.partialorder %v776_v12, 1.0  ;;  %v777_v20 = vadd.f32 %v761_v1, %v729_v13  ;;  %874 = vst.msk [vmem:[#allocation2 + $0x68] sm:$0xff] %vm844_vm2, %v729_v13 }
 0x153   : > { %v941_v22 = vunpack.c.0.s8 %v921_v16  ;;  %v942_v23 = vunpack.c.1.s8 %v921_v16  ;;  %v943_v5 = vunpack.c.2.s8 %v921_v16  ;;  %v944_v24 = vunpack.c.3.s8 %v921_v16  ;;  %v998_v16 = vld [vmem:[%s1723_s3] sm:$0x1] }
 0x154   : > { %v1196_v25 = vsel %vm792_vm0, 1.0, %v1392_v30  ;;  %vm793_vm1 = vcmp.ge.f32.partialorder %v777_v20, 1.0  ;;  %v730_v26 = vadd.f32 %v714_v11, %v678_v21  ;;  %v681_v18 = vadd.f32 %v1603_v52, %v1267_v0 }
 0x155   : > { %v965_v27 = vpack.c.b16 %v941_v22, %v941_v22  ;;  %v967_v28 = vpack.c.b16 %v942_v23, %v942_v23  ;;  %v969_v31 = vpack.c.b16 %v943_v5, %v943_v5  ;;  %v971_v32 = vpack.c.b16 %v944_v24, %v944_v24 }
 0x156   : > { %v840_v38 = vsub.f32 %v776_v12, %v1196_v25  ;;  %v889_v43 = vtrunc.f32 %v1196_v25  ;;  %v1022_v33 = vsel %vm844_vm2, %v1196_v25, 0.0  ;;  %v1197_v34 = vsel %vm793_vm1, 1.0, %v1392_v30  ;;  %875 = vst.msk [vmem:[#allocation2 + $0x70] sm:$0xff] %vm844_vm2, %v730_v26 }
 0x157   : > { %v966_v35 = vpack.c.b8 %v965_v27, %v965_v27  ;;  %v968_v36 = vpack.c.b8 %v967_v28, %v967_v28  ;;  %v970_v9 = vpack.c.b8 %v969_v31, %v969_v31  ;;  %v972_v52 = vpack.c.b8 %v971_v32, %v971_v32 }
 0x158   : > { %857 = vst.msk [vmem:[#allocation3 + $0x60] sm:$0xff] %vm844_vm2, %v840_v38  ;;  %v1023_v39 = vadd.f32 %v1022_v33, %v1021_v8  ;;  %v841_v41 = vsub.f32 %v777_v20, %v1197_v34  ;;  %v890_v44 = vtrunc.f32 %v1197_v34  ;;  %v1024_v45 = vsel %vm844_vm2, %v1197_v34, 0.0 }
 0x159   : > { %990 = vst.msk [vmem:[%s1434_s21 + $0x10] sm:$0x3] %vm981_vm8, %v966_v35  ;;  %991 = vst.msk [vmem:[%s1434_s21 + $0x12] sm:$0x3] %vm981_vm8, %v968_v36  ;;  %v778_v46 = vadd.f32 %v762_v29, %v730_v26  ;;  %v731_v40 = vadd.f32 %v715_v17, %v681_v18 }
 0x15a   : > { %992 = vst.msk [vmem:[%s1434_s21 + $0x14] sm:$0x3] %vm981_vm8, %v970_v9  ;;  %993 = vst.msk [vmem:[%s1434_s21 + $0x16] sm:$0x3] %vm981_vm8, %v972_v52  ;;  %v923_v49 = vpack.c.f32.eXmY %v889_v43, %v890_v44, 312  ;;  %v1025_v50 = vadd.f32 %v1024_v45, %v1023_v39 }
 0x15b   : > { %858 = vst.msk [vmem:[#allocation3 + $0x68] sm:$0xff] %vm844_vm2, %v841_v41  ;;  %vm794_vm3 = vcmp.ge.f32.partialorder %v778_v46, 1.0  ;;  %v779_v37 = vadd.f32 %v763_v19, %v731_v40  ;;  %876 = vst.msk [vmem:[#allocation2 + $0x78] sm:$0xff] %vm844_vm2, %v731_v40 }
 0x15c   : > { %v1198_v51 = vsel %vm794_vm3, 1.0, %v1392_v30 }
 0x15d   : > { %v842_v4 = vsub.f32 %v778_v46, %v1198_v51  ;;  %v1026_v56 = vsel %vm844_vm2, %v1198_v51, 0.0  ;;  %vm795_vm4 = vcmp.ge.f32.partialorder %v779_v37, 1.0  ;;  %v891_v58 = vtrunc.f32 %v1198_v51 }
 0x15e   : > { %v1027_v54 = vadd.f32 %v1026_v56, %v1025_v50  ;;  %v1199_v57 = vsel %vm795_vm4, 1.0, %v1392_v30 }
 0x15f   : > { %859 = vst.msk [vmem:[#allocation3 + $0x70] sm:$0xff] %vm844_vm2, %v842_v4  ;;  %v843_v42 = vsub.f32 %v779_v37, %v1199_v57  ;;  %v892_v59 = vtrunc.f32 %v1199_v57  ;;  %v1028_v60 = vsel %vm844_vm2, %v1199_v57, 0.0 }
 0x160   : > { %v1029_v61 = vadd.f32 %v1028_v60, %v1027_v54 }
 0x161   : > { %860 = vst.msk [vmem:[#allocation3 + $0x78] sm:$0xff] %vm844_vm2, %v843_v42  ;;  %v927_v47 = vpack.c.f32.eXmY %v891_v58, %v892_v59, 312  ;;  %vm1037_vm2 = vcmask 516096  }
 0x162   : > { %v1030_v48 = vrot.slane %v1029_v61, 4 }
 0x163   : > { %v931_v14 = vpack.c.b8 %v927_v47, %v923_v49 }
 0x164   : > { %v1031_v62 = vadd.f32 %v1030_v48, %v1029_v61 }
 0x165   : > { %v945_v63 = vunpack.c.0.s8 %v931_v14  ;;  %v946_v1 = vunpack.c.1.s8 %v931_v14  ;;  %v947_v30 = vunpack.c.2.s8 %v931_v14  ;;  %v948_v2 = vunpack.c.3.s8 %v931_v14 }
 0x166   : > { %v1032_v3 = vrot.slane %v1031_v62, 2 }
 0x167   : > { %v973_v6 = vpack.c.b16 %v945_v63, %v945_v63  ;;  %v975_v7 = vpack.c.b16 %v946_v1, %v946_v1  ;;  %v977_v8 = vpack.c.b16 %v947_v30, %v947_v30  ;;  %v979_v10 = vpack.c.b16 %v948_v2, %v948_v2 }
 0x168   : > { %v1033_v11 = vadd.f32 %v1032_v3, %v1031_v62 }
 0x169   : > { %v974_v12 = vpack.c.b8 %v973_v6, %v973_v6  ;;  %v976_v13 = vpack.c.b8 %v975_v7, %v975_v7  ;;  %v978_v15 = vpack.c.b8 %v977_v8, %v977_v8  ;;  %v980_v29 = vpack.c.b8 %v979_v10, %v979_v10 }
 0x16a   : > { %v1034_v55 = vrot.slane %v1033_v11, 1 }
 0x16b   : > { %994 = vst.msk [vmem:[%s1434_s21 + $0x18] sm:$0x3] %vm981_vm8, %v974_v12  ;;  %995 = vst.msk [vmem:[%s1434_s21 + $0x1a] sm:$0x3] %vm981_vm8, %v976_v13 }
 0x16c   : > { %996 = vst.msk [vmem:[%s1434_s21 + $0x1c] sm:$0x3] %vm981_vm8, %v978_v15  ;;  %997 = vst.msk [vmem:[%s1434_s21 + $0x1e] sm:$0x3] %vm981_vm8, %v980_v29  ;;  %v1035_v53 = vadd.f32 %v1034_v55, %v1033_v11 }
 0x16e   : > { %v1036_v17 = vadd.f32 %v1035_v53, %v998_v16 }
 0x170   : > { %1038 = vst.msk [vmem:[%s1723_s3] sm:$0x1] %vm1037_vm2, %v1036_v17 }
 0x171 PF: > { %s14_s14 = sadd.s32 1, %s1389_s14   ;;  %s1724_s12 = smov %s1385_s13 }
 0x172   : > { %p11_p6 = scmp.ge.s32.totalorder %s14_s14, 10   ;;  %s1725_s13 = smov %s1727_s15 }
 0x174   :  { %13 = sbr.rel (!%p11_p6) target bundleno = 2 (0x2), region = 74 }

// kernel: _lambda_.11
= control target key start
LH: loop header
LB: loop body
LE: loop exit
PB: predicated region body
PF: predicated region fallthrough
CT: control target
= control target key end

     0   :  { %s454_s9 = smov 0   ;;  %s456_s10 = smov 0   ;;  %s500_s0 = inlined_call_operand.vmem [shape: s8[8,16,128], index: 0, kind: input, shape index: {}]   ;;  %s501_s1 = inlined_call_operand.vmem [shape: s8[8,16,128], index: 1, kind: output, shape index: {0}]   ;;  %s502_s2 = inlined_call_operand.vmem [shape: f32[1,1,128], index: 2, kind: output, shape index: {1}]  }
   0x1   :  { %s458_s11 = smov 0  }
   0x2 LB: > { %s22_s12 = sadd.s32 1, %s431_s10  ;;  %p370_p0 = scmp.ge.s32.totalorder %s435_s11, 1  ;;  %s435_s11 = sphi %s458_s11, %s13_s11   ;;  %s431_s10 = sphi %s456_s10, %s504_s10   ;;  %s427_s9 = sphi %s454_s9, %s503_s9  }
   0x3   : > { %p23_p1 = scmp.ge.s32.totalorder %s22_s12, 8  ;;  %p136_p2 = scmp.lt.s32.totalorder %s435_s11, 9 }
   0x5   : > { %s506_s12 = smov (%p23_p1, %s22_s12), 0  ;;  %p137_p3 = pnand %p370_p0, %p136_p2 }
   0x6   : > { %p170_p4 = scmp.lt.s32.totalorder (!%p137_p3), %s427_s9, 7  ;;  %p375_p5 = scmp.ne.s32.totalorder (!%p137_p3), %s427_s9, 0 }
   0x7   : > { %140 = sbr.rel (%p137_p3) target bundleno = 50 (0x32), region = 24 }
   0xe   : > { %s171_s13 = scalar_select %p170_p4, %s427_s9, 7 }
   0xf   : > { %195 = sbr.rel (%p375_p5) target bundleno = 22 (0x16), region = 28  ;;  %v437_v0 = vmov (!%p375_p5), 0.0  }
  0x10   : > { %s381_s14 = sshll.u32 %s171_s13, 2  ;;  %196 = vst [vmem:[#allocation2] sm:$0xff] (!%p375_p5), %v437_v0  ;;  %197 = vst [vmem:[#allocation2 + $0x8] sm:$0xff] (!%p375_p5), %v437_v0 }
  0x11   : > { %s177_s17 = scalar_lea.vmem %s500_s0, %s381_s14  ;;  %s478_s20 = scalar_lea.vmem %s501_s1, %s381_s14  ;;  %198 = vst [vmem:[#allocation3] sm:$0xff] (!%p375_p5), %v437_v0  ;;  %199 = vst [vmem:[#allocation3 + $0x8] sm:$0xff] (!%p375_p5), %v437_v0 }
  0x12   : > { %200 = vst [vmem:[%s502_s2] sm:$0x1] (!%p375_p5), %v437_v0 }
  0x16 PF: > { %v384_v1 = vld [vmem:[%s177_s17] sm:$0xf]   ;;  %v438_v18 = vmov 0.0  }
  0x17   : > { %v207_v2 = vld [vmem:[#allocation2] sm:$0xff]  ;;  %v385_v4 = vunpack.c.0.s8 %v384_v1  ;;  %v386_v6 = vunpack.c.1.s8 %v384_v1  ;;  %v208_v7 = vld [vmem:[#allocation2 + $0x8] sm:$0xff] }
  0x18   : > { %v213_v3 = vld [vmem:[#allocation3] sm:$0xff]  ;;  %v209_v5 = vmul.f32 0.8187308, %v207_v2  ;;  %v214_v8 = vld [vmem:[#allocation3 + $0x8] sm:$0xff]  ;;  %v210_v9 = vmul.f32 0.8187308, %v208_v7 }
  0x19   : > { %v205_v10 = vcvt.s32.f32 %v385_v4  ;;  %v215_v11 = vmul.f32 0.95122945, %v213_v3  ;;  %v206_v12 = vcvt.s32.f32 %v386_v6  ;;  %v216_v13 = vmul.f32 0.95122945, %v214_v8  ;;  %v247_v39 = vld [vmem:[%s502_s2] sm:$0x1] }
  0x1b   : > { %v211_v14 = vadd.f32 %v209_v5, %v205_v10  ;;  %v212_v15 = vadd.f32 %v210_v9, %v206_v12 }
  0x1d   : > { %v217_v16 = vadd.f32 %v215_v11, %v211_v14  ;;  %229 = vst [vmem:[#allocation2] sm:$0xff] %v211_v14  ;;  %v218_v17 = vadd.f32 %v216_v13, %v212_v15  ;;  %230 = vst [vmem:[#allocation2 + $0x8] sm:$0xff] %v212_v15 }
  0x1f   : > { %vm219_vm0 = vcmp.ge.f32.partialorder %v217_v16, 1.0  ;;  %vm220_vm1 = vcmp.ge.f32.partialorder %v218_v17, 1.0 }
  0x20   : > { %v376_v19 = vsel %vm219_vm0, 1.0, %v438_v18  ;;  %v377_v20 = vsel %vm220_vm1, 1.0, %v438_v18 }
  0x21   : > { %v225_v21 = vsub.f32 %v217_v16, %v376_v19  ;;  %v226_v22 = vsub.f32 %v218_v17, %v377_v20  ;;  %v248_v23 = vadd.f32 %v377_v20, %v376_v19  ;;  %v231_v24 = vtrunc.f32 %v376_v19 }
  0x22   : > { %v232_v25 = vtrunc.f32 %v377_v20 }
  0x23   : > { %227 = vst [vmem:[#allocation3] sm:$0xff] %v225_v21  ;;  %228 = vst [vmem:[#allocation3 + $0x8] sm:$0xff] %v226_v22  ;;  %v249_v26 = vrot.slane %v248_v23, 4 }
  0x24   : > { %v233_v27 = vpack.c.f32.eXmY %v231_v24, %v232_v25, 312 }
  0x25   : > { %v250_v28 = vadd.f32 %v249_v26, %v248_v23 }
  0x26   : > { %v237_v29 = vpack.c.b8 %v233_v27, %v233_v27 }
  0x27   : > { %v251_v30 = vrot.slane %v250_v28, 2 }
  0x28   : > { %v239_v31 = vunpack.c.0.s8 %v237_v29  ;;  %v240_v32 = vunpack.c.1.s8 %v237_v29 }
  0x29   : > { %v252_v33 = vadd.f32 %v251_v30, %v250_v28 }
  0x2a   : > { %v241_v34 = vpack.c.b16 %v239_v31, %v239_v31  ;;  %v243_v35 = vpack.c.b16 %v240_v32, %v240_v32 }
  0x2b   : > { %v253_v36 = vrot.slane %v252_v33, 1 }
  0x2c   : > { %v242_v37 = vpack.c.b8 %v241_v34, %v241_v34  ;;  %v244_v38 = vpack.c.b8 %v243_v35, %v243_v35 }
  0x2d   : > { %v254_v40 = vadd.f32 %v253_v36, %v252_v33 }
  0x2e   : > { %245 = vst [vmem:[%s478_s20] sm:$0x3] %v242_v37  ;;  %246 = vst [vmem:[%s478_s20 + $0x2] sm:$0x3] %v244_v38 }
  0x2f   : > { %v255_v41 = vadd.f32 %v254_v40, %v247_v39 }
  0x31   : > { %256 = vst [vmem:[%s502_s2] sm:$0x1] %v255_v41 }
  0x32 PF: > { %s13_s11 = sadd.s32 1, %s435_s11   ;;  %s503_s9 = smov %s431_s10 }
  0x33   : > { %p10_p6 = scmp.ge.s32.totalorder %s13_s11, 10   ;;  %s504_s10 = smov %s506_s12 }
  0x35   :  { %12 = sbr.rel (!%p10_p6) target bundleno = 2 (0x2), region = 70 }

// kernel: _lambda_.12
= control target key start
LH: loop header
LB: loop body
LE: loop exit
PB: predicated region body
PF: predicated region fallthrough
CT: control target
= control target key end

     0   :  { %s1171_s12 = smov 0   ;;  %s1173_s13 = smov 0   ;;  %s1346_s0 = inlined_call_operand.vmem [shape: s8[8,32,640], index: 0, kind: input, shape index: {}]   ;;  %s1347_s1 = inlined_call_operand.vmem [shape: bf16[640,128], index: 1, kind: input, shape index: {}]   ;;  %s1348_s2 = inlined_call_operand.vmem [shape: s8[8,32,128], index: 2, kind: output, shape index: {0}]   ;;  %s1349_s3 = inlined_call_operand.vmem [shape: f32[1,1,128], index: 3, kind: output, shape index: {1}]  }
   0x1   :  { %s1175_s14 = smov 0  }
   0x2 LB: > { %s23_s15 = sadd.s32 1, %s1143_s13  ;;  %p919_p0 = scmp.ge.s32.totalorder %s1147_s14, 1  ;;  %s1147_s14 = sphi %s1175_s14, %s14_s14   ;;  %s1143_s13 = sphi %s1173_s13, %s1351_s13   ;;  %s1139_s12 = sphi %s1171_s12, %s1350_s12  }
   0x3   : > { %p24_p1 = scmp.ge.s32.totalorder %s23_s15, 8  ;;  %p160_p2 = scmp.lt.s32.totalorder %s1147_s14, 9 }
   0x5   : > { %s1353_s15 = smov (%p24_p1, %s23_s15), 0  ;;  %p161_p3 = pnand %p919_p0, %p160_p2 }
   0x6   : > { %p195_p4 = scmp.lt.s32.totalorder (!%p161_p3), %s1139_s12, 7  ;;  %p923_p5 = scmp.ne.s32.totalorder (!%p161_p3), %s1139_s12, 0 }
   0x7   : > { %164 = sbr.rel (%p161_p3) target bundleno = 334 (0x14e), region = 28 }
   0xe   : > { %s196_s16 = scalar_select %p195_p4, %s1139_s12, 7 }
   0xf   : > { %221 = sbr.rel (%p923_p5) target bundleno = 22 (0x16), region = 32  ;;  %v1149_v0 = vmov (!%p923_p5), 0.0  }
  0x10   : > { %s1058_s17 = smul.u32 40, %s196_s16  ;;  %s971_s18 = sshll.u32 %s196_s16, 3  ;;  %222 = vst [vmem:[#allocation2] sm:$0xff] (!%p923_p5), %v1149_v0  ;;  %223 = vst [vmem:[#allocation2 + $0x8] sm:$0xff] (!%p923_p5), %v1149_v0 }
  0x11   : > { %s1192_s21 = scalar_lea.vmem %s1348_s2, %s971_s18  ;;  %224 = vst [vmem:[#allocation2 + $0x10] sm:$0xff] (!%p923_p5), %v1149_v0  ;;  %225 = vst [vmem:[#allocation2 + $0x18] sm:$0xff] (!%p923_p5), %v1149_v0 }
  0x12   : > { %s1197_s24 = scalar_lea.vmem %s1346_s0, %s1058_s17  ;;  %226 = vst [vmem:[#allocation3] sm:$0xff] (!%p923_p5), %v1149_v0  ;;  %227 = vst [vmem:[#allocation3 + $0x8] sm:$0xff] (!%p923_p5), %v1149_v0 }
  0x13   : > { %228 = vst [vmem:[#allocation3 + $0x10] sm:$0xff] (!%p923_p5), %v1149_v0  ;;  %229 = vst [vmem:[#allocation3 + $0x18] sm:$0xff] (!%p923_p5), %v1149_v0 }
  0x14   : > { %230 = vst [vmem:[%s1349_s3] sm:$0x1] (!%p923_p5), %v1149_v0 }
  0x16 PF: > { %v1085_v1 = vld [vmem:[%s1347_s1 + $0x40] sm:$0xff]   ;;  %v1089_v5 = vld [vmem:[%s1347_s1 + $0x48] sm:$0xff]   ;;  %v1093_v9 = vld [vmem:[%s1347_s1 + $0x50] sm:$0xff]  }
  0x17   : > { %v1086_v2 = vld [vmem:[%s1347_s1 + $0xc0] sm:$0xff]   ;;  %972 = vmatprep.subr.bf16.mxu0 %v1085_v1  ;;  %v1090_v6 = vld [vmem:[%s1347_s1 + $0xc8] sm:$0xff]   ;;  %v1094_v10 = vld [vmem:[%s1347_s1 + $0xd0] sm:$0xff]  }
  0x18   : > { %v1087_v3 = vld [vmem:[%s1347_s1] sm:$0xff]   ;;  %1000 = vmatprep.subr.bf16.mxu1 %v1086_v2  ;;  %v1091_v7 = vld [vmem:[%s1347_s1 + $0x8] sm:$0xff]   ;;  %v1095_v11 = vld [vmem:[%s1347_s1 + $0x10] sm:$0xff]  }
  0x19   : > { %v1088_v4 = vld [vmem:[%s1347_s1 + $0x80] sm:$0xff]   ;;  %973 = vmatpush3.bf16.msra.mxu0 %v1087_v3  ;;  %v1092_v8 = vld [vmem:[%s1347_s1 + $0x88] sm:$0xff]   ;;  %v1096_v12 = vld [vmem:[%s1347_s1 + $0x90] sm:$0xff]  }
  0x1a   : > { %1001 = vmatpush3.bf16.msra.mxu1 %v1088_v4  ;;  %974 = vmatprep.subr.bf16.mxu0 %v1089_v5  ;;  %v1097_v13 = vld [vmem:[%s1347_s1 + $0x58] sm:$0xff]   ;;  %v1101_v17 = vld [vmem:[%s1347_s1 + $0x60] sm:$0xff]   ;;  %v1105_v21 = vld [vmem:[%s1347_s1 + $0x68] sm:$0xff]  }
  0x1b   : > { %1002 = vmatprep.subr.bf16.mxu1 %v1090_v6  ;;  %v1098_v14 = vld [vmem:[%s1347_s1 + $0xd8] sm:$0xff]   ;;  %v1102_v18 = vld [vmem:[%s1347_s1 + $0xe0] sm:$0xff]   ;;  %v1106_v22 = vld [vmem:[%s1347_s1 + $0xe8] sm:$0xff]  }
  0x1c   : > { %v1099_v15 = vld [vmem:[%s1347_s1 + $0x18] sm:$0xff]   ;;  %v1103_v19 = vld [vmem:[%s1347_s1 + $0x20] sm:$0xff]   ;;  %v1107_v23 = vld [vmem:[%s1347_s1 + $0x28] sm:$0xff]  }
  0x1d   : > { %975 = vmatpush3.bf16.msra.mxu0 %v1091_v7  ;;  %v1100_v16 = vld [vmem:[%s1347_s1 + $0x98] sm:$0xff]   ;;  %v1104_v20 = vld [vmem:[%s1347_s1 + $0xa0] sm:$0xff]   ;;  %v1108_v24 = vld [vmem:[%s1347_s1 + $0xa8] sm:$0xff]  }
  0x1e   : > { %1003 = vmatpush3.bf16.msra.mxu1 %v1092_v8  ;;  %976 = vmatprep.subr.bf16.mxu0 %v1093_v9  ;;  %v1109_v25 = vld [vmem:[%s1347_s1 + $0x70] sm:$0xff]   ;;  %v1113_v29 = vld [vmem:[%s1347_s1 + $0x78] sm:$0xff]   ;;  %v232_v33 = vld [vmem:[%s1197_s24 + $0x8] sm:$0xff] }
  0x1f   : > { %1004 = vmatprep.subr.bf16.mxu1 %v1094_v10  ;;  %v1110_v26 = vld [vmem:[%s1347_s1 + $0xf0] sm:$0xff]   ;;  %v1114_v30 = vld [vmem:[%s1347_s1 + $0xf8] sm:$0xff]   ;;  %v231_v35 = vld [vmem:[%s1197_s24] sm:$0xff]  ;;  %v237_v36 = vunpack.c.l.s8.bf16 %v232_v33  ;;  %v242_v37 = vunpack.c.h.s8.bf16 %v232_v33 }
  0x20   : > { %v1111_v27 = vld [vmem:[%s1347_s1 + $0x30] sm:$0xff]   ;;  %v1115_v31 = vld [vmem:[%s1347_s1 + $0x38] sm:$0xff]   ;;  %v236_v41 = vunpack.c.l.s8.bf16 %v231_v35  ;;  %v1117_v43 = vld [vmem:[%s1347_s1 + $0x100] sm:$0xff]   ;;  %v241_v46 = vunpack.c.h.s8.bf16 %v231_v35 }
  0x21   : > { %977 = vmatpush3.bf16.msra.mxu0 %v1095_v11  ;;  %v1112_v28 = vld [vmem:[%s1347_s1 + $0xb0] sm:$0xff]   ;;  %v1116_v32 = vld [vmem:[%s1347_s1 + $0xb8] sm:$0xff]   ;;  %598 = vmatprep.mubr.bf16.mxu0 %v237_v36  ;;  %v1118_v44 = vld [vmem:[%s1347_s1 + $0x108] sm:$0xff]  }
  0x22   : > { %1005 = vmatpush3.bf16.msra.mxu1 %v1096_v12  ;;  %978 = vmatprep.subr.bf16.mxu0 %v1097_v13  ;;  %v234_v34 = vld [vmem:[%s1197_s24 + $0x18] sm:$0xff]  ;;  %v233_v39 = vld [vmem:[%s1197_s24 + $0x10] sm:$0xff]  ;;  %v235_v48 = vld [vmem:[%s1197_s24 + $0x20] sm:$0xff] }
  0x23   : > { %1006 = vmatprep.subr.bf16.mxu1 %v1098_v14  ;;  %v239_v38 = vunpack.c.l.s8.bf16 %v234_v34  ;;  %v244_v40 = vunpack.c.h.s8.bf16 %v234_v34  ;;  %v238_v42 = vunpack.c.l.s8.bf16 %v233_v39  ;;  %v1119_v45 = vld [vmem:[%s1347_s1 + $0x110] sm:$0xff]   ;;  %v243_v47 = vunpack.c.h.s8.bf16 %v233_v39  ;;  %v1120_v50 = vld [vmem:[%s1347_s1 + $0x118] sm:$0xff]   ;;  %v1121_v51 = vld [vmem:[%s1347_s1 + $0x120] sm:$0xff]  }
  0x24   : > { %v240_v49 = vunpack.c.l.s8.bf16 %v235_v48  ;;  %v1122_v52 = vld [vmem:[%s1347_s1 + $0x128] sm:$0xff]   ;;  %v1123_v53 = vld [vmem:[%s1347_s1 + $0x130] sm:$0xff]   ;;  %v1124_v54 = vld [vmem:[%s1347_s1 + $0x138] sm:$0xff]   ;;  %v245_v55 = vunpack.c.h.s8.bf16 %v235_v48 }
  0x25   : > { %979 = vmatpush3.bf16.msra.mxu0 %v1099_v15  ;;  %647 = vmatprep.mubr.bf16.mxu1 %v239_v38  ;;  %v726_v34 = vld [vmem:[#allocation3 + $0x8] sm:$0xff] }
  0x26   : > { %1007 = vmatpush3.bf16.msra.mxu1 %v1100_v16  ;;  %980 = vmatprep.subr.bf16.mxu0 %v1101_v17 }
  0x27   : > { %1008 = vmatprep.subr.bf16.mxu1 %v1102_v18 }
  0x29   : > { %981 = vmatpush3.bf16.msra.mxu0 %v1103_v19 }
  0x2a   : > { %1009 = vmatpush3.bf16.msra.mxu1 %v1104_v20  ;;  %982 = vmatprep.subr.bf16.mxu0 %v1105_v21  ;;  %v715_v20 = vld [vmem:[#allocation2 + $0x10] sm:$0xff]  ;;  %v713_v21 = vld [vmem:[#allocation2] sm:$0xff] }
  0x2b   : > { %1010 = vmatprep.subr.bf16.mxu1 %v1106_v22  ;;  %v727_v22 = vld [vmem:[#allocation3 + $0x10] sm:$0xff] }
  0x2d   : > { %983 = vmatpush3.bf16.msra.mxu0 %v1107_v23  ;;  %v716_v23 = vld [vmem:[#allocation2 + $0x18] sm:$0xff] }
  0x2e   : > { %1011 = vmatpush3.bf16.msra.mxu1 %v1108_v24  ;;  %984 = vmatprep.subr.bf16.mxu0 %v1109_v25  ;;  %v719_v24 = vmul.f32 0.8187308, %v715_v20  ;;  %v725_v25 = vld [vmem:[#allocation3] sm:$0xff]  ;;  %v720_v33 = vmul.f32 0.8187308, %v716_v23 }
  0x2f   : > { %1012 = vmatprep.subr.bf16.mxu1 %v1110_v26  ;;  %v714_v26 = vld [vmem:[#allocation2 + $0x8] sm:$0xff]  ;;  %v729_v36 = vmul.f32 0.95122945, %v725_v25 }
  0x30   : > { %v718_v38 = vmul.f32 0.8187308, %v714_v26 }
  0x31   : > { %985 = vmatpush3.bf16.msra.mxu0 %v1111_v27 }
  0x32   : > { %1013 = vmatpush3.bf16.msra.mxu1 %v1112_v28  ;;  %986 = vmatprep.subr.bf16.mxu0 %v1113_v29  ;;  %v717_v28 = vmul.f32 0.8187308, %v713_v21  ;;  %v728_v29 = vld [vmem:[#allocation3 + $0x18] sm:$0xff] }
  0x33   : > { %1014 = vmatprep.subr.bf16.mxu1 %v1114_v30 }
  0x35   : > { %987 = vmatpush3.bf16.msra.mxu0 %v1115_v31  ;;  %v731_v31 = vmul.f32 0.95122945, %v727_v22 }
  0x36   : > { %1015 = vmatpush3.bf16.msra.mxu1 %v1116_v32  ;;  %1038 = vmatprep.subr.bf16.mxu0 %v1117_v43 }
  0x38   : > { %599 = vmatmul.mubr.bf16.vlgmr.msra.gmra.mrb[0].mxu0 %v236_v41  ;;  %v732_v41 = vmul.f32 0.95122945, %v728_v29 }
  0x39   : > { %648 = vmatmul.mubr.bf16.vlgmr.msra.gmra.mrb[0].mxu1 %v238_v42  ;;  %606 = vmatprep.mubr.bf16.mxu0 %v242_v37 }
  0x3a   : > { %1039 = vmatpush3.bf16.msra.mxu0 %v1117_v43  ;;  %655 = vmatprep.mubr.bf16.mxu1 %v244_v40 }
  0x3b   : > { %1040 = vmatprep.subr.bf16.mxu0 %v1118_v44 }
  0x3e   : > { %1041 = vmatpush3.bf16.msra.mxu0 %v1118_v44 }
  0x3f   : > { %1042 = vmatprep.subr.bf16.mxu0 %v1119_v45 }
  0x40   : > { %607 = vmatmul.mubr.bf16.gmra.mrb[4].mxu0 %v241_v46 }
  0x41   : > { %656 = vmatmul.mubr.bf16.gmra.mrb[4].mxu1 %v243_v47  ;;  %1054 = vmatprep.mubr.bf16.mxu0 %v240_v49 }
  0x42   : > { %1043 = vmatpush3.bf16.msra.mxu0 %v1119_v45  ;;  %v730_v45 = vmul.f32 0.95122945, %v726_v34 }
  0x43   : > { %1044 = vmatprep.subr.bf16.mxu0 %v1120_v50 }
  0x46   : > { %1045 = vmatpush3.bf16.msra.mxu0 %v1120_v50 }
  0x47   : > { %1046 = vmatprep.subr.bf16.mxu0 %v1121_v51 }
  0x4a   : > { %1047 = vmatpush3.bf16.msra.mxu0 %v1121_v51  ;;  %v1150_v51 = vmov 0.0  }
  0x4b   : > { %1048 = vmatprep.subr.bf16.mxu0 %v1122_v52 }
  0x4e   : > { %1049 = vmatpush3.bf16.msra.mxu0 %v1122_v52 }
  0x4f   : > { %1050 = vmatprep.subr.bf16.mxu0 %v1123_v53 }
  0x52   : > { %1051 = vmatpush3.bf16.msra.mxu0 %v1123_v53 }
  0x53   : > { %1052 = vmatprep.subr.bf16.mxu0 %v1124_v54 }
  0x56   : > { %1053 = vmatpush3.bf16.msra.mxu0 %v1124_v54 }
  0x59   : > { %1055 = vmatmul.mubr.bf16.vlgmr.msra.gmra.mrb[8].mxu0 %v245_v55 }
 0x10b   : > { %v988_v56 = vpop.f32.mrb[0].mxu0 }
 0x10c   : > { %v1016_v57 = vpop.f32.mrb[0].mxu1  ;;  %v989_v58 = vpop.f32.mrb[1].mxu0 }
 0x10d   : > { %v1017_v59 = vpop.f32.mrb[1].mxu1  ;;  %v990_v60 = vadd.f32 %v989_v58, %v988_v56  ;;  %v991_v62 = vpop.f32.mrb[2].mxu0 }
 0x10e   : > { %v1018_v61 = vadd.f32 %v1017_v59, %v1016_v57  ;;  %v1019_v63 = vpop.f32.mrb[2].mxu1  ;;  %v992_v0 = vpop.f32.mrb[3].mxu0 }
 0x10f   : > { %v1020_v1 = vpop.f32.mrb[3].mxu1  ;;  %v993_v2 = vadd.f32 %v992_v0, %v991_v62 }
 0x110   : > { %v1021_v3 = vadd.f32 %v1020_v1, %v1019_v63  ;;  %v650_v4 = vadd.f32 %v1018_v61, %v990_v60 }
 0x112   : > { %v653_v5 = vadd.f32 %v1021_v3, %v993_v2 }
 0x113   : > { %v994_v6 = vpop.f32.mrb[4].mxu0 }
 0x114   : > { %v1022_v7 = vpop.f32.mrb[4].mxu1  ;;  %v995_v8 = vpop.f32.mrb[5].mxu0 }
 0x115   : > { %v1023_v9 = vpop.f32.mrb[5].mxu1  ;;  %v996_v10 = vadd.f32 %v995_v8, %v994_v6  ;;  %v997_v12 = vpop.f32.mrb[6].mxu0 }
 0x116   : > { %v1024_v11 = vadd.f32 %v1023_v9, %v1022_v7  ;;  %v1025_v13 = vpop.f32.mrb[6].mxu1  ;;  %v998_v14 = vpop.f32.mrb[7].mxu0 }
 0x117   : > { %v1026_v15 = vpop.f32.mrb[7].mxu1  ;;  %v999_v16 = vadd.f32 %v998_v14, %v997_v12 }
 0x118   : > { %v1027_v17 = vadd.f32 %v1026_v15, %v1025_v13  ;;  %v658_v18 = vadd.f32 %v1024_v11, %v996_v10 }
 0x11a   : > { %v661_v19 = vadd.f32 %v1027_v17, %v999_v16 }
 0x12c   : > { %v1056_v27 = vpop.f32.mrb[8].mxu0 }
 0x12d   : > { %v707_v30 = vadd.f32 %v1056_v27, %v658_v18  ;;  %v698_v32 = vpop.f32.mrb[9].mxu0 }
 0x12e   : > { %v699_v35 = vadd.f32 %v698_v32, %v650_v4  ;;  %v1057_v37 = vpop.f32.mrb[10].mxu0 }
 0x12f   : > { %v723_v39 = vadd.f32 %v719_v24, %v707_v30  ;;  %v710_v40 = vadd.f32 %v1057_v37, %v661_v19  ;;  %v701_v42 = vpop.f32.mrb[11].mxu0  ;;  %v791_v24 = vld [vmem:[%s1349_s3] sm:$0x1] }
 0x130   : > { %v721_v43 = vadd.f32 %v717_v28, %v699_v35  ;;  %v702_v44 = vadd.f32 %v701_v42, %v653_v5 }
 0x131   : > { %v735_v46 = vadd.f32 %v731_v31, %v723_v39  ;;  %759 = vst [vmem:[#allocation2 + $0x10] sm:$0xff] %v723_v39  ;;  %v724_v47 = vadd.f32 %v720_v33, %v710_v40 }
 0x132   : > { %v733_v48 = vadd.f32 %v729_v36, %v721_v43  ;;  %757 = vst [vmem:[#allocation2] sm:$0xff] %v721_v43  ;;  %v722_v49 = vadd.f32 %v718_v38, %v702_v44 }
 0x133   : > { %vm739_vm0 = vcmp.ge.f32.partialorder %v735_v46, 1.0  ;;  %v736_v50 = vadd.f32 %v732_v41, %v724_v47  ;;  %760 = vst [vmem:[#allocation2 + $0x18] sm:$0xff] %v724_v47 }
 0x134   : > { %v966_v52 = vsel %vm739_vm0, 1.0, %v1150_v51  ;;  %vm737_vm1 = vcmp.ge.f32.partialorder %v733_v48, 1.0  ;;  %v734_v53 = vadd.f32 %v730_v45, %v722_v49  ;;  %758 = vst [vmem:[#allocation2 + $0x8] sm:$0xff] %v722_v49 }
 0x135   : > { %v751_v54 = vsub.f32 %v735_v46, %v966_v52  ;;  %v964_v55 = vsel %vm737_vm1, 1.0, %v1150_v51  ;;  %vm740_vm2 = vcmp.ge.f32.partialorder %v736_v50, 1.0  ;;  %v763_v58 = vtrunc.f32 %v966_v52 }
 0x136   : > { %v749_v56 = vsub.f32 %v733_v48, %v964_v55  ;;  %v967_v57 = vsel %vm740_vm2, 1.0, %v1150_v51  ;;  %vm738_vm3 = vcmp.ge.f32.partialorder %v734_v53, 1.0  ;;  %v761_v62 = vtrunc.f32 %v964_v55 }
 0x137   : > { %755 = vst [vmem:[#allocation3 + $0x10] sm:$0xff] %v751_v54  ;;  %v752_v59 = vsub.f32 %v736_v50, %v967_v57  ;;  %v764_v60 = vtrunc.f32 %v967_v57  ;;  %v965_v61 = vsel %vm738_vm3, 1.0, %v1150_v51 }
 0x138   : > { %753 = vst [vmem:[#allocation3] sm:$0xff] %v749_v56  ;;  %v750_v63 = vsub.f32 %v734_v53, %v965_v61  ;;  %v762_v0 = vtrunc.f32 %v965_v61  ;;  %v792_v1 = vadd.f32 %v965_v61, %v964_v55 }
 0x139   : > { %756 = vst [vmem:[#allocation3 + $0x18] sm:$0xff] %v752_v59  ;;  %v769_v2 = vpack.c.f32.eXmY %v763_v58, %v764_v60, 312 }
 0x13a   : > { %754 = vst [vmem:[#allocation3 + $0x8] sm:$0xff] %v750_v63  ;;  %v765_v3 = vpack.c.f32.eXmY %v761_v62, %v762_v0, 312  ;;  %v793_v4 = vadd.f32 %v966_v52, %v792_v1 }
 0x13c   : > { %v773_v5 = vpack.c.b8 %v769_v2, %v765_v3  ;;  %v794_v6 = vadd.f32 %v967_v57, %v793_v4 }
 0x13e   : > { %v775_v7 = vunpack.c.0.s8 %v773_v5  ;;  %v776_v8 = vunpack.c.1.s8 %v773_v5  ;;  %v777_v9 = vunpack.c.2.s8 %v773_v5  ;;  %v778_v10 = vunpack.c.3.s8 %v773_v5 }
 0x13f   : > { %v795_v11 = vrot.slane %v794_v6, 4 }
 0x140   : > { %v779_v12 = vpack.c.b16 %v775_v7, %v775_v7  ;;  %v781_v13 = vpack.c.b16 %v776_v8, %v776_v8  ;;  %v783_v14 = vpack.c.b16 %v777_v9, %v777_v9  ;;  %v785_v15 = vpack.c.b16 %v778_v10, %v778_v10 }
 0x141   : > { %v796_v16 = vadd.f32 %v795_v11, %v794_v6 }
 0x142   : > { %v780_v17 = vpack.c.b8 %v779_v12, %v779_v12  ;;  %v782_v18 = vpack.c.b8 %v781_v13, %v781_v13  ;;  %v784_v19 = vpack.c.b8 %v783_v14, %v783_v14  ;;  %v786_v20 = vpack.c.b8 %v785_v15, %v785_v15 }
 0x143   : > { %v797_v21 = vrot.slane %v796_v16, 2 }
 0x144   : > { %787 = vst [vmem:[%s1192_s21] sm:$0x3] %v780_v17  ;;  %788 = vst [vmem:[%s1192_s21 + $0x2] sm:$0x3] %v782_v18 }
 0x145   : > { %789 = vst [vmem:[%s1192_s21 + $0x4] sm:$0x3] %v784_v19  ;;  %790 = vst [vmem:[%s1192_s21 + $0x6] sm:$0x3] %v786_v20  ;;  %v798_v22 = vadd.f32 %v797_v21, %v796_v16 }
 0x147   : > { %v799_v23 = vrot.slane %v798_v22, 1 }
 0x149   : > { %v800_v25 = vadd.f32 %v799_v23, %v798_v22 }
 0x14b   : > { %v801_v26 = vadd.f32 %v800_v25, %v791_v24 }
 0x14d   : > { %802 = vst [vmem:[%s1349_s3] sm:$0x1] %v801_v26 }
 0x14e PF: > { %s14_s14 = sadd.s32 1, %s1147_s14   ;;  %s1350_s12 = smov %s1143_s13 }
 0x14f   : > { %p11_p6 = scmp.ge.s32.totalorder %s14_s14, 10   ;;  %s1351_s13 = smov %s1353_s15 }
 0x151   :  { %13 = sbr.rel (!%p11_p6) target bundleno = 2 (0x2), region = 74 }

// kernel: _lambda_.13
= control target key start
LH: loop header
LB: loop body
LE: loop exit
PB: predicated region body
PF: predicated region fallthrough
CT: control target
= control target key end

     0   :  { %s394_s9 = smov 0   ;;  %s396_s10 = smov 0   ;;  %s436_s0 = inlined_call_operand.vmem [shape: s8[8,8,128], index: 0, kind: input, shape index: {}]   ;;  %s437_s1 = inlined_call_operand.vmem [shape: s8[8,8,128], index: 1, kind: output, shape index: {0}]   ;;  %s438_s2 = inlined_call_operand.vmem [shape: f32[1,1,128], index: 2, kind: output, shape index: {1}]  }
   0x1   :  { %s398_s11 = smov 0  }
   0x2 LB: > { %s22_s12 = sadd.s32 1, %s371_s10  ;;  %p319_p0 = scmp.ge.s32.totalorder %s375_s11, 1  ;;  %s375_s11 = sphi %s398_s11, %s13_s11   ;;  %s371_s10 = sphi %s396_s10, %s440_s10   ;;  %s367_s9 = sphi %s394_s9, %s439_s9  }
   0x3   : > { %p23_p1 = scmp.ge.s32.totalorder %s22_s12, 8  ;;  %p133_p2 = scmp.lt.s32.totalorder %s375_s11, 9 }
   0x5   : > { %s442_s12 = smov (%p23_p1, %s22_s12), 0  ;;  %p134_p3 = pnand %p319_p0, %p133_p2 }
   0x6   : > { %p162_p4 = scmp.lt.s32.totalorder (!%p134_p3), %s367_s9, 7  ;;  %p322_p5 = scmp.ne.s32.totalorder (!%p134_p3), %s367_s9, 0 }
   0x7   : > { %137 = sbr.rel (%p134_p3) target bundleno = 48 (0x30), region = 24 }
   0xe   : > { %s163_s13 = scalar_select %p162_p4, %s367_s9, 7 }
   0xf   : > { %182 = sbr.rel (%p322_p5) target bundleno = 22 (0x16), region = 28  ;;  %v377_v0 = vmov (!%p322_p5), 0.0  }
  0x10   : > { %s320_s14 = sshll.u32 %s163_s13, 1  ;;  %183 = vst [vmem:[#allocation2] sm:$0xff] (!%p322_p5), %v377_v0  ;;  %184 = vst [vmem:[#allocation3] sm:$0xff] (!%p322_p5), %v377_v0 }
  0x11   : > { %s168_s17 = scalar_lea.vmem %s436_s0, %s320_s14  ;;  %s175_s20 = scalar_lea.vmem %s437_s1, %s320_s14  ;;  %185 = vst [vmem:[%s438_s2] sm:$0x1] (!%p322_p5), %v377_v0 }
  0x16 PF: > { %v186_v1 = vld [vmem:[%s168_s17] sm:$0x3]  ;;  %v378_v10 = vmov 0.0  }
  0x17   : > { %v189_v2 = vld [vmem:[#allocation2] sm:$0xff]  ;;  %v192_v3 = vld [vmem:[#allocation3] sm:$0xff]  ;;  %v187_v4 = vunpack.c.0.s8 %v186_v1 }
  0x18   : > { %v190_v5 = vmul.f32 0.8187308, %v189_v2  ;;  %v193_v7 = vmul.f32 0.95122945, %v192_v3  ;;  %v209_v21 = vld [vmem:[%s438_s2] sm:$0x1] }
  0x19   : > { %v188_v6 = vcvt.s32.f32 %v187_v4 }
  0x1b   : > { %v191_v8 = vadd.f32 %v190_v5, %v188_v6 }
  0x1d   : > { %v194_v9 = vadd.f32 %v193_v7, %v191_v8  ;;  %200 = vst [vmem:[#allocation2] sm:$0xff] %v191_v8 }
  0x1f   : > { %vm195_vm0 = vcmp.ge.f32.partialorder %v194_v9, 1.0 }
  0x20   : > { %v323_v11 = vsel %vm195_vm0, 1.0, %v378_v10 }
  0x21   : > { %v198_v12 = vsub.f32 %v194_v9, %v323_v11  ;;  %v201_v13 = vtrunc.f32 %v323_v11  ;;  %v210_v14 = vrot.slane %v323_v11, 4 }
  0x23   : > { %199 = vst [vmem:[#allocation3] sm:$0xff] %v198_v12  ;;  %v202_v15 = vpack.c.f32.eXmY %v201_v13, %v201_v13, 312  ;;  %v211_v16 = vadd.f32 %v323_v11, %v210_v14 }
  0x25   : > { %v206_v17 = vpack.c.b8 %v202_v15, %v202_v15  ;;  %v212_v18 = vrot.slane %v211_v16, 2 }
  0x27   : > { %208 = vst [vmem:[%s175_s20] sm:$0x3] %v206_v17  ;;  %v213_v19 = vadd.f32 %v212_v18, %v211_v16 }
  0x29   : > { %v214_v20 = vrot.slane %v213_v19, 1 }
  0x2b   : > { %v215_v22 = vadd.f32 %v214_v20, %v213_v19 }
  0x2d   : > { %v216_v23 = vadd.f32 %v215_v22, %v209_v21 }
  0x2f   : > { %217 = vst [vmem:[%s438_s2] sm:$0x1] %v216_v23 }
  0x30 PF: > { %s13_s11 = sadd.s32 1, %s375_s11   ;;  %s439_s9 = smov %s371_s10 }
  0x31   : > { %p10_p6 = scmp.ge.s32.totalorder %s13_s11, 10   ;;  %s440_s10 = smov %s442_s12 }
  0x33   :  { %12 = sbr.rel (!%p10_p6) target bundleno = 2 (0x2), region = 70 }

// kernel: _lambda_.14
= control target key start
LH: loop header
LB: loop body
LE: loop exit
PB: predicated region body
PF: predicated region fallthrough
CT: control target
= control target key end

     0   :  { %s935_s1 = inlined_call_operand.vmem [shape: bf16[512,256], index: 1, kind: input, shape index: {}]   ;;  %s936_s0 = inlined_call_operand.vmem [shape: s8[16,512], index: 0, kind: input, shape index: {}]   ;;  %s937_s2 = inlined_call_operand.vmem [shape: f32[16,256], index: 2, kind: output, shape index: {}]  }
   0x1   :  { %v614_v0 = vld [vmem:[%s935_s1 + $0x4] ss:$8 sps:$4 sm:$0xff]   ;;  %v618_v2 = vld [vmem:[%s935_s1] ss:$8 sps:$4 sm:$0xff]   ;;  %v620_v4 = vld [vmem:[%s935_s1 + $0x14] ss:$8 sps:$4 sm:$0xff]  }
   0x2   :  { %v616_v1 = vld [vmem:[%s935_s1 + $0x104] ss:$8 sps:$4 sm:$0xff]   ;;  %433 = vmatprep.subr.bf16.mxu1 %v614_v0  ;;  %v619_v3 = vld [vmem:[%s935_s1 + $0x100] ss:$8 sps:$4 sm:$0xff]   ;;  %v622_v5 = vld [vmem:[%s935_s1 + $0x114] ss:$8 sps:$4 sm:$0xff]  }
   0x3   :  { %476 = vmatprep.subr.bf16.mxu0 %v616_v1  ;;  %434 = vmatpush1.bf16.msra.mxu1 %v618_v2  ;;  %v624_v6 = vld [vmem:[%s935_s1 + $0x10] ss:$8 sps:$4 sm:$0xff]   ;;  %v626_v8 = vld [vmem:[%s935_s1 + $0x24] ss:$8 sps:$4 sm:$0xff]   ;;  %v630_v10 = vld [vmem:[%s935_s1 + $0x20] ss:$8 sps:$4 sm:$0xff]  }
   0x4   :  { %477 = vmatpush1.bf16.msra.mxu0 %v619_v3  ;;  %435 = vmatprep.subr.bf16.mxu1 %v620_v4  ;;  %v625_v7 = vld [vmem:[%s935_s1 + $0x110] ss:$8 sps:$4 sm:$0xff]   ;;  %v628_v9 = vld [vmem:[%s935_s1 + $0x124] ss:$8 sps:$4 sm:$0xff]   ;;  %v631_v11 = vld [vmem:[%s935_s1 + $0x120] ss:$8 sps:$4 sm:$0xff]  }
   0x5   :  { %478 = vmatprep.subr.bf16.mxu0 %v622_v5  ;;  %v632_v12 = vld [vmem:[%s935_s1 + $0x34] ss:$8 sps:$4 sm:$0xff]   ;;  %v636_v14 = vld [vmem:[%s935_s1 + $0x30] ss:$8 sps:$4 sm:$0xff]   ;;  %v638_v16 = vld [vmem:[%s935_s1 + $0x44] ss:$8 sps:$4 sm:$0xff]  }
   0x6   :  { %v634_v13 = vld [vmem:[%s935_s1 + $0x134] ss:$8 sps:$4 sm:$0xff]   ;;  %v637_v15 = vld [vmem:[%s935_s1 + $0x130] ss:$8 sps:$4 sm:$0xff]   ;;  %v640_v17 = vld [vmem:[%s935_s1 + $0x144] ss:$8 sps:$4 sm:$0xff]  }
   0x7   :  { %436 = vmatpush1.bf16.msra.mxu1 %v624_v6  ;;  %v642_v18 = vld [vmem:[%s935_s1 + $0x40] ss:$8 sps:$4 sm:$0xff]   ;;  %v644_v20 = vld [vmem:[%s935_s1 + $0x54] ss:$8 sps:$4 sm:$0xff]   ;;  %v648_v22 = vld [vmem:[%s935_s1 + $0x50] ss:$8 sps:$4 sm:$0xff]  }
   0x8   :  { %479 = vmatpush1.bf16.msra.mxu0 %v625_v7  ;;  %437 = vmatprep.subr.bf16.mxu1 %v626_v8  ;;  %v643_v19 = vld [vmem:[%s935_s1 + $0x140] ss:$8 sps:$4 sm:$0xff]   ;;  %v646_v21 = vld [vmem:[%s935_s1 + $0x154] ss:$8 sps:$4 sm:$0xff]   ;;  %v649_v23 = vld [vmem:[%s935_s1 + $0x150] ss:$8 sps:$4 sm:$0xff]  }
   0x9   :  { %480 = vmatprep.subr.bf16.mxu0 %v628_v9  ;;  %v650_v24 = vld [vmem:[%s935_s1 + $0x64] ss:$8 sps:$4 sm:$0xff]   ;;  %v654_v26 = vld [vmem:[%s935_s1 + $0x60] ss:$8 sps:$4 sm:$0xff]   ;;  %v656_v28 = vld [vmem:[%s935_s1 + $0x74] ss:$8 sps:$4 sm:$0xff]  }
   0xa   :  { %v652_v25 = vld [vmem:[%s935_s1 + $0x164] ss:$8 sps:$4 sm:$0xff]   ;;  %v655_v27 = vld [vmem:[%s935_s1 + $0x160] ss:$8 sps:$4 sm:$0xff]   ;;  %v658_v29 = vld [vmem:[%s935_s1 + $0x174] ss:$8 sps:$4 sm:$0xff]  }
   0xb   :  { %438 = vmatpush1.bf16.msra.mxu1 %v630_v10  ;;  %v660_v30 = vld [vmem:[%s935_s1 + $0x70] ss:$8 sps:$4 sm:$0xff]   ;;  %v662_v32 = vld [vmem:[%s935_s1 + $0x84] ss:$8 sps:$4 sm:$0xff]   ;;  %v666_v34 = vld [vmem:[%s935_s1 + $0x80] ss:$8 sps:$4 sm:$0xff]  }
   0xc   :  { %481 = vmatpush1.bf16.msra.mxu0 %v631_v11  ;;  %439 = vmatprep.subr.bf16.mxu1 %v632_v12  ;;  %v661_v31 = vld [vmem:[%s935_s1 + $0x170] ss:$8 sps:$4 sm:$0xff]   ;;  %v664_v33 = vld [vmem:[%s935_s1 + $0x184] ss:$8 sps:$4 sm:$0xff]   ;;  %v667_v35 = vld [vmem:[%s935_s1 + $0x180] ss:$8 sps:$4 sm:$0xff]  }
   0xd   :  { %482 = vmatprep.subr.bf16.mxu0 %v634_v13  ;;  %v668_v36 = vld [vmem:[%s935_s1 + $0x94] ss:$8 sps:$4 sm:$0xff]   ;;  %v672_v38 = vld [vmem:[%s935_s1 + $0x90] ss:$8 sps:$4 sm:$0xff]   ;;  %v674_v40 = vld [vmem:[%s935_s1 + $0xa4] ss:$8 sps:$4 sm:$0xff]  }
   0xe   :  { %v670_v37 = vld [vmem:[%s935_s1 + $0x194] ss:$8 sps:$4 sm:$0xff]   ;;  %v673_v39 = vld [vmem:[%s935_s1 + $0x190] ss:$8 sps:$4 sm:$0xff]   ;;  %v676_v41 = vld [vmem:[%s935_s1 + $0x1a4] ss:$8 sps:$4 sm:$0xff]  }
   0xf   :  { %440 = vmatpush1.bf16.msra.mxu1 %v636_v14  ;;  %v678_v42 = vld [vmem:[%s935_s1 + $0xa0] ss:$8 sps:$4 sm:$0xff]   ;;  %v680_v44 = vld [vmem:[%s935_s1 + $0xb4] ss:$8 sps:$4 sm:$0xff]   ;;  %v684_v50 = vld [vmem:[%s935_s1 + $0xb0] ss:$8 sps:$4 sm:$0xff]  }
  0x10   :  { %483 = vmatpush1.bf16.msra.mxu0 %v637_v15  ;;  %441 = vmatprep.subr.bf16.mxu1 %v638_v16  ;;  %v679_v43 = vld [vmem:[%s935_s1 + $0x1a0] ss:$8 sps:$4 sm:$0xff]   ;;  %v682_v45 = vld [vmem:[%s935_s1 + $0x1b4] ss:$8 sps:$4 sm:$0xff]   ;;  %v685_v51 = vld [vmem:[%s935_s1 + $0x1b0] ss:$8 sps:$4 sm:$0xff]  }
  0x11   :  { %484 = vmatprep.subr.bf16.mxu0 %v640_v17  ;;  %v19_v46 = vld [vmem:[%s936_s0] sm:$0xff]  ;;  %v20_v47 = vld [vmem:[%s936_s0 + $0x8] sm:$0xff]  ;;  %v692_v60 = vld [vmem:[%s935_s1 + $0xd4] ss:$8 sps:$4 sm:$0xff]  }
  0x12   :  { %v21_v48 = vunpack.c.l.s8.bf16 %v19_v46  ;;  %v22_v49 = vunpack.c.h.s8.bf16 %v19_v46  ;;  %v23_v52 = vunpack.c.l.s8.bf16 %v20_v47  ;;  %v24_v53 = vunpack.c.h.s8.bf16 %v20_v47  ;;  %v686_v54 = vld [vmem:[%s935_s1 + $0xc4] ss:$8 sps:$4 sm:$0xff]   ;;  %v690_v58 = vld [vmem:[%s935_s1 + $0xc0] ss:$8 sps:$4 sm:$0xff]   ;;  %v694_v61 = vld [vmem:[%s935_s1 + $0x1d4] ss:$8 sps:$4 sm:$0xff]  }
  0x13   :  { %442 = vmatpush1.bf16.msra.mxu1 %v642_v18  ;;  %v688_v55 = vld [vmem:[%s935_s1 + $0x1c4] ss:$8 sps:$4 sm:$0xff]   ;;  %v691_v59 = vld [vmem:[%s935_s1 + $0x1c0] ss:$8 sps:$4 sm:$0xff]   ;;  %v696_v62 = vld [vmem:[%s935_s1 + $0xd0] ss:$8 sps:$4 sm:$0xff]  }
  0x14   :  { %485 = vmatpush1.bf16.msra.mxu0 %v643_v19  ;;  %443 = vmatprep.subr.bf16.mxu1 %v644_v20  ;;  %v543_v56 = vcombine.high %v21_v48, %v23_v52  ;;  %v545_v57 = vcombine.high %v22_v49, %v24_v53  ;;  %v697_v63 = vld [vmem:[%s935_s1 + $0x1d0] ss:$8 sps:$4 sm:$0xff]   ;;  %v698_v0 = vld [vmem:[%s935_s1 + $0xe4] ss:$8 sps:$4 sm:$0xff]   ;;  %v702_v2 = vld [vmem:[%s935_s1 + $0xe0] ss:$8 sps:$4 sm:$0xff]   ;;  %v542_v8 = vcombine.low %v21_v48, %v23_v52 }
  0x15   :  { %486 = vmatprep.subr.bf16.mxu0 %v646_v21  ;;  %v700_v1 = vld [vmem:[%s935_s1 + $0x1e4] ss:$8 sps:$4 sm:$0xff]   ;;  %v703_v3 = vld [vmem:[%s935_s1 + $0x1e0] ss:$8 sps:$4 sm:$0xff]   ;;  %v704_v4 = vld [vmem:[%s935_s1 + $0xf4] ss:$8 sps:$4 sm:$0xff]   ;;  %v544_v9 = vcombine.low %v22_v49, %v24_v53 }
  0x16   :  { %465 = vmatprep.mubr.bf16.mxu1 %v543_v56  ;;  %508 = vmatprep.mubr.bf16.mxu0 %v545_v57  ;;  %v706_v5 = vld [vmem:[%s935_s1 + $0x1f4] ss:$8 sps:$4 sm:$0xff]   ;;  %v708_v6 = vld [vmem:[%s935_s1 + $0xf0] ss:$8 sps:$4 sm:$0xff]  }
  0x17   :  { %444 = vmatpush1.bf16.msra.mxu1 %v648_v22  ;;  %v709_v7 = vld [vmem:[%s935_s1 + $0x1f0] ss:$8 sps:$4 sm:$0xff]  }
  0x18   :  { %487 = vmatpush1.bf16.msra.mxu0 %v649_v23  ;;  %445 = vmatprep.subr.bf16.mxu1 %v650_v24 }
  0x19   :  { %488 = vmatprep.subr.bf16.mxu0 %v652_v25 }
  0x1b   :  { %446 = vmatpush1.bf16.msra.mxu1 %v654_v26 }
  0x1c   :  { %489 = vmatpush1.bf16.msra.mxu0 %v655_v27  ;;  %447 = vmatprep.subr.bf16.mxu1 %v656_v28 }
  0x1d   :  { %490 = vmatprep.subr.bf16.mxu0 %v658_v29 }
  0x1f   :  { %448 = vmatpush1.bf16.msra.mxu1 %v660_v30 }
  0x20   :  { %491 = vmatpush1.bf16.msra.mxu0 %v661_v31  ;;  %449 = vmatprep.subr.bf16.mxu1 %v662_v32 }
  0x21   :  { %492 = vmatprep.subr.bf16.mxu0 %v664_v33 }
  0x23   :  { %450 = vmatpush1.bf16.msra.mxu1 %v666_v34 }
  0x24   :  { %493 = vmatpush1.bf16.msra.mxu0 %v667_v35  ;;  %451 = vmatprep.subr.bf16.mxu1 %v668_v36 }
  0x25   :  { %494 = vmatprep.subr.bf16.mxu0 %v670_v37 }
  0x27   :  { %452 = vmatpush1.bf16.msra.mxu1 %v672_v38 }
  0x28   :  { %495 = vmatpush1.bf16.msra.mxu0 %v673_v39  ;;  %453 = vmatprep.subr.bf16.mxu1 %v674_v40 }
  0x29   :  { %496 = vmatprep.subr.bf16.mxu0 %v676_v41 }
  0x2b   :  { %454 = vmatpush1.bf16.msra.mxu1 %v678_v42 }
  0x2c   :  { %497 = vmatpush1.bf16.msra.mxu0 %v679_v43  ;;  %455 = vmatprep.subr.bf16.mxu1 %v680_v44 }
  0x2d   :  { %498 = vmatprep.subr.bf16.mxu0 %v682_v45 }
  0x2f   :  { %456 = vmatpush1.bf16.msra.mxu1 %v684_v50 }
  0x30   :  { %499 = vmatpush1.bf16.msra.mxu0 %v685_v51  ;;  %457 = vmatprep.subr.bf16.mxu1 %v686_v54 }
  0x31   :  { %500 = vmatprep.subr.bf16.mxu0 %v688_v55 }
  0x33   :  { %458 = vmatpush1.bf16.msra.mxu1 %v690_v58 }
  0x34   :  { %501 = vmatpush1.bf16.msra.mxu0 %v691_v59  ;;  %459 = vmatprep.subr.bf16.mxu1 %v692_v60 }
  0x35   :  { %502 = vmatprep.subr.bf16.mxu0 %v694_v61 }
  0x37   :  { %460 = vmatpush1.bf16.msra.mxu1 %v696_v62 }
  0x38   :  { %503 = vmatpush1.bf16.msra.mxu0 %v697_v63  ;;  %461 = vmatprep.subr.bf16.mxu1 %v698_v0 }
  0x39   :  { %504 = vmatprep.subr.bf16.mxu0 %v700_v1 }
  0x3b   :  { %462 = vmatpush1.bf16.msra.mxu1 %v702_v2 }
  0x3c   :  { %505 = vmatpush1.bf16.msra.mxu0 %v703_v3  ;;  %463 = vmatprep.subr.bf16.mxu1 %v704_v4 }
  0x3d   :  { %506 = vmatprep.subr.bf16.mxu0 %v706_v5 }
  0x3f   :  { %464 = vmatpush1.bf16.msra.mxu1 %v708_v6 }
  0x40   :  { %507 = vmatpush1.bf16.msra.mxu0 %v709_v7 }
  0x42   :  { %466 = vmatmul.mubr.bf16.vlgmr.msra.gmra.mrb[0].mxu1 %v542_v8 }
  0x43   :  { %509 = vmatmul.mubr.bf16.vlgmr.msra.gmra.mrb[0].mxu0 %v544_v9 }
 0x115   :  { %v467_v10 = vpop.f32.mrb[0].mxu1 }
 0x116   :  { %v510_v11 = vpop.f32.mrb[0].mxu0  ;;  %v469_v13 = vpop.f32.mrb[1].mxu1 }
 0x117   :  { %v511_v12 = vadd.f32 %v510_v11, %v467_v10  ;;  %v512_v14 = vpop.f32.mrb[1].mxu0  ;;  %v471_v16 = vpop.f32.mrb[2].mxu1 }
 0x118   :  { %v513_v15 = vadd.f32 %v512_v14, %v469_v13  ;;  %v514_v17 = vpop.f32.mrb[2].mxu0  ;;  %v473_v19 = vpop.f32.mrb[3].mxu1 }
 0x119   :  { %534 = vst [vmem:[%s937_s2] sm:$0xff] %v511_v12  ;;  %v515_v18 = vadd.f32 %v514_v17, %v471_v16  ;;  %v516_v20 = vpop.f32.mrb[3].mxu0 }
 0x11a   :  { %535 = vst [vmem:[%s937_s2 + $0x8] sm:$0xff] %v513_v15  ;;  %v517_v21 = vadd.f32 %v516_v20, %v473_v19 }
 0x11b   :  { %536 = vst [vmem:[%s937_s2 + $0x10] sm:$0xff] %v515_v18 }
 0x11c   :  { %537 = vst [vmem:[%s937_s2 + $0x18] sm:$0xff] %v517_v21 }

// kernel: _lambda_.15
= control target key start
LH: loop header
LB: loop body
LE: loop exit
PB: predicated region body
PF: predicated region fallthrough
CT: control target
= control target key end

     0   :  { %v19_v0 = vlaneseq  ;;  %v477_v1 = vmov 0   ;;  %v478_v2 = vmov 0.0   ;;  %s511_s14 = smov 0   ;;  %s632_s0 = inlined_call_operand.vmem [shape: f32[8,8,256], index: 0, kind: input, shape index: {}]   ;;  %s633_s1 = inlined_call_operand.vmem [shape: bf16[256,256], index: 1, kind: input, shape index: {}]   ;;  %s634_s2 = inlined_call_operand.vmem [shape: bf16[8,8,256], index: 2, kind: output, shape index: {0}]   ;;  %s635_s3 = inlined_call_operand.vmem [shape: f32[1,1,256], index: 3, kind: output, shape index: {1}]  }
   0x1   :  { %14 = vst [vmem:[#allocation2] sm:$0xff] %v477_v1  ;;  %15 = vst [vmem:[#allocation3] sm:$0xff] %v478_v2 }
   0x2   :  { %16 = vst [vmem:[#allocation3 + $0x8] sm:$0xff] %v478_v2  ;;  %17 = vst [vmem:[#allocation4] sm:$0xff] %v478_v2  ;;  %vm502_vm0 = vcmp.lt.s32.totalorder %v19_v0, 256 }
   0x3   :  { %18 = vst [vmem:[#allocation4 + $0x8] sm:$0xff] %v478_v2  ;;  %23 = vst.msk [vmem:[%s635_s3] sm:$0x3] %vm502_vm0, %v478_v2 }
   0x4 LB: > { %v419_v4 = vld [vmem:[%s633_s1 + $0x4] ss:$8 sps:$4 sm:$0xff]   ;;  %v421_v5 = vld [vmem:[%s633_s1] ss:$8 sps:$4 sm:$0xff]   ;;  %v422_v6 = vld [vmem:[%s633_s1 + $0x14] ss:$8 sps:$4 sm:$0xff]   ;;  %s475_s14 = sphi %s511_s14, %s29_s14  }
   0x5   : > { %235 = vmatprep.subr.bf16.mxu0 %v419_v4  ;;  %v424_v7 = vld [vmem:[%s633_s1 + $0x10] ss:$8 sps:$4 sm:$0xff]   ;;  %v425_v8 = vld [vmem:[%s633_s1 + $0x24] ss:$8 sps:$4 sm:$0xff]   ;;  %v427_v9 = vld [vmem:[%s633_s1 + $0x20] ss:$8 sps:$4 sm:$0xff]  }
   0x6   : > { %236 = vmatpush1.bf16.msra.mxu0 %v421_v5  ;;  %v428_v10 = vld [vmem:[%s633_s1 + $0x34] ss:$8 sps:$4 sm:$0xff]   ;;  %v430_v11 = vld [vmem:[%s633_s1 + $0x30] ss:$8 sps:$4 sm:$0xff]   ;;  %v431_v12 = vld [vmem:[%s633_s1 + $0x44] ss:$8 sps:$4 sm:$0xff]  }
   0x7   : > { %237 = vmatprep.subr.bf16.mxu0 %v422_v6  ;;  %v433_v13 = vld [vmem:[%s633_s1 + $0x40] ss:$8 sps:$4 sm:$0xff]   ;;  %v434_v14 = vld [vmem:[%s633_s1 + $0x54] ss:$8 sps:$4 sm:$0xff]   ;;  %v436_v15 = vld [vmem:[%s633_s1 + $0x50] ss:$8 sps:$4 sm:$0xff]  }
   0x8   : > { %v437_v16 = vld [vmem:[%s633_s1 + $0x64] ss:$8 sps:$4 sm:$0xff]   ;;  %v439_v19 = vld [vmem:[%s633_s1 + $0x60] ss:$8 sps:$4 sm:$0xff]   ;;  %v440_v20 = vld [vmem:[%s633_s1 + $0x74] ss:$8 sps:$4 sm:$0xff]  }
   0x9   : > { %v35_v17 = vld [vmem:[#allocation2] sm:$0xff]  ;;  %v442_v21 = vld [vmem:[%s633_s1 + $0x70] ss:$8 sps:$4 sm:$0xff]   ;;  %v446_v24 = vld [vmem:[%s633_s1 + $0x94] ss:$8 sps:$4 sm:$0xff]   ;;  %s404_s27 = sshll.u32 %s475_s14, 4 }
   0xa   : > { %238 = vmatpush1.bf16.msra.mxu0 %v424_v7  ;;  %v367_v18 = vcombine.high %v35_v17, %v35_v17  ;;  %v443_v22 = vld [vmem:[%s633_s1 + $0x84] ss:$8 sps:$4 sm:$0xff]   ;;  %v445_v23 = vld [vmem:[%s633_s1 + $0x80] ss:$8 sps:$4 sm:$0xff]   ;;  %v448_v25 = vld [vmem:[%s633_s1 + $0x90] ss:$8 sps:$4 sm:$0xff]   ;;  %v366_v38 = vcombine.low %v35_v17, %v35_v17  ;;  %s32_s30 = scalar_lea.vmem %s632_s0, %s404_s27 }
   0xb   : > { %239 = vmatprep.subr.bf16.mxu0 %v425_v8  ;;  %v449_v26 = vld [vmem:[%s633_s1 + $0xa4] ss:$8 sps:$4 sm:$0xff]   ;;  %v451_v27 = vld [vmem:[%s633_s1 + $0xa0] ss:$8 sps:$4 sm:$0xff]   ;;  %v452_v28 = vld [vmem:[%s633_s1 + $0xb4] ss:$8 sps:$4 sm:$0xff]  }
   0xc   : > { %267 = vmatprep.mubr.bf16.mxu0 %v367_v18  ;;  %v454_v29 = vld [vmem:[%s633_s1 + $0xb0] ss:$8 sps:$4 sm:$0xff]   ;;  %v455_v30 = vld [vmem:[%s633_s1 + $0xc4] ss:$8 sps:$4 sm:$0xff]   ;;  %v457_v31 = vld [vmem:[%s633_s1 + $0xc0] ss:$8 sps:$4 sm:$0xff]  }
   0xd   : > { %v458_v32 = vld [vmem:[%s633_s1 + $0xd4] ss:$8 sps:$4 sm:$0xff]   ;;  %v460_v33 = vld [vmem:[%s633_s1 + $0xd0] ss:$8 sps:$4 sm:$0xff]   ;;  %v461_v34 = vld [vmem:[%s633_s1 + $0xe4] ss:$8 sps:$4 sm:$0xff]  }
   0xe   : > { %240 = vmatpush1.bf16.msra.mxu0 %v427_v9  ;;  %v463_v35 = vld [vmem:[%s633_s1 + $0xe0] ss:$8 sps:$4 sm:$0xff]   ;;  %v464_v36 = vld [vmem:[%s633_s1 + $0xf4] ss:$8 sps:$4 sm:$0xff]   ;;  %v466_v37 = vld [vmem:[%s633_s1 + $0xf0] ss:$8 sps:$4 sm:$0xff]  }
   0xf   : > { %241 = vmatprep.subr.bf16.mxu0 %v428_v10  ;;  %v278_v39 = vld [vmem:[#allocation3] sm:$0xff]  ;;  %v279_v40 = vld [vmem:[#allocation3 + $0x8] sm:$0xff]  ;;  %v33_v41 = vld [vmem:[%s32_s30] sm:$0xff]  ;;  %s406_s4 = sshll.u32 %s475_s14, 3  ;;  %v479_v59 = vmov 0.0   ;;  %s29_s14 = sadd.s32 1, %s475_s14  }
  0x10   : > { %v284_v42 = vld [vmem:[#allocation4] sm:$0xff]  ;;  %v280_v43 = vmul.f32 0.8187308, %v278_v39  ;;  %v34_v44 = vld [vmem:[%s32_s30 + $0x8] sm:$0xff]  ;;  %v285_v45 = vld [vmem:[#allocation4 + $0x8] sm:$0xff]  ;;  %s312_s7 = scalar_lea.vmem %s634_s2, %s406_s4  ;;  %p26_p0 = scmp.ge.s32.totalorder %s29_s14, 8  }
  0x11   : > { %v281_v47 = vmul.f32 0.8187308, %v279_v40  ;;  %v286_v49 = vmul.f32 0.95122945, %v284_v42  ;;  %v287_v52 = vmul.f32 0.95122945, %v285_v45 }
  0x12   : > { %242 = vmatpush1.bf16.msra.mxu0 %v430_v11  ;;  %v480_v7 = vmov 1966171168  }
  0x13   : > { %243 = vmatprep.subr.bf16.mxu0 %v431_v12  ;;  %v331_v8 = vunpack.c.l.s4 %v480_v7 }
  0x16   : > { %244 = vmatpush1.bf16.msra.mxu0 %v433_v13  ;;  %v332_v13 = vunpack.c.0.s8 %v331_v8 }
  0x17   : > { %245 = vmatprep.subr.bf16.mxu0 %v434_v14  ;;  %v334_v14 = vshrl.u32 %v19_v0, 7 }
  0x1a   : > { %246 = vmatpush1.bf16.msra.mxu0 %v436_v15 }
  0x1b   : > { %247 = vmatprep.subr.bf16.mxu0 %v437_v16 }
  0x1e   : > { %248 = vmatpush1.bf16.msra.mxu0 %v439_v19  ;;  %v335_v19 = vsub.s32 %v332_v13, %v334_v14 }
  0x1f   : > { %249 = vmatprep.subr.bf16.mxu0 %v440_v20 }
  0x22   : > { %250 = vmatpush1.bf16.msra.mxu0 %v442_v21 }
  0x23   : > { %251 = vmatprep.subr.bf16.mxu0 %v443_v22  ;;  %v314_v22 = vld [vmem:[%s635_s3] sm:$0x3] }
  0x26   : > { %252 = vmatpush1.bf16.msra.mxu0 %v445_v23 }
  0x27   : > { %253 = vmatprep.subr.bf16.mxu0 %v446_v24 }
  0x2a   : > { %254 = vmatpush1.bf16.msra.mxu0 %v448_v25 }
  0x2b   : > { %255 = vmatprep.subr.bf16.mxu0 %v449_v26 }
  0x2e   : > { %256 = vmatpush1.bf16.msra.mxu0 %v451_v27 }
  0x2f   : > { %257 = vmatprep.subr.bf16.mxu0 %v452_v28 }
  0x32   : > { %258 = vmatpush1.bf16.msra.mxu0 %v454_v29 }
  0x33   : > { %259 = vmatprep.subr.bf16.mxu0 %v455_v30 }
  0x36   : > { %260 = vmatpush1.bf16.msra.mxu0 %v457_v31 }
  0x37   : > { %261 = vmatprep.subr.bf16.mxu0 %v458_v32 }
  0x3a   : > { %262 = vmatpush1.bf16.msra.mxu0 %v460_v33 }
  0x3b   : > { %263 = vmatprep.subr.bf16.mxu0 %v461_v34 }
  0x3e   : > { %264 = vmatpush1.bf16.msra.mxu0 %v463_v35 }
  0x3f   : > { %265 = vmatprep.subr.bf16.mxu0 %v464_v36 }
  0x42   : > { %266 = vmatpush1.bf16.msra.mxu0 %v466_v37 }
  0x45   : > { %268 = vmatmul.mubr.bf16.vlgmr.msra.gmra.mrb[0].mxu0 %v366_v38 }
 0x118   : > { %v269_v46 = vpop.f32.mrb[0].mxu0 }
 0x119   : > { %v276_v48 = vadd.f32 %v269_v46, %v33_v41  ;;  %v271_v50 = vpop.f32.mrb[1].mxu0 }
 0x11a   : > { %v277_v51 = vadd.f32 %v271_v50, %v34_v44  ;;  %v273_v53 = vpop.f32.mrb[2].mxu0 }
 0x11b   : > { %v282_v54 = vadd.f32 %v280_v43, %v276_v48  ;;  %v274_v55 = vpop.f32.mrb[3].mxu0 }
 0x11c   : > { %v283_v56 = vadd.f32 %v281_v47, %v277_v51 }
 0x11d   : > { %v288_v57 = vadd.f32 %v286_v49, %v282_v54  ;;  %300 = vst [vmem:[#allocation3] sm:$0xff] %v282_v54 }
 0x11e   : > { %v289_v58 = vadd.f32 %v287_v52, %v283_v56  ;;  %301 = vst [vmem:[#allocation3 + $0x8] sm:$0xff] %v283_v56 }
 0x11f   : > { %vm290_vm1 = vcmp.ge.f32.partialorder %v288_v57, 1.0 }
 0x120   : > { %v400_v60 = vsel %vm290_vm1, 1.0, %v479_v59  ;;  %vm291_vm2 = vcmp.ge.f32.partialorder %v289_v58, 1.0 }
 0x121   : > { %v296_v61 = vsub.f32 %v288_v57, %v400_v60  ;;  %v315_v62 = vrot.slane %v400_v60, 4  ;;  %v401_v63 = vsel %vm291_vm2, 1.0, %v479_v59 }
 0x122   : > { %v297_v1 = vsub.f32 %v289_v58, %v401_v63  ;;  %v405_v2 = vpack.c.bf16 %v401_v63, %v400_v60  ;;  %v321_v4 = vrot.slane %v401_v63, 4 }
 0x123   : > { %298 = vst [vmem:[#allocation4] sm:$0xff] %v296_v61  ;;  %v316_v5 = vadd.f32 %v400_v60, %v315_v62 }
 0x124   : > { %299 = vst [vmem:[#allocation4 + $0x8] sm:$0xff] %v297_v1  ;;  %310 = vst [vmem:[#allocation2] sm:$0xff] %v405_v2  ;;  %v322_v6 = vadd.f32 %v401_v63, %v321_v4 }
 0x125   : > { %313 = vst [vmem:[%s312_s7] sm:$0xff] %v405_v2  ;;  %v317_v9 = vrot.slane %v316_v5, 2 }
 0x126   : > { %v323_v10 = vrot.slane %v322_v6, 2 }
 0x127   : > { %v318_v11 = vadd.f32 %v317_v9, %v316_v5 }
 0x128   : > { %v324_v12 = vadd.f32 %v323_v10, %v322_v6 }
 0x129   : > { %v319_v15 = vrot.slane %v318_v11, 1 }
 0x12a   : > { %v325_v16 = vrot.slane %v324_v12, 1 }
 0x12b   : > { %v320_v17 = vadd.f32 %v319_v15, %v318_v11 }
 0x12c   : > { %v326_v18 = vadd.f32 %v325_v16, %v324_v12 }
 0x12e   : > { %v329_v20 = vcombine.low %v320_v17, %v326_v18 }
 0x130   : > { %v336_v21 = vrot.slane %v329_v20, %v335_v19  ;;  %28 = sbr.rel (!%p26_p0) target bundleno = 4 (0x4), region = 45 }
 0x132   : > { %v343_v23 = vrot.slane %v336_v21, %v335_v19 }
 0x134   : > { %v345_v24 = vadd.f32 %v343_v23, %v314_v22 }
 0x136   : > { %346 = vst.msk [vmem:[%s635_s3] sm:$0x3] %vm502_vm0, %v345_v24 }

// kernel: _lambda_.16
= control target key start
LH: loop header
LB: loop body
LE: loop exit
PB: predicated region body
PF: predicated region fallthrough
CT: control target
= control target key end

     0   :  { %s350_s1 = inlined_call_operand.vmem [shape: bf16[256,128], index: 1, kind: input, shape index: {}]   ;;  %s351_s0 = inlined_call_operand.vmem [shape: bf16[16,256], index: 0, kind: input, shape index: {}]   ;;  %s352_s2 = inlined_call_operand.vmem [shape: f32[16,128], index: 2, kind: output, shape index: {}]  }
   0x1   :  { %v256_v0 = vld [vmem:[%s350_s1 + $0x40] sm:$0xff]   ;;  %v258_v2 = vld [vmem:[%s350_s1 + $0x48] sm:$0xff]   ;;  %v260_v4 = vld [vmem:[%s350_s1 + $0x50] sm:$0xff]  }
   0x2   :  { %v257_v1 = vld [vmem:[%s350_s1] sm:$0xff]   ;;  %234 = vmatprep.subr.bf16.mxu0 %v256_v0  ;;  %v259_v3 = vld [vmem:[%s350_s1 + $0x8] sm:$0xff]   ;;  %v261_v5 = vld [vmem:[%s350_s1 + $0x10] sm:$0xff]  }
   0x3   :  { %235 = vmatpush3.bf16.msra.mxu0 %v257_v1  ;;  %v262_v6 = vld [vmem:[%s350_s1 + $0x58] sm:$0xff]   ;;  %v264_v8 = vld [vmem:[%s350_s1 + $0x60] sm:$0xff]   ;;  %v266_v10 = vld [vmem:[%s350_s1 + $0x68] sm:$0xff]  }
   0x4   :  { %236 = vmatprep.subr.bf16.mxu0 %v258_v2  ;;  %v263_v7 = vld [vmem:[%s350_s1 + $0x18] sm:$0xff]   ;;  %v265_v9 = vld [vmem:[%s350_s1 + $0x20] sm:$0xff]   ;;  %v267_v12 = vld [vmem:[%s350_s1 + $0x28] sm:$0xff]  }
   0x5   :  { %v274_v11 = vld [vmem:[%s351_s0 + $0x4] ss:$8 sps:$4 sm:$0xff]   ;;  %v268_v13 = vld [vmem:[%s350_s1 + $0x70] sm:$0xff]   ;;  %v270_v15 = vld [vmem:[%s350_s1 + $0x78] sm:$0xff]  }
   0x6   :  { %192 = vmatprep.mubr.bf16.mxu0 %v274_v11  ;;  %v269_v14 = vld [vmem:[%s350_s1 + $0x30] sm:$0xff]   ;;  %v271_v16 = vld [vmem:[%s350_s1 + $0x38] sm:$0xff]   ;;  %v272_v17 = vld [vmem:[%s351_s0] ss:$8 sps:$4 sm:$0xff]  }
   0x7   :  { %237 = vmatpush3.bf16.msra.mxu0 %v259_v3 }
   0x8   :  { %238 = vmatprep.subr.bf16.mxu0 %v260_v4 }
   0xb   :  { %239 = vmatpush3.bf16.msra.mxu0 %v261_v5 }
   0xc   :  { %240 = vmatprep.subr.bf16.mxu0 %v262_v6 }
   0xf   :  { %241 = vmatpush3.bf16.msra.mxu0 %v263_v7 }
  0x10   :  { %242 = vmatprep.subr.bf16.mxu0 %v264_v8 }
  0x13   :  { %243 = vmatpush3.bf16.msra.mxu0 %v265_v9 }
  0x14   :  { %244 = vmatprep.subr.bf16.mxu0 %v266_v10 }
  0x17   :  { %245 = vmatpush3.bf16.msra.mxu0 %v267_v12 }
  0x18   :  { %246 = vmatprep.subr.bf16.mxu0 %v268_v13 }
  0x1b   :  { %247 = vmatpush3.bf16.msra.mxu0 %v269_v14 }
  0x1c   :  { %248 = vmatprep.subr.bf16.mxu0 %v270_v15 }
  0x1f   :  { %249 = vmatpush3.bf16.msra.mxu0 %v271_v16 }
  0x22   :  { %193 = vmatmul.mubr.bf16.vlgmr.msra.gmra.mrb[0].mxu0 %v272_v17 }
  0xf5   :  { %v250_v18 = vpop.f32.mrb[0].mxu0 }
  0xf6   :  { %v251_v19 = vpop.f32.mrb[1].mxu0 }
  0xf7   :  { %v252_v20 = vadd.f32 %v251_v19, %v250_v18  ;;  %v253_v21 = vpop.f32.mrb[2].mxu0 }
  0xf8   :  { %v254_v22 = vpop.f32.mrb[3].mxu0 }
  0xf9   :  { %210 = vst [vmem:[%s352_s2] sm:$0xff] %v252_v20  ;;  %v255_v23 = vadd.f32 %v254_v22, %v253_v21 }
  0xfb   :  { %211 = vst [vmem:[%s352_s2 + $0x8] sm:$0xff] %v255_v23 }

// kernel: _lambda_.17
= control target key start
LH: loop header
LB: loop body
LE: loop exit
PB: predicated region body
PF: predicated region fallthrough
CT: control target
= control target key end

     0   :  { %v82_v0 = vmov 0.0   ;;  %s102_s11 = smov 0   ;;  %s123_s0 = inlined_call_operand.vmem [shape: f32[8,8,128], index: 0, kind: input, shape index: {}]   ;;  %s124_s1 = inlined_call_operand.vmem [shape: f32[8,8,128], index: 1, kind: output, shape index: {0}]   ;;  %s125_s2 = inlined_call_operand.vmem [shape: f32[1,1,128], index: 2, kind: output, shape index: {1}]  }
   0x1   :  { %10 = vst [vmem:[#allocation2] sm:$0xff] %v82_v0  ;;  %11 = vst [vmem:[#allocation3] sm:$0xff] %v82_v0 }
   0x2   :  { %12 = vst [vmem:[%s125_s2] sm:$0x1] %v82_v0 }
   0x3 LB: > { %s62_s12 = sshll.u32 %s80_s11, 3  ;;  %v83_v8 = vmov 0.0   ;;  %s18_s11 = sadd.s32 1, %s80_s11   ;;  %s80_s11 = sphi %s102_s11, %s18_s11  }
   0x4   : > { %s22_s15 = scalar_lea.vmem %s123_s0, %s62_s12  ;;  %s34_s18 = scalar_lea.vmem %s124_s1, %s62_s12 }
   0x5   : > { %v23_v5 = vld [vmem:[%s22_s15] sm:$0xff]  ;;  %p15_p0 = scmp.ge.s32.totalorder %s18_s11, 8  }
   0x8   : > { %v19_v1 = vld [vmem:[#allocation2] sm:$0xff]  ;;  %v25_v2 = vld [vmem:[#allocation3] sm:$0xff] }
   0x9   : > { %v20_v3 = vmul.f32 0.8187308, %v19_v1  ;;  %v26_v4 = vmul.f32 0.95122945, %v25_v2  ;;  %v36_v16 = vld [vmem:[%s125_s2] sm:$0x1] }
   0xb   : > { %v24_v6 = vadd.f32 %v23_v5, %v20_v3 }
   0xd   : > { %v27_v7 = vadd.f32 %v26_v4, %v24_v6  ;;  %33 = vst [vmem:[#allocation2] sm:$0xff] %v24_v6 }
   0xf   : > { %vm28_vm0 = vcmp.ge.f32.partialorder %v27_v7, 1.0 }
  0x10   : > { %v63_v9 = vsel %vm28_vm0, 1.0, %v83_v8 }
  0x11   : > { %v31_v10 = vsub.f32 %v27_v7, %v63_v9  ;;  %35 = vst [vmem:[%s34_s18] sm:$0xff] %v63_v9  ;;  %v37_v11 = vrot.slane %v63_v9, 4 }
  0x13   : > { %32 = vst [vmem:[#allocation3] sm:$0xff] %v31_v10  ;;  %v38_v12 = vadd.f32 %v63_v9, %v37_v11 }
  0x15   : > { %v39_v13 = vrot.slane %v38_v12, 2 }
  0x17   : > { %v40_v14 = vadd.f32 %v39_v13, %v38_v12 }
  0x19   : > { %v41_v15 = vrot.slane %v40_v14, 1  ;;  %17 = sbr.rel (!%p15_p0) target bundleno = 3 (0x3), region = 41 }
  0x1b   : > { %v42_v17 = vadd.f32 %v41_v15, %v40_v14 }
  0x1d   : > { %v43_v18 = vadd.f32 %v42_v17, %v36_v16 }
  0x1f   : > { %44 = vst [vmem:[%s125_s2] sm:$0x1] %v43_v18 }

</bundles_post_ra>
